<compile_context>
chip_gen: v6e
topology: v6e:2x2x1
jax: 0.10.0
libtpu: 0.0.40
codegen_flags: <defaults>
</compile_context>

<pallas_src>
import jax
import jax.numpy as jnp
from jax.experimental import pallas as pl
from jax.experimental.pallas import tpu as pltpu

_NEG_SLOPE = 0.01   # PyTorch nn.LeakyReLU default negative_slope
_BN_EPS = 1e-5      # PyTorch nn.BatchNorm2d default eps


# ---------------------------------------------------------------------------
# Fused ResB kernel: Branch1..4 conv chains + Branch0 1x1 conv + residual add
# + final LeakyReLU, one grid step per batch element.
# ---------------------------------------------------------------------------
def _make_resb_kernel(h, w, oc4, branch_layout):
    hp, wp = h + 2, w + 2
    lp = hp * wp                     # flat length of the zero-padded image
    g = wp + 1                       # flat guard so every tap shift is a static slice
    shifts = [(dy - 1) * wp + (dx - 1) for dy in range(3) for dx in range(3)]
    n_layers_total = sum(branch_layout)

    def kernel(*args):
        x_ref, mask_ref, w0_ref, b0_ref = args[:4]
        layer_refs = args[4:4 + 2 * n_layers_total]          # (w, shift) per 3x3 layer
        o_ref = args[4 + 2 * n_layers_total]
        buf_a = args[4 + 2 * n_layers_total + 1]
        buf_b = args[4 + 2 * n_layers_total + 2]
        bufs = (buf_a, buf_b)

        mask = mask_ref[...]                                  # (1, lp): 1 interior, 0 border

        # ---- Branch0: 1x1 conv (BN scale already folded into w0) + shift ----
        x_center = x_ref[0, :, g:g + lp]                      # (c_in, lp)
        x0 = jnp.dot(w0_ref[...], x_center,
                     preferred_element_type=jnp.float32) + b0_ref[...]

        # Zero the ping-pong scratch so the flat guard regions always read as 0.
        buf_a[...] = jnp.zeros_like(buf_a)
        buf_b[...] = jnp.zeros_like(buf_b)

        def conv3x3(tap_fn, w_ref, s_ref, apply_act, apply_mask):
            # im2col: stack the 9 shifted views -> one K = 9*C_in matmul (MXU-friendly).
            xim = jnp.concatenate([tap_fn(s) for s in shifts], axis=0)
            y = jnp.dot(w_ref[...], xim,
                        preferred_element_type=jnp.float32) + s_ref[...]
            if apply_act:                                     # LeakyReLU between layers
                y = jnp.where(y >= 0.0, y, _NEG_SLOPE * y)
            if apply_mask:                                    # re-zero padded border
                y = y * mask
            return y

        flat_li = 0
        for bi, n_layers in enumerate(branch_layout):         # branches 1..4
            cur = -1                                          # -1: source is x_ref
            for li in range(n_layers):
                w_ref = layer_refs[2 * flat_li]
                s_ref = layer_refs[2 * flat_li + 1]
                flat_li += 1
                last = li == n_layers - 1
                if cur < 0:
                    tap_fn = lambda s: x_ref[0, :, g + s:g + s + lp]
                else:
                    src = bufs[cur]
                    tap_fn = lambda s, src=src: src[:, g + s:g + s + lp]
                y = conv3x3(tap_fn, w_ref, s_ref,
                            apply_act=not last, apply_mask=not last)
                if not last:
                    nxt = 0 if cur != 0 else 1
                    bufs[nxt][:, g:g + lp] = y                # stay in padded-flat layout
                    cur = nxt
                else:
                    # Fused epilogue: add Branch0's channel-quarter, LeakyReLU, store.
                    q = x0[bi * oc4:(bi + 1) * oc4, :] + y
                    o_ref[0, bi * oc4:(bi + 1) * oc4, :] = jnp.where(
                        q >= 0.0, q, _NEG_SLOPE * q).astype(o_ref.dtype)

    return kernel


def resb_forward(x, params):
    """x: (N, C_in, H, W); params: folded ResB parameters."""
    n, c_in, h, w = x.shape
    out_ch = params["branch0"]["w"].shape[0]
    oc4 = params["branch1"][0]["w"].shape[0]
    hp, wp = h + 2, w + 2
    lp = hp * wp
    g = wp + 1
    l2 = lp + 2 * g

    # Pad ONCE on block entry: spatial zero pad (conv padding=1) + flat guard zeros.
    x_pad = jnp.pad(x, ((0, 0), (0, 0), (1, 1), (1, 1)))
    x_flat = jnp.pad(x_pad.reshape(n, c_in, lp), ((0, 0), (0, 0), (g, g)))

    # Interior mask in padded-flat layout (used to re-zero borders between layers).
    rmask = ((jnp.arange(hp) >= 1) & (jnp.arange(hp) <= h)).astype(jnp.float32)
    cmask = ((jnp.arange(wp) >= 1) & (jnp.arange(wp) <= w)).astype(jnp.float32)
    mask = (rmask[:, None] * cmask[None, :]).reshape(1, lp)

    inputs = [x_flat, mask, params["branch0"]["w"], params["branch0"]["shift"]]
    in_specs = [
        pl.BlockSpec((1, c_in, l2), lambda i: (i, 0, 0)),     # per-batch input block
        pl.BlockSpec((1, lp), lambda i: (0, 0)),              # resident
        pl.BlockSpec((out_ch, c_in), lambda i: (0, 0)),       # resident
        pl.BlockSpec((out_ch, 1), lambda i: (0, 0)),          # resident
    ]
    for bi in (1, 2, 3, 4):
        for layer in params[f"branch{bi}"]:
            co, kk = layer["w"].shape
            inputs += [layer["w"], layer["shift"]]
            in_specs += [
                pl.BlockSpec((co, kk), lambda i: (0, 0)),     # resident
                pl.BlockSpec((co, 1), lambda i: (0, 0)),      # resident
            ]

    branch_layout = tuple(len(params[f"branch{bi}"]) for bi in (1, 2, 3, 4))
    kernel = _make_resb_kernel(h, w, oc4, branch_layout)

    out_flat = pl.pallas_call(
        kernel,
        out_shape=jax.ShapeDtypeStruct((n, out_ch, lp), x.dtype),
        grid_spec=pltpu.PrefetchScalarGridSpec(
            num_scalar_prefetch=0,
            grid=(n,),
            in_specs=in_specs,
            out_specs=pl.BlockSpec((1, out_ch, lp), lambda i: (i, 0, 0)),
            scratch_shapes=[pltpu.VMEM((oc4, l2), jnp.float32),
                            pltpu.VMEM((oc4, l2), jnp.float32)],
        ),
        compiler_params=pltpu.CompilerParams(
            dimension_semantics=("parallel",)),
    )(*inputs)

    # Single crop on block exit (cheap, small).
    return out_flat.reshape(n, out_ch, hp, wp)[:, :, 1:h + 1, 1:w + 1]


# ---------------------------------------------------------------------------
# Parameter init (PyTorch-like) + BN/bias folding (scale folded into weights)
# ---------------------------------------------------------------------------
def _init_conv(key, c_in, c_out, k):
    kw, kb = jax.random.split(key)
    fan_in = c_in * k * k
    bound = 1.0 / (fan_in ** 0.5)
    w = jax.random.uniform(kw, (c_out, c_in, k, k), jnp.float32, -bound, bound)
    b = jax.random.uniform(kb, (c_out,), jnp.float32, -bound, bound)
    return w, b


def _init_bn(key, c):
    k1, k2, k3, k4 = jax.random.split(key, 4)
    gamma = jax.random.uniform(k1, (c,), jnp.float32, 0.8, 1.2)
    beta = jax.random.uniform(k2, (c,), jnp.float32, -0.1, 0.1)
    mean = jax.random.uniform(k3, (c,), jnp.float32, -0.1, 0.1)
    var = jax.random.uniform(k4, (c,), jnp.float32, 0.5, 1.5)
    return gamma, beta, mean, var


def init_resb_params(key, in_ch, out_ch):
    oc4 = out_ch // 4
    keys = iter(jax.random.split(key, 32))
    raw = {}
    w, b = _init_conv(next(keys), in_ch, out_ch, 1)
    raw["branch0"] = [{"w": w, "b": b, "bn": _init_bn(next(keys), out_ch)}]
    for bi, n_layers in ((1, 1), (2, 2), (3, 3), (4, 4)):
        layers, c_prev = [], in_ch
        for _ in range(n_layers):
            w, b = _init_conv(next(keys), c_prev, oc4, 3)
            layers.append({"w": w, "b": b, "bn": _init_bn(next(keys), oc4)})
            c_prev = oc4
        raw[f"branch{bi}"] = layers
    return raw


def _fold_scale_shift(conv_bias, bn):
    gamma, beta, mean, var = bn
    scale = gamma / jnp.sqrt(var + _BN_EPS)
    shift = beta + scale * (conv_bias - mean)
    return scale.reshape(-1, 1), shift.reshape(-1, 1)


def fold_resb_params(raw):
    """Fold BN (eval mode) + conv bias into weight-scale / shift; weights pre-scaled."""
    folded = {}
    b0 = raw["branch0"][0]
    scale, shift = _fold_scale_shift(b0["b"], b0["bn"])
    c_out, c_in = b0["w"].shape[:2]
    folded["branch0"] = {"w": b0["w"].reshape(c_out, c_in) * scale, "shift": shift}
    for bi in (1, 2, 3, 4):
        layers = []
        for layer in raw[f"branch{bi}"]:
            scale, shift = _fold_scale_shift(layer["b"], layer["bn"])
            c_out, c_in_l = layer["w"].shape[:2]
            # (c_out, c_in, 3, 3) -> (c_out, 9*c_in) with K index = (dy*3+dx)*c_in + ci,
            # matching the in-kernel im2col stacking order; BN scale folded in.
            w_flat = jnp.transpose(layer["w"], (0, 2, 3, 1)).reshape(c_out, 9 * c_in_l)
            layers.append({"w": w_flat * scale, "shift": shift})
        folded[f"branch{bi}"] = layers
    return folded


# ---------------------------------------------------------------------------
# Pure-JAX reference (raw params, eval-mode BN) for correctness check
# ---------------------------------------------------------------------------
def resb_reference(x, raw):
    def conv3x3(xx, w, b):
        xp = jnp.pad(xx, ((0, 0), (0, 0), (1, 1), (1, 1)))
        h, wsp = xx.shape[2], xx.shape[3]
        out = b[None, :, None, None]
        for dy in range(3):
            for dx in range(3):
                out = out + jnp.einsum("oc,nchw->nohw", w[:, :, dy, dx],
                                       xp[:, :, dy:dy + h, dx:dx + wsp])
        return out

    def conv1x1(xx, w, b):
        return jnp.einsum("oc,nchw->nohw", w[:, :, 0, 0], xx) + b[None, :, None, None]

    def bn(xx, p):
        gamma, beta, mean, var = p
        inv = gamma / jnp.sqrt(var + _BN_EPS)
        return (xx - mean[None, :, None, None]) * inv[None, :, None, None] \
            + beta[None, :, None, None]

    def lrelu(xx):
        return jnp.where(xx >= 0.0, xx, _NEG_SLOPE * xx)

    b0 = raw["branch0"][0]
    x0 = bn(conv1x1(x, b0["w"], b0["b"]), b0["bn"])
    outs = []
    for bi in (1, 2, 3, 4):
        h = x
        layers = raw[f"branch{bi}"]
        for li, layer in enumerate(layers):
            h = bn(conv3x3(h, layer["w"], layer["b"]), layer["bn"])
            if li < len(layers) - 1:
                h = lrelu(h)
        outs.append(h)
    x5 = jnp.concatenate(outs, axis=1)
    return lrelu(x0 + x5)


if __name__ == "__main__":
    key = jax.random.PRNGKey(0)
    k_x, k_p = jax.random.split(key)

    N, IN_CH, OUT_CH, H, W = 2, 4, 16, 16, 16
    x = jax.random.normal(k_x, (N, IN_CH, H, W), dtype=jnp.float32)

    raw = init_resb_params(k_p, IN_CH, OUT_CH)
    folded = fold_resb_params(raw)

    fwd = jax.jit(resb_forward)
    out = fwd(x, folded)
    jax.block_until_ready(out)

    ref = resb_reference(x, raw)
    assert out.shape == (N, OUT_CH, H, W)
    max_err = float(jnp.max(jnp.abs(out - ref)))
    assert jnp.allclose(out, ref, atol=2e-3, rtol=2e-3), f"max abs err {max_err}"

    print("KERNEL_OK")
</pallas_src>

<mosaic_0001>
module attributes {stable_mosaic.version = 11 : i64} {
  func.func @kernel(%arg0: i32, %arg1: memref<1x4x362xf32, #tpu.memory_space<vmem>>, %arg2: memref<1x324xf32, #tpu.memory_space<vmem>>, %arg3: memref<16x4xf32, #tpu.memory_space<vmem>>, %arg4: memref<16x1xf32, #tpu.memory_space<vmem>>, %arg5: memref<4x36xf32, #tpu.memory_space<vmem>>, %arg6: memref<4x1xf32, #tpu.memory_space<vmem>>, %arg7: memref<4x36xf32, #tpu.memory_space<vmem>>, %arg8: memref<4x1xf32, #tpu.memory_space<vmem>>, %arg9: memref<4x36xf32, #tpu.memory_space<vmem>>, %arg10: memref<4x1xf32, #tpu.memory_space<vmem>>, %arg11: memref<4x36xf32, #tpu.memory_space<vmem>>, %arg12: memref<4x1xf32, #tpu.memory_space<vmem>>, %arg13: memref<4x36xf32, #tpu.memory_space<vmem>>, %arg14: memref<4x1xf32, #tpu.memory_space<vmem>>, %arg15: memref<4x36xf32, #tpu.memory_space<vmem>>, %arg16: memref<4x1xf32, #tpu.memory_space<vmem>>, %arg17: memref<4x36xf32, #tpu.memory_space<vmem>>, %arg18: memref<4x1xf32, #tpu.memory_space<vmem>>, %arg19: memref<4x36xf32, #tpu.memory_space<vmem>>, %arg20: memref<4x1xf32, #tpu.memory_space<vmem>>, %arg21: memref<4x36xf32, #tpu.memory_space<vmem>>, %arg22: memref<4x1xf32, #tpu.memory_space<vmem>>, %arg23: memref<4x36xf32, #tpu.memory_space<vmem>>, %arg24: memref<4x1xf32, #tpu.memory_space<vmem>>, %arg25: memref<1x16x324xf32, #tpu.memory_space<vmem>>, %arg26: memref<4x362xf32, #tpu.memory_space<vmem>>, %arg27: memref<4x362xf32, #tpu.memory_space<vmem>>) attributes {dimension_semantics = [#tpu.dimension_semantics<parallel>], iteration_bounds = array<i64: 2>, scalar_prefetch = 0 : i64, scratch_operands = 2 : i64, tpu.core_type = #tpu.core_type<tc>, window_params = [{transform_indices = @transform_0, window_bounds = array<i64: 1, 4, 362>}, {pipeline_mode = #tpu.pipeline_mode<synchronous>, transform_indices = @transform_1, window_bounds = array<i64: 1, 324>}, {pipeline_mode = #tpu.pipeline_mode<synchronous>, transform_indices = @transform_2, window_bounds = array<i64: 16, 4>}, {pipeline_mode = #tpu.pipeline_mode<synchronous>, transform_indices = @transform_3, window_bounds = array<i64: 16, 1>}, {pipeline_mode = #tpu.pipeline_mode<synchronous>, transform_indices = @transform_4, window_bounds = array<i64: 4, 36>}, {pipeline_mode = #tpu.pipeline_mode<synchronous>, transform_indices = @transform_5, window_bounds = array<i64: 4, 1>}, {pipeline_mode = #tpu.pipeline_mode<synchronous>, transform_indices = @transform_6, window_bounds = array<i64: 4, 36>}, {pipeline_mode = #tpu.pipeline_mode<synchronous>, transform_indices = @transform_7, window_bounds = array<i64: 4, 1>}, {pipeline_mode = #tpu.pipeline_mode<synchronous>, transform_indices = @transform_8, window_bounds = array<i64: 4, 36>}, {pipeline_mode = #tpu.pipeline_mode<synchronous>, transform_indices = @transform_9, window_bounds = array<i64: 4, 1>}, {pipeline_mode = #tpu.pipeline_mode<synchronous>, transform_indices = @transform_10, window_bounds = array<i64: 4, 36>}, {pipeline_mode = #tpu.pipeline_mode<synchronous>, transform_indices = @transform_11, window_bounds = array<i64: 4, 1>}, {pipeline_mode = #tpu.pipeline_mode<synchronous>, transform_indices = @transform_12, window_bounds = array<i64: 4, 36>}, {pipeline_mode = #tpu.pipeline_mode<synchronous>, transform_indices = @transform_13, window_bounds = array<i64: 4, 1>}, {pipeline_mode = #tpu.pipeline_mode<synchronous>, transform_indices = @transform_14, window_bounds = array<i64: 4, 36>}, {pipeline_mode = #tpu.pipeline_mode<synchronous>, transform_indices = @transform_15, window_bounds = array<i64: 4, 1>}, {pipeline_mode = #tpu.pipeline_mode<synchronous>, transform_indices = @transform_16, window_bounds = array<i64: 4, 36>}, {pipeline_mode = #tpu.pipeline_mode<synchronous>, transform_indices = @transform_17, window_bounds = array<i64: 4, 1>}, {pipeline_mode = #tpu.pipeline_mode<synchronous>, transform_indices = @transform_18, window_bounds = array<i64: 4, 36>}, {pipeline_mode = #tpu.pipeline_mode<synchronous>, transform_indices = @transform_19, window_bounds = array<i64: 4, 1>}, {pipeline_mode = #tpu.pipeline_mode<synchronous>, transform_indices = @transform_20, window_bounds = array<i64: 4, 36>}, {pipeline_mode = #tpu.pipeline_mode<synchronous>, transform_indices = @transform_21, window_bounds = array<i64: 4, 1>}, {pipeline_mode = #tpu.pipeline_mode<synchronous>, transform_indices = @transform_22, window_bounds = array<i64: 4, 36>}, {pipeline_mode = #tpu.pipeline_mode<synchronous>, transform_indices = @transform_23, window_bounds = array<i64: 4, 1>}, {transform_indices = @transform_24, window_bounds = array<i64: 1, 16, 324>}]} {
    %c0 = arith.constant 0 : index
    %c0_0 = arith.constant 0 : index
    %0 = vector.load %arg2[%c0, %c0_0] : memref<1x324xf32, #tpu.memory_space<vmem>>, vector<1x324xf32>
    %c0_1 = arith.constant 0 : index
    %c0_2 = arith.constant 0 : index
    %c19 = arith.constant 19 : index
    %1 = vector.load %arg1[%c0_1, %c0_2, %c19] : memref<1x4x362xf32, #tpu.memory_space<vmem>>, vector<1x4x324xf32>
    %2 = vector.shape_cast %1 : vector<1x4x324xf32> to vector<4x324xf32>
    %c0_3 = arith.constant 0 : index
    %c0_4 = arith.constant 0 : index
    %3 = vector.load %arg3[%c0_3, %c0_4] : memref<16x4xf32, #tpu.memory_space<vmem>>, vector<16x4xf32>
    %cst = arith.constant dense<0.000000e+00> : vector<16x324xf32>
    %4 = tpu.matmul %3, %2, %cst {dimension_numbers = #tpu.dot_dimension_numbers<[1], [0], [0], [1], [0, 0, 1, 1], [], []>} : vector<16x4xf32>, vector<4x324xf32>, vector<16x324xf32> -> vector<16x324xf32>
    %c0_5 = arith.constant 0 : index
    %c0_6 = arith.constant 0 : index
    %5 = vector.load %arg4[%c0_5, %c0_6] : memref<16x1xf32, #tpu.memory_space<vmem>>, vector<16x1xf32>
    %6 = vector.broadcast %5 : vector<16x1xf32> to vector<16x324xf32>
    %7 = arith.addf %4, %6 : vector<16x324xf32>
    %cst_7 = arith.constant 0.000000e+00 : f32
    %8 = vector.broadcast %cst_7 : f32 to vector<4x362xf32>
    %c0_8 = arith.constant 0 : index
    %c0_9 = arith.constant 0 : index
    %9 = vector.load %arg26[%c0_8, %c0_9] : memref<4x362xf32, #tpu.memory_space<vmem>>, vector<4x362xf32>
    tpu.vector_store %arg26[%c0_8, %c0_9], %8 {strides = array<i32>} : memref<4x362xf32, #tpu.memory_space<vmem>>, vector<4x362xf32>,
    %cst_10 = arith.constant 0.000000e+00 : f32
    %10 = vector.broadcast %cst_10 : f32 to vector<4x362xf32>
    %c0_11 = arith.constant 0 : index
    %c0_12 = arith.constant 0 : index
    %11 = vector.load %arg27[%c0_11, %c0_12] : memref<4x362xf32, #tpu.memory_space<vmem>>, vector<4x362xf32>
    tpu.vector_store %arg27[%c0_11, %c0_12], %10 {strides = array<i32>} : memref<4x362xf32, #tpu.memory_space<vmem>>, vector<4x362xf32>,
    %c0_13 = arith.constant 0 : index
    %c0_14 = arith.constant 0 : index
    %c0_15 = arith.constant 0 : index
    %12 = vector.load %arg1[%c0_13, %c0_14, %c0_15] : memref<1x4x362xf32, #tpu.memory_space<vmem>>, vector<1x4x324xf32>
    %13 = vector.shape_cast %12 : vector<1x4x324xf32> to vector<4x324xf32>
    %c0_16 = arith.constant 0 : index
    %c0_17 = arith.constant 0 : index
    %c1 = arith.constant 1 : index
    %14 = vector.load %arg1[%c0_16, %c0_17, %c1] : memref<1x4x362xf32, #tpu.memory_space<vmem>>, vector<1x4x324xf32>
    %15 = vector.shape_cast %14 : vector<1x4x324xf32> to vector<4x324xf32>
    %c0_18 = arith.constant 0 : index
    %c0_19 = arith.constant 0 : index
    %c2 = arith.constant 2 : index
    %16 = vector.load %arg1[%c0_18, %c0_19, %c2] : memref<1x4x362xf32, #tpu.memory_space<vmem>>, vector<1x4x324xf32>
    %17 = vector.shape_cast %16 : vector<1x4x324xf32> to vector<4x324xf32>
    %c0_20 = arith.constant 0 : index
    %c0_21 = arith.constant 0 : index
    %c18 = arith.constant 18 : index
    %18 = vector.load %arg1[%c0_20, %c0_21, %c18] : memref<1x4x362xf32, #tpu.memory_space<vmem>>, vector<1x4x324xf32>
    %19 = vector.shape_cast %18 : vector<1x4x324xf32> to vector<4x324xf32>
    %c0_22 = arith.constant 0 : index
    %c0_23 = arith.constant 0 : index
    %c19_24 = arith.constant 19 : index
    %20 = vector.load %arg1[%c0_22, %c0_23, %c19_24] : memref<1x4x362xf32, #tpu.memory_space<vmem>>, vector<1x4x324xf32>
    %21 = vector.shape_cast %20 : vector<1x4x324xf32> to vector<4x324xf32>
    %c0_25 = arith.constant 0 : index
    %c0_26 = arith.constant 0 : index
    %c20 = arith.constant 20 : index
    %22 = vector.load %arg1[%c0_25, %c0_26, %c20] : memref<1x4x362xf32, #tpu.memory_space<vmem>>, vector<1x4x324xf32>
    %23 = vector.shape_cast %22 : vector<1x4x324xf32> to vector<4x324xf32>
    %c0_27 = arith.constant 0 : index
    %c0_28 = arith.constant 0 : index
    %c36 = arith.constant 36 : index
    %24 = vector.load %arg1[%c0_27, %c0_28, %c36] : memref<1x4x362xf32, #tpu.memory_space<vmem>>, vector<1x4x324xf32>
    %25 = vector.shape_cast %24 : vector<1x4x324xf32> to vector<4x324xf32>
    %c0_29 = arith.constant 0 : index
    %c0_30 = arith.constant 0 : index
    %c37 = arith.constant 37 : index
    %26 = vector.load %arg1[%c0_29, %c0_30, %c37] : memref<1x4x362xf32, #tpu.memory_space<vmem>>, vector<1x4x324xf32>
    %27 = vector.shape_cast %26 : vector<1x4x324xf32> to vector<4x324xf32>
    %c0_31 = arith.constant 0 : index
    %c0_32 = arith.constant 0 : index
    %c38 = arith.constant 38 : index
    %28 = vector.load %arg1[%c0_31, %c0_32, %c38] : memref<1x4x362xf32, #tpu.memory_space<vmem>>, vector<1x4x324xf32>
    %29 = vector.shape_cast %28 : vector<1x4x324xf32> to vector<4x324xf32>
    %30 = tpu.concatenate %13, %15, %17, %19, %21, %23, %25, %27, %29 in 0 : vector<4x324xf32>, vector<4x324xf32>, vector<4x324xf32>, vector<4x324xf32>, vector<4x324xf32>, vector<4x324xf32>, vector<4x324xf32>, vector<4x324xf32>, vector<4x324xf32> -> vector<36x324xf32>
    %c0_33 = arith.constant 0 : index
    %c0_34 = arith.constant 0 : index
    %31 = vector.load %arg5[%c0_33, %c0_34] : memref<4x36xf32, #tpu.memory_space<vmem>>, vector<4x36xf32>
    %cst_35 = arith.constant dense<0.000000e+00> : vector<4x324xf32>
    %32 = tpu.matmul %31, %30, %cst_35 {dimension_numbers = #tpu.dot_dimension_numbers<[1], [0], [0], [1], [0, 0, 1, 1], [], []>} : vector<4x36xf32>, vector<36x324xf32>, vector<4x324xf32> -> vector<4x324xf32>
    %c0_36 = arith.constant 0 : index
    %c0_37 = arith.constant 0 : index
    %33 = vector.load %arg6[%c0_36, %c0_37] : memref<4x1xf32, #tpu.memory_space<vmem>>, vector<4x1xf32>
    %34 = vector.broadcast %33 : vector<4x1xf32> to vector<4x324xf32>
    %35 = arith.addf %32, %34 : vector<4x324xf32>
    %36 = vector.extract_strided_slice %7 {offsets = [0, 0], sizes = [4, 324], strides = [1, 1]} : vector<16x324xf32> to vector<4x324xf32>
    %37 = arith.addf %36, %35 : vector<4x324xf32>
    %cst_38 = arith.constant 0.000000e+00 : f32
    %38 = vector.broadcast %cst_38 : f32 to vector<4x324xf32>
    %39 = arith.cmpf oge, %37, %38 : vector<4x324xf32>
    %cst_39 = arith.constant 0.00999999977 : f32
    %40 = vector.broadcast %cst_39 : f32 to vector<4x324xf32>
    %41 = arith.mulf %40, %37 : vector<4x324xf32>
    %42 = arith.select %39, %37, %41 : vector<4x324xi1>, vector<4x324xf32>
    %c0_40 = arith.constant 0 : index
    %c0_41 = arith.constant 0 : index
    %c0_42 = arith.constant 0 : index
    %43 = vector.load %arg25[%c0_40, %c0_41, %c0_42] : memref<1x16x324xf32, #tpu.memory_space<vmem>>, vector<1x4x324xf32>
    %44 = vector.shape_cast %43 : vector<1x4x324xf32> to vector<4x324xf32>
    %45 = vector.shape_cast %42 : vector<4x324xf32> to vector<1x4x324xf32>
    tpu.vector_store %arg25[%c0_40, %c0_41, %c0_42], %45 {strides = array<i32>} : memref<1x16x324xf32, #tpu.memory_space<vmem>>, vector<1x4x324xf32>,
    %c0_43 = arith.constant 0 : index
    %c0_44 = arith.constant 0 : index
    %c0_45 = arith.constant 0 : index
    %46 = vector.load %arg1[%c0_43, %c0_44, %c0_45] : memref<1x4x362xf32, #tpu.memory_space<vmem>>, vector<1x4x324xf32>
    %47 = vector.shape_cast %46 : vector<1x4x324xf32> to vector<4x324xf32>
    %c0_46 = arith.constant 0 : index
    %c0_47 = arith.constant 0 : index
    %c1_48 = arith.constant 1 : index
    %48 = vector.load %arg1[%c0_46, %c0_47, %c1_48] : memref<1x4x362xf32, #tpu.memory_space<vmem>>, vector<1x4x324xf32>
    %49 = vector.shape_cast %48 : vector<1x4x324xf32> to vector<4x324xf32>
    %c0_49 = arith.constant 0 : index
    %c0_50 = arith.constant 0 : index
    %c2_51 = arith.constant 2 : index
    %50 = vector.load %arg1[%c0_49, %c0_50, %c2_51] : memref<1x4x362xf32, #tpu.memory_space<vmem>>, vector<1x4x324xf32>
    %51 = vector.shape_cast %50 : vector<1x4x324xf32> to vector<4x324xf32>
    %c0_52 = arith.constant 0 : index
    %c0_53 = arith.constant 0 : index
    %c18_54 = arith.constant 18 : index
    %52 = vector.load %arg1[%c0_52, %c0_53, %c18_54] : memref<1x4x362xf32, #tpu.memory_space<vmem>>, vector<1x4x324xf32>
    %53 = vector.shape_cast %52 : vector<1x4x324xf32> to vector<4x324xf32>
    %c0_55 = arith.constant 0 : index
    %c0_56 = arith.constant 0 : index
    %c19_57 = arith.constant 19 : index
    %54 = vector.load %arg1[%c0_55, %c0_56, %c19_57] : memref<1x4x362xf32, #tpu.memory_space<vmem>>, vector<1x4x324xf32>
    %55 = vector.shape_cast %54 : vector<1x4x324xf32> to vector<4x324xf32>
    %c0_58 = arith.constant 0 : index
    %c0_59 = arith.constant 0 : index
    %c20_60 = arith.constant 20 : index
    %56 = vector.load %arg1[%c0_58, %c0_59, %c20_60] : memref<1x4x362xf32, #tpu.memory_space<vmem>>, vector<1x4x324xf32>
    %57 = vector.shape_cast %56 : vector<1x4x324xf32> to vector<4x324xf32>
    %c0_61 = arith.constant 0 : index
    %c0_62 = arith.constant 0 : index
    %c36_63 = arith.constant 36 : index
    %58 = vector.load %arg1[%c0_61, %c0_62, %c36_63] : memref<1x4x362xf32, #tpu.memory_space<vmem>>, vector<1x4x324xf32>
    %59 = vector.shape_cast %58 : vector<1x4x324xf32> to vector<4x324xf32>
    %c0_64 = arith.constant 0 : index
    %c0_65 = arith.constant 0 : index
    %c37_66 = arith.constant 37 : index
    %60 = vector.load %arg1[%c0_64, %c0_65, %c37_66] : memref<1x4x362xf32, #tpu.memory_space<vmem>>, vector<1x4x324xf32>
    %61 = vector.shape_cast %60 : vector<1x4x324xf32> to vector<4x324xf32>
    %c0_67 = arith.constant 0 : index
    %c0_68 = arith.constant 0 : index
    %c38_69 = arith.constant 38 : index
    %62 = vector.load %arg1[%c0_67, %c0_68, %c38_69] : memref<1x4x362xf32, #tpu.memory_space<vmem>>, vector<1x4x324xf32>
    %63 = vector.shape_cast %62 : vector<1x4x324xf32> to vector<4x324xf32>
    %64 = tpu.concatenate %47, %49, %51, %53, %55, %57, %59, %61, %63 in 0 : vector<4x324xf32>, vector<4x324xf32>, vector<4x324xf32>, vector<4x324xf32>, vector<4x324xf32>, vector<4x324xf32>, vector<4x324xf32>, vector<4x324xf32>, vector<4x324xf32> -> vector<36x324xf32>
    %c0_70 = arith.constant 0 : index
    %c0_71 = arith.constant 0 : index
    %65 = vector.load %arg7[%c0_70, %c0_71] : memref<4x36xf32, #tpu.memory_space<vmem>>, vector<4x36xf32>
    %cst_72 = arith.constant dense<0.000000e+00> : vector<4x324xf32>
    %66 = tpu.matmul %65, %64, %cst_72 {dimension_numbers = #tpu.dot_dimension_numbers<[1], [0], [0], [1], [0, 0, 1, 1], [], []>} : vector<4x36xf32>, vector<36x324xf32>, vector<4x324xf32> -> vector<4x324xf32>
    %c0_73 = arith.constant 0 : index
    %c0_74 = arith.constant 0 : index
    %67 = vector.load %arg8[%c0_73, %c0_74] : memref<4x1xf32, #tpu.memory_space<vmem>>, vector<4x1xf32>
    %68 = vector.broadcast %67 : vector<4x1xf32> to vector<4x324xf32>
    %69 = arith.addf %66, %68 : vector<4x324xf32>
    %cst_75 = arith.constant 0.000000e+00 : f32
    %70 = vector.broadcast %cst_75 : f32 to vector<4x324xf32>
    %71 = arith.cmpf oge, %69, %70 : vector<4x324xf32>
    %cst_76 = arith.constant 0.00999999977 : f32
    %72 = vector.broadcast %cst_76 : f32 to vector<4x324xf32>
    %73 = arith.mulf %72, %69 : vector<4x324xf32>
    %74 = arith.select %71, %69, %73 : vector<4x324xi1>, vector<4x324xf32>
    %75 = vector.broadcast %0 : vector<1x324xf32> to vector<4x324xf32>
    %76 = arith.mulf %74, %75 : vector<4x324xf32>
    %c0_77 = arith.constant 0 : index
    %c19_78 = arith.constant 19 : index
    %77 = vector.load %arg26[%c0_77, %c19_78] : memref<4x362xf32, #tpu.memory_space<vmem>>, vector<4x324xf32>
    tpu.vector_store %arg26[%c0_77, %c19_78], %76 {strides = array<i32>} : memref<4x362xf32, #tpu.memory_space<vmem>>, vector<4x324xf32>,
    %c0_79 = arith.constant 0 : index
    %c0_80 = arith.constant 0 : index
    %78 = vector.load %arg26[%c0_79, %c0_80] : memref<4x362xf32, #tpu.memory_space<vmem>>, vector<4x324xf32>
    %c0_81 = arith.constant 0 : index
    %c1_82 = arith.constant 1 : index
    %79 = vector.load %arg26[%c0_81, %c1_82] : memref<4x362xf32, #tpu.memory_space<vmem>>, vector<4x324xf32>
    %c0_83 = arith.constant 0 : index
    %c2_84 = arith.constant 2 : index
    %80 = vector.load %arg26[%c0_83, %c2_84] : memref<4x362xf32, #tpu.memory_space<vmem>>, vector<4x324xf32>
    %c0_85 = arith.constant 0 : index
    %c18_86 = arith.constant 18 : index
    %81 = vector.load %arg26[%c0_85, %c18_86] : memref<4x362xf32, #tpu.memory_space<vmem>>, vector<4x324xf32>
    %c0_87 = arith.constant 0 : index
    %c19_88 = arith.constant 19 : index
    %82 = vector.load %arg26[%c0_87, %c19_88] : memref<4x362xf32, #tpu.memory_space<vmem>>, vector<4x324xf32>
    %c0_89 = arith.constant 0 : index
    %c20_90 = arith.constant 20 : index
    %83 = vector.load %arg26[%c0_89, %c20_90] : memref<4x362xf32, #tpu.memory_space<vmem>>, vector<4x324xf32>
    %c0_91 = arith.constant 0 : index
    %c36_92 = arith.constant 36 : index
    %84 = vector.load %arg26[%c0_91, %c36_92] : memref<4x362xf32, #tpu.memory_space<vmem>>, vector<4x324xf32>
    %c0_93 = arith.constant 0 : index
    %c37_94 = arith.constant 37 : index
    %85 = vector.load %arg26[%c0_93, %c37_94] : memref<4x362xf32, #tpu.memory_space<vmem>>, vector<4x324xf32>
    %c0_95 = arith.constant 0 : index
    %c38_96 = arith.constant 38 : index
    %86 = vector.load %arg26[%c0_95, %c38_96] : memref<4x362xf32, #tpu.memory_space<vmem>>, vector<4x324xf32>
    %87 = tpu.concatenate %78, %79, %80, %81, %82, %83, %84, %85, %86 in 0 : vector<4x324xf32>, vector<4x324xf32>, vector<4x324xf32>, vector<4x324xf32>, vector<4x324xf32>, vector<4x324xf32>, vector<4x324xf32>, vector<4x324xf32>, vector<4x324xf32> -> vector<36x324xf32>
    %c0_97 = arith.constant 0 : index
    %c0_98 = arith.constant 0 : index
    %88 = vector.load %arg9[%c0_97, %c0_98] : memref<4x36xf32, #tpu.memory_space<vmem>>, vector<4x36xf32>
    %cst_99 = arith.constant dense<0.000000e+00> : vector<4x324xf32>
    %89 = tpu.matmul %88, %87, %cst_99 {dimension_numbers = #tpu.dot_dimension_numbers<[1], [0], [0], [1], [0, 0, 1, 1], [], []>} : vector<4x36xf32>, vector<36x324xf32>, vector<4x324xf32> -> vector<4x324xf32>
    %c0_100 = arith.constant 0 : index
    %c0_101 = arith.constant 0 : index
    %90 = vector.load %arg10[%c0_100, %c0_101] : memref<4x1xf32, #tpu.memory_space<vmem>>, vector<4x1xf32>
    %91 = vector.broadcast %90 : vector<4x1xf32> to vector<4x324xf32>
    %92 = arith.addf %89, %91 : vector<4x324xf32>
    %93 = vector.extract_strided_slice %7 {offsets = [4, 0], sizes = [4, 324], strides = [1, 1]} : vector<16x324xf32> to vector<4x324xf32>
    %94 = arith.addf %93, %92 : vector<4x324xf32>
    %cst_102 = arith.constant 0.000000e+00 : f32
    %95 = vector.broadcast %cst_102 : f32 to vector<4x324xf32>
    %96 = arith.cmpf oge, %94, %95 : vector<4x324xf32>
    %cst_103 = arith.constant 0.00999999977 : f32
    %97 = vector.broadcast %cst_103 : f32 to vector<4x324xf32>
    %98 = arith.mulf %97, %94 : vector<4x324xf32>
    %99 = arith.select %96, %94, %98 : vector<4x324xi1>, vector<4x324xf32>
    %c0_104 = arith.constant 0 : index
    %c4 = arith.constant 4 : index
    %c0_105 = arith.constant 0 : index
    %100 = vector.load %arg25[%c0_104, %c4, %c0_105] : memref<1x16x324xf32, #tpu.memory_space<vmem>>, vector<1x4x324xf32>
    %101 = vector.shape_cast %100 : vector<1x4x324xf32> to vector<4x324xf32>
    %102 = vector.shape_cast %99 : vector<4x324xf32> to vector<1x4x324xf32>
    tpu.vector_store %arg25[%c0_104, %c4, %c0_105], %102 {strides = array<i32>} : memref<1x16x324xf32, #tpu.memory_space<vmem>>, vector<1x4x324xf32>,
    %c0_106 = arith.constant 0 : index
    %c0_107 = arith.constant 0 : index
    %c0_108 = arith.constant 0 : index
    %103 = vector.load %arg1[%c0_106, %c0_107, %c0_108] : memref<1x4x362xf32, #tpu.memory_space<vmem>>, vector<1x4x324xf32>
    %104 = vector.shape_cast %103 : vector<1x4x324xf32> to vector<4x324xf32>
    %c0_109 = arith.constant 0 : index
    %c0_110 = arith.constant 0 : index
    %c1_111 = arith.constant 1 : index
    %105 = vector.load %arg1[%c0_109, %c0_110, %c1_111] : memref<1x4x362xf32, #tpu.memory_space<vmem>>, vector<1x4x324xf32>
    %106 = vector.shape_cast %105 : vector<1x4x324xf32> to vector<4x324xf32>
    %c0_112 = arith.constant 0 : index
    %c0_113 = arith.constant 0 : index
    %c2_114 = arith.constant 2 : index
    %107 = vector.load %arg1[%c0_112, %c0_113, %c2_114] : memref<1x4x362xf32, #tpu.memory_space<vmem>>, vector<1x4x324xf32>
    %108 = vector.shape_cast %107 : vector<1x4x324xf32> to vector<4x324xf32>
    %c0_115 = arith.constant 0 : index
    %c0_116 = arith.constant 0 : index
    %c18_117 = arith.constant 18 : index
    %109 = vector.load %arg1[%c0_115, %c0_116, %c18_117] : memref<1x4x362xf32, #tpu.memory_space<vmem>>, vector<1x4x324xf32>
    %110 = vector.shape_cast %109 : vector<1x4x324xf32> to vector<4x324xf32>
    %c0_118 = arith.constant 0 : index
    %c0_119 = arith.constant 0 : index
    %c19_120 = arith.constant 19 : index
    %111 = vector.load %arg1[%c0_118, %c0_119, %c19_120] : memref<1x4x362xf32, #tpu.memory_space<vmem>>, vector<1x4x324xf32>
    %112 = vector.shape_cast %111 : vector<1x4x324xf32> to vector<4x324xf32>
    %c0_121 = arith.constant 0 : index
    %c0_122 = arith.constant 0 : index
    %c20_123 = arith.constant 20 : index
    %113 = vector.load %arg1[%c0_121, %c0_122, %c20_123] : memref<1x4x362xf32, #tpu.memory_space<vmem>>, vector<1x4x324xf32>
    %114 = vector.shape_cast %113 : vector<1x4x324xf32> to vector<4x324xf32>
    %c0_124 = arith.constant 0 : index
    %c0_125 = arith.constant 0 : index
    %c36_126 = arith.constant 36 : index
    %115 = vector.load %arg1[%c0_124, %c0_125, %c36_126] : memref<1x4x362xf32, #tpu.memory_space<vmem>>, vector<1x4x324xf32>
    %116 = vector.shape_cast %115 : vector<1x4x324xf32> to vector<4x324xf32>
    %c0_127 = arith.constant 0 : index
    %c0_128 = arith.constant 0 : index
    %c37_129 = arith.constant 37 : index
    %117 = vector.load %arg1[%c0_127, %c0_128, %c37_129] : memref<1x4x362xf32, #tpu.memory_space<vmem>>, vector<1x4x324xf32>
    %118 = vector.shape_cast %117 : vector<1x4x324xf32> to vector<4x324xf32>
    %c0_130 = arith.constant 0 : index
    %c0_131 = arith.constant 0 : index
    %c38_132 = arith.constant 38 : index
    %119 = vector.load %arg1[%c0_130, %c0_131, %c38_132] : memref<1x4x362xf32, #tpu.memory_space<vmem>>, vector<1x4x324xf32>
    %120 = vector.shape_cast %119 : vector<1x4x324xf32> to vector<4x324xf32>
    %121 = tpu.concatenate %104, %106, %108, %110, %112, %114, %116, %118, %120 in 0 : vector<4x324xf32>, vector<4x324xf32>, vector<4x324xf32>, vector<4x324xf32>, vector<4x324xf32>, vector<4x324xf32>, vector<4x324xf32>, vector<4x324xf32>, vector<4x324xf32> -> vector<36x324xf32>
    %c0_133 = arith.constant 0 : index
    %c0_134 = arith.constant 0 : index
    %122 = vector.load %arg11[%c0_133, %c0_134] : memref<4x36xf32, #tpu.memory_space<vmem>>, vector<4x36xf32>
    %cst_135 = arith.constant dense<0.000000e+00> : vector<4x324xf32>
    %123 = tpu.matmul %122, %121, %cst_135 {dimension_numbers = #tpu.dot_dimension_numbers<[1], [0], [0], [1], [0, 0, 1, 1], [], []>} : vector<4x36xf32>, vector<36x324xf32>, vector<4x324xf32> -> vector<4x324xf32>
    %c0_136 = arith.constant 0 : index
    %c0_137 = arith.constant 0 : index
    %124 = vector.load %arg12[%c0_136, %c0_137] : memref<4x1xf32, #tpu.memory_space<vmem>>, vector<4x1xf32>
    %125 = vector.broadcast %124 : vector<4x1xf32> to vector<4x324xf32>
    %126 = arith.addf %123, %125 : vector<4x324xf32>
    %cst_138 = arith.constant 0.000000e+00 : f32
    %127 = vector.broadcast %cst_138 : f32 to vector<4x324xf32>
    %128 = arith.cmpf oge, %126, %127 : vector<4x324xf32>
    %cst_139 = arith.constant 0.00999999977 : f32
    %129 = vector.broadcast %cst_139 : f32 to vector<4x324xf32>
    %130 = arith.mulf %129, %126 : vector<4x324xf32>
    %131 = arith.select %128, %126, %130 : vector<4x324xi1>, vector<4x324xf32>
    %132 = vector.broadcast %0 : vector<1x324xf32> to vector<4x324xf32>
    %133 = arith.mulf %131, %132 : vector<4x324xf32>
    %c0_140 = arith.constant 0 : index
    %c19_141 = arith.constant 19 : index
    %134 = vector.load %arg26[%c0_140, %c19_141] : memref<4x362xf32, #tpu.memory_space<vmem>>, vector<4x324xf32>
    tpu.vector_store %arg26[%c0_140, %c19_141], %133 {strides = array<i32>} : memref<4x362xf32, #tpu.memory_space<vmem>>, vector<4x324xf32>,
    %c0_142 = arith.constant 0 : index
    %c0_143 = arith.constant 0 : index
    %135 = vector.load %arg26[%c0_142, %c0_143] : memref<4x362xf32, #tpu.memory_space<vmem>>, vector<4x324xf32>
    %c0_144 = arith.constant 0 : index
    %c1_145 = arith.constant 1 : index
    %136 = vector.load %arg26[%c0_144, %c1_145] : memref<4x362xf32, #tpu.memory_space<vmem>>, vector<4x324xf32>
    %c0_146 = arith.constant 0 : index
    %c2_147 = arith.constant 2 : index
    %137 = vector.load %arg26[%c0_146, %c2_147] : memref<4x362xf32, #tpu.memory_space<vmem>>, vector<4x324xf32>
    %c0_148 = arith.constant 0 : index
    %c18_149 = arith.constant 18 : index
    %138 = vector.load %arg26[%c0_148, %c18_149] : memref<4x362xf32, #tpu.memory_space<vmem>>, vector<4x324xf32>
    %c0_150 = arith.constant 0 : index
    %c19_151 = arith.constant 19 : index
    %139 = vector.load %arg26[%c0_150, %c19_151] : memref<4x362xf32, #tpu.memory_space<vmem>>, vector<4x324xf32>
    %c0_152 = arith.constant 0 : index
    %c20_153 = arith.constant 20 : index
    %140 = vector.load %arg26[%c0_152, %c20_153] : memref<4x362xf32, #tpu.memory_space<vmem>>, vector<4x324xf32>
    %c0_154 = arith.constant 0 : index
    %c36_155 = arith.constant 36 : index
    %141 = vector.load %arg26[%c0_154, %c36_155] : memref<4x362xf32, #tpu.memory_space<vmem>>, vector<4x324xf32>
    %c0_156 = arith.constant 0 : index
    %c37_157 = arith.constant 37 : index
    %142 = vector.load %arg26[%c0_156, %c37_157] : memref<4x362xf32, #tpu.memory_space<vmem>>, vector<4x324xf32>
    %c0_158 = arith.constant 0 : index
    %c38_159 = arith.constant 38 : index
    %143 = vector.load %arg26[%c0_158, %c38_159] : memref<4x362xf32, #tpu.memory_space<vmem>>, vector<4x324xf32>
    %144 = tpu.concatenate %135, %136, %137, %138, %139, %140, %141, %142, %143 in 0 : vector<4x324xf32>, vector<4x324xf32>, vector<4x324xf32>, vector<4x324xf32>, vector<4x324xf32>, vector<4x324xf32>, vector<4x324xf32>, vector<4x324xf32>, vector<4x324xf32> -> vector<36x324xf32>
    %c0_160 = arith.constant 0 : index
    %c0_161 = arith.constant 0 : index
    %145 = vector.load %arg13[%c0_160, %c0_161] : memref<4x36xf32, #tpu.memory_space<vmem>>, vector<4x36xf32>
    %cst_162 = arith.constant dense<0.000000e+00> : vector<4x324xf32>
    %146 = tpu.matmul %145, %144, %cst_162 {dimension_numbers = #tpu.dot_dimension_numbers<[1], [0], [0], [1], [0, 0, 1, 1], [], []>} : vector<4x36xf32>, vector<36x324xf32>, vector<4x324xf32> -> vector<4x324xf32>
    %c0_163 = arith.constant 0 : index
    %c0_164 = arith.constant 0 : index
    %147 = vector.load %arg14[%c0_163, %c0_164] : memref<4x1xf32, #tpu.memory_space<vmem>>, vector<4x1xf32>
    %148 = vector.broadcast %147 : vector<4x1xf32> to vector<4x324xf32>
    %149 = arith.addf %146, %148 : vector<4x324xf32>
    %cst_165 = arith.constant 0.000000e+00 : f32
    %150 = vector.broadcast %cst_165 : f32 to vector<4x324xf32>
    %151 = arith.cmpf oge, %149, %150 : vector<4x324xf32>
    %cst_166 = arith.constant 0.00999999977 : f32
    %152 = vector.broadcast %cst_166 : f32 to vector<4x324xf32>
    %153 = arith.mulf %152, %149 : vector<4x324xf32>
    %154 = arith.select %151, %149, %153 : vector<4x324xi1>, vector<4x324xf32>
    %155 = vector.broadcast %0 : vector<1x324xf32> to vector<4x324xf32>
    %156 = arith.mulf %154, %155 : vector<4x324xf32>
    %c0_167 = arith.constant 0 : index
    %c19_168 = arith.constant 19 : index
    %157 = vector.load %arg27[%c0_167, %c19_168] : memref<4x362xf32, #tpu.memory_space<vmem>>, vector<4x324xf32>
    tpu.vector_store %arg27[%c0_167, %c19_168], %156 {strides = array<i32>} : memref<4x362xf32, #tpu.memory_space<vmem>>, vector<4x324xf32>,
    %c0_169 = arith.constant 0 : index
    %c0_170 = arith.constant 0 : index
    %158 = vector.load %arg27[%c0_169, %c0_170] : memref<4x362xf32, #tpu.memory_space<vmem>>, vector<4x324xf32>
    %c0_171 = arith.constant 0 : index
    %c1_172 = arith.constant 1 : index
    %159 = vector.load %arg27[%c0_171, %c1_172] : memref<4x362xf32, #tpu.memory_space<vmem>>, vector<4x324xf32>
    %c0_173 = arith.constant 0 : index
    %c2_174 = arith.constant 2 : index
    %160 = vector.load %arg27[%c0_173, %c2_174] : memref<4x362xf32, #tpu.memory_space<vmem>>, vector<4x324xf32>
    %c0_175 = arith.constant 0 : index
    %c18_176 = arith.constant 18 : index
    %161 = vector.load %arg27[%c0_175, %c18_176] : memref<4x362xf32, #tpu.memory_space<vmem>>, vector<4x324xf32>
    %c0_177 = arith.constant 0 : index
    %c19_178 = arith.constant 19 : index
    %162 = vector.load %arg27[%c0_177, %c19_178] : memref<4x362xf32, #tpu.memory_space<vmem>>, vector<4x324xf32>
    %c0_179 = arith.constant 0 : index
    %c20_180 = arith.constant 20 : index
    %163 = vector.load %arg27[%c0_179, %c20_180] : memref<4x362xf32, #tpu.memory_space<vmem>>, vector<4x324xf32>
    %c0_181 = arith.constant 0 : index
    %c36_182 = arith.constant 36 : index
    %164 = vector.load %arg27[%c0_181, %c36_182] : memref<4x362xf32, #tpu.memory_space<vmem>>, vector<4x324xf32>
    %c0_183 = arith.constant 0 : index
    %c37_184 = arith.constant 37 : index
    %165 = vector.load %arg27[%c0_183, %c37_184] : memref<4x362xf32, #tpu.memory_space<vmem>>, vector<4x324xf32>
    %c0_185 = arith.constant 0 : index
    %c38_186 = arith.constant 38 : index
    %166 = vector.load %arg27[%c0_185, %c38_186] : memref<4x362xf32, #tpu.memory_space<vmem>>, vector<4x324xf32>
    %167 = tpu.concatenate %158, %159, %160, %161, %162, %163, %164, %165, %166 in 0 : vector<4x324xf32>, vector<4x324xf32>, vector<4x324xf32>, vector<4x324xf32>, vector<4x324xf32>, vector<4x324xf32>, vector<4x324xf32>, vector<4x324xf32>, vector<4x324xf32> -> vector<36x324xf32>
    %c0_187 = arith.constant 0 : index
    %c0_188 = arith.constant 0 : index
    %168 = vector.load %arg15[%c0_187, %c0_188] : memref<4x36xf32, #tpu.memory_space<vmem>>, vector<4x36xf32>
    %cst_189 = arith.constant dense<0.000000e+00> : vector<4x324xf32>
    %169 = tpu.matmul %168, %167, %cst_189 {dimension_numbers = #tpu.dot_dimension_numbers<[1], [0], [0], [1], [0, 0, 1, 1], [], []>} : vector<4x36xf32>, vector<36x324xf32>, vector<4x324xf32> -> vector<4x324xf32>
    %c0_190 = arith.constant 0 : index
    %c0_191 = arith.constant 0 : index
    %170 = vector.load %arg16[%c0_190, %c0_191] : memref<4x1xf32, #tpu.memory_space<vmem>>, vector<4x1xf32>
    %171 = vector.broadcast %170 : vector<4x1xf32> to vector<4x324xf32>
    %172 = arith.addf %169, %171 : vector<4x324xf32>
    %173 = vector.extract_strided_slice %7 {offsets = [8, 0], sizes = [4, 324], strides = [1, 1]} : vector<16x324xf32> to vector<4x324xf32>
    %174 = arith.addf %173, %172 : vector<4x324xf32>
    %cst_192 = arith.constant 0.000000e+00 : f32
    %175 = vector.broadcast %cst_192 : f32 to vector<4x324xf32>
    %176 = arith.cmpf oge, %174, %175 : vector<4x324xf32>
    %cst_193 = arith.constant 0.00999999977 : f32
    %177 = vector.broadcast %cst_193 : f32 to vector<4x324xf32>
    %178 = arith.mulf %177, %174 : vector<4x324xf32>
    %179 = arith.select %176, %174, %178 : vector<4x324xi1>, vector<4x324xf32>
    %c0_194 = arith.constant 0 : index
    %c8 = arith.constant 8 : index
    %c0_195 = arith.constant 0 : index
    %180 = vector.load %arg25[%c0_194, %c8, %c0_195] : memref<1x16x324xf32, #tpu.memory_space<vmem>>, vector<1x4x324xf32>
    %181 = vector.shape_cast %180 : vector<1x4x324xf32> to vector<4x324xf32>
    %182 = vector.shape_cast %179 : vector<4x324xf32> to vector<1x4x324xf32>
    tpu.vector_store %arg25[%c0_194, %c8, %c0_195], %182 {strides = array<i32>} : memref<1x16x324xf32, #tpu.memory_space<vmem>>, vector<1x4x324xf32>,
    %c0_196 = arith.constant 0 : index
    %c0_197 = arith.constant 0 : index
    %c0_198 = arith.constant 0 : index
    %183 = vector.load %arg1[%c0_196, %c0_197, %c0_198] : memref<1x4x362xf32, #tpu.memory_space<vmem>>, vector<1x4x324xf32>
    %184 = vector.shape_cast %183 : vector<1x4x324xf32> to vector<4x324xf32>
    %c0_199 = arith.constant 0 : index
    %c0_200 = arith.constant 0 : index
    %c1_201 = arith.constant 1 : index
    %185 = vector.load %arg1[%c0_199, %c0_200, %c1_201] : memref<1x4x362xf32, #tpu.memory_space<vmem>>, vector<1x4x324xf32>
    %186 = vector.shape_cast %185 : vector<1x4x324xf32> to vector<4x324xf32>
    %c0_202 = arith.constant 0 : index
    %c0_203 = arith.constant 0 : index
    %c2_204 = arith.constant 2 : index
    %187 = vector.load %arg1[%c0_202, %c0_203, %c2_204] : memref<1x4x362xf32, #tpu.memory_space<vmem>>, vector<1x4x324xf32>
    %188 = vector.shape_cast %187 : vector<1x4x324xf32> to vector<4x324xf32>
    %c0_205 = arith.constant 0 : index
    %c0_206 = arith.constant 0 : index
    %c18_207 = arith.constant 18 : index
    %189 = vector.load %arg1[%c0_205, %c0_206, %c18_207] : memref<1x4x362xf32, #tpu.memory_space<vmem>>, vector<1x4x324xf32>
    %190 = vector.shape_cast %189 : vector<1x4x324xf32> to vector<4x324xf32>
    %c0_208 = arith.constant 0 : index
    %c0_209 = arith.constant 0 : index
    %c19_210 = arith.constant 19 : index
    %191 = vector.load %arg1[%c0_208, %c0_209, %c19_210] : memref<1x4x362xf32, #tpu.memory_space<vmem>>, vector<1x4x324xf32>
    %192 = vector.shape_cast %191 : vector<1x4x324xf32> to vector<4x324xf32>
    %c0_211 = arith.constant 0 : index
    %c0_212 = arith.constant 0 : index
    %c20_213 = arith.constant 20 : index
    %193 = vector.load %arg1[%c0_211, %c0_212, %c20_213] : memref<1x4x362xf32, #tpu.memory_space<vmem>>, vector<1x4x324xf32>
    %194 = vector.shape_cast %193 : vector<1x4x324xf32> to vector<4x324xf32>
    %c0_214 = arith.constant 0 : index
    %c0_215 = arith.constant 0 : index
    %c36_216 = arith.constant 36 : index
    %195 = vector.load %arg1[%c0_214, %c0_215, %c36_216] : memref<1x4x362xf32, #tpu.memory_space<vmem>>, vector<1x4x324xf32>
    %196 = vector.shape_cast %195 : vector<1x4x324xf32> to vector<4x324xf32>
    %c0_217 = arith.constant 0 : index
    %c0_218 = arith.constant 0 : index
    %c37_219 = arith.constant 37 : index
    %197 = vector.load %arg1[%c0_217, %c0_218, %c37_219] : memref<1x4x362xf32, #tpu.memory_space<vmem>>, vector<1x4x324xf32>
    %198 = vector.shape_cast %197 : vector<1x4x324xf32> to vector<4x324xf32>
    %c0_220 = arith.constant 0 : index
    %c0_221 = arith.constant 0 : index
    %c38_222 = arith.constant 38 : index
    %199 = vector.load %arg1[%c0_220, %c0_221, %c38_222] : memref<1x4x362xf32, #tpu.memory_space<vmem>>, vector<1x4x324xf32>
    %200 = vector.shape_cast %199 : vector<1x4x324xf32> to vector<4x324xf32>
    %201 = tpu.concatenate %184, %186, %188, %190, %192, %194, %196, %198, %200 in 0 : vector<4x324xf32>, vector<4x324xf32>, vector<4x324xf32>, vector<4x324xf32>, vector<4x324xf32>, vector<4x324xf32>, vector<4x324xf32>, vector<4x324xf32>, vector<4x324xf32> -> vector<36x324xf32>
    %c0_223 = arith.constant 0 : index
    %c0_224 = arith.constant 0 : index
    %202 = vector.load %arg17[%c0_223, %c0_224] : memref<4x36xf32, #tpu.memory_space<vmem>>, vector<4x36xf32>
    %cst_225 = arith.constant dense<0.000000e+00> : vector<4x324xf32>
    %203 = tpu.matmul %202, %201, %cst_225 {dimension_numbers = #tpu.dot_dimension_numbers<[1], [0], [0], [1], [0, 0, 1, 1], [], []>} : vector<4x36xf32>, vector<36x324xf32>, vector<4x324xf32> -> vector<4x324xf32>
    %c0_226 = arith.constant 0 : index
    %c0_227 = arith.constant 0 : index
    %204 = vector.load %arg18[%c0_226, %c0_227] : memref<4x1xf32, #tpu.memory_space<vmem>>, vector<4x1xf32>
    %205 = vector.broadcast %204 : vector<4x1xf32> to vector<4x324xf32>
    %206 = arith.addf %203, %205 : vector<4x324xf32>
    %cst_228 = arith.constant 0.000000e+00 : f32
    %207 = vector.broadcast %cst_228 : f32 to vector<4x324xf32>
    %208 = arith.cmpf oge, %206, %207 : vector<4x324xf32>
    %cst_229 = arith.constant 0.00999999977 : f32
    %209 = vector.broadcast %cst_229 : f32 to vector<4x324xf32>
    %210 = arith.mulf %209, %206 : vector<4x324xf32>
    %211 = arith.select %208, %206, %210 : vector<4x324xi1>, vector<4x324xf32>
    %212 = vector.broadcast %0 : vector<1x324xf32> to vector<4x324xf32>
    %213 = arith.mulf %211, %212 : vector<4x324xf32>
    %c0_230 = arith.constant 0 : index
    %c19_231 = arith.constant 19 : index
    %214 = vector.load %arg26[%c0_230, %c19_231] : memref<4x362xf32, #tpu.memory_space<vmem>>, vector<4x324xf32>
    tpu.vector_store %arg26[%c0_230, %c19_231], %213 {strides = array<i32>} : memref<4x362xf32, #tpu.memory_space<vmem>>, vector<4x324xf32>,
    %c0_232 = arith.constant 0 : index
    %c0_233 = arith.constant 0 : index
    %215 = vector.load %arg26[%c0_232, %c0_233] : memref<4x362xf32, #tpu.memory_space<vmem>>, vector<4x324xf32>
    %c0_234 = arith.constant 0 : index
    %c1_235 = arith.constant 1 : index
    %216 = vector.load %arg26[%c0_234, %c1_235] : memref<4x362xf32, #tpu.memory_space<vmem>>, vector<4x324xf32>
    %c0_236 = arith.constant 0 : index
    %c2_237 = arith.constant 2 : index
    %217 = vector.load %arg26[%c0_236, %c2_237] : memref<4x362xf32, #tpu.memory_space<vmem>>, vector<4x324xf32>
    %c0_238 = arith.constant 0 : index
    %c18_239 = arith.constant 18 : index
    %218 = vector.load %arg26[%c0_238, %c18_239] : memref<4x362xf32, #tpu.memory_space<vmem>>, vector<4x324xf32>
    %c0_240 = arith.constant 0 : index
    %c19_241 = arith.constant 19 : index
    %219 = vector.load %arg26[%c0_240, %c19_241] : memref<4x362xf32, #tpu.memory_space<vmem>>, vector<4x324xf32>
    %c0_242 = arith.constant 0 : index
    %c20_243 = arith.constant 20 : index
    %220 = vector.load %arg26[%c0_242, %c20_243] : memref<4x362xf32, #tpu.memory_space<vmem>>, vector<4x324xf32>
    %c0_244 = arith.constant 0 : index
    %c36_245 = arith.constant 36 : index
    %221 = vector.load %arg26[%c0_244, %c36_245] : memref<4x362xf32, #tpu.memory_space<vmem>>, vector<4x324xf32>
    %c0_246 = arith.constant 0 : index
    %c37_247 = arith.constant 37 : index
    %222 = vector.load %arg26[%c0_246, %c37_247] : memref<4x362xf32, #tpu.memory_space<vmem>>, vector<4x324xf32>
    %c0_248 = arith.constant 0 : index
    %c38_249 = arith.constant 38 : index
    %223 = vector.load %arg26[%c0_248, %c38_249] : memref<4x362xf32, #tpu.memory_space<vmem>>, vector<4x324xf32>
    %224 = tpu.concatenate %215, %216, %217, %218, %219, %220, %221, %222, %223 in 0 : vector<4x324xf32>, vector<4x324xf32>, vector<4x324xf32>, vector<4x324xf32>, vector<4x324xf32>, vector<4x324xf32>, vector<4x324xf32>, vector<4x324xf32>, vector<4x324xf32> -> vector<36x324xf32>
    %c0_250 = arith.constant 0 : index
    %c0_251 = arith.constant 0 : index
    %225 = vector.load %arg19[%c0_250, %c0_251] : memref<4x36xf32, #tpu.memory_space<vmem>>, vector<4x36xf32>
    %cst_252 = arith.constant dense<0.000000e+00> : vector<4x324xf32>
    %226 = tpu.matmul %225, %224, %cst_252 {dimension_numbers = #tpu.dot_dimension_numbers<[1], [0], [0], [1], [0, 0, 1, 1], [], []>} : vector<4x36xf32>, vector<36x324xf32>, vector<4x324xf32> -> vector<4x324xf32>
    %c0_253 = arith.constant 0 : index
    %c0_254 = arith.constant 0 : index
    %227 = vector.load %arg20[%c0_253, %c0_254] : memref<4x1xf32, #tpu.memory_space<vmem>>, vector<4x1xf32>
    %228 = vector.broadcast %227 : vector<4x1xf32> to vector<4x324xf32>
    %229 = arith.addf %226, %228 : vector<4x324xf32>
    %cst_255 = arith.constant 0.000000e+00 : f32
    %230 = vector.broadcast %cst_255 : f32 to vector<4x324xf32>
    %231 = arith.cmpf oge, %229, %230 : vector<4x324xf32>
    %cst_256 = arith.constant 0.00999999977 : f32
    %232 = vector.broadcast %cst_256 : f32 to vector<4x324xf32>
    %233 = arith.mulf %232, %229 : vector<4x324xf32>
    %234 = arith.select %231, %229, %233 : vector<4x324xi1>, vector<4x324xf32>
    %235 = vector.broadcast %0 : vector<1x324xf32> to vector<4x324xf32>
    %236 = arith.mulf %234, %235 : vector<4x324xf32>
    %c0_257 = arith.constant 0 : index
    %c19_258 = arith.constant 19 : index
    %237 = vector.load %arg27[%c0_257, %c19_258] : memref<4x362xf32, #tpu.memory_space<vmem>>, vector<4x324xf32>
    tpu.vector_store %arg27[%c0_257, %c19_258], %236 {strides = array<i32>} : memref<4x362xf32, #tpu.memory_space<vmem>>, vector<4x324xf32>,
    %c0_259 = arith.constant 0 : index
    %c0_260 = arith.constant 0 : index
    %238 = vector.load %arg27[%c0_259, %c0_260] : memref<4x362xf32, #tpu.memory_space<vmem>>, vector<4x324xf32>
    %c0_261 = arith.constant 0 : index
    %c1_262 = arith.constant 1 : index
    %239 = vector.load %arg27[%c0_261, %c1_262] : memref<4x362xf32, #tpu.memory_space<vmem>>, vector<4x324xf32>
    %c0_263 = arith.constant 0 : index
    %c2_264 = arith.constant 2 : index
    %240 = vector.load %arg27[%c0_263, %c2_264] : memref<4x362xf32, #tpu.memory_space<vmem>>, vector<4x324xf32>
    %c0_265 = arith.constant 0 : index
    %c18_266 = arith.constant 18 : index
    %241 = vector.load %arg27[%c0_265, %c18_266] : memref<4x362xf32, #tpu.memory_space<vmem>>, vector<4x324xf32>
    %c0_267 = arith.constant 0 : index
    %c19_268 = arith.constant 19 : index
    %242 = vector.load %arg27[%c0_267, %c19_268] : memref<4x362xf32, #tpu.memory_space<vmem>>, vector<4x324xf32>
    %c0_269 = arith.constant 0 : index
    %c20_270 = arith.constant 20 : index
    %243 = vector.load %arg27[%c0_269, %c20_270] : memref<4x362xf32, #tpu.memory_space<vmem>>, vector<4x324xf32>
    %c0_271 = arith.constant 0 : index
    %c36_272 = arith.constant 36 : index
    %244 = vector.load %arg27[%c0_271, %c36_272] : memref<4x362xf32, #tpu.memory_space<vmem>>, vector<4x324xf32>
    %c0_273 = arith.constant 0 : index
    %c37_274 = arith.constant 37 : index
    %245 = vector.load %arg27[%c0_273, %c37_274] : memref<4x362xf32, #tpu.memory_space<vmem>>, vector<4x324xf32>
    %c0_275 = arith.constant 0 : index
    %c38_276 = arith.constant 38 : index
    %246 = vector.load %arg27[%c0_275, %c38_276] : memref<4x362xf32, #tpu.memory_space<vmem>>, vector<4x324xf32>
    %247 = tpu.concatenate %238, %239, %240, %241, %242, %243, %244, %245, %246 in 0 : vector<4x324xf32>, vector<4x324xf32>, vector<4x324xf32>, vector<4x324xf32>, vector<4x324xf32>, vector<4x324xf32>, vector<4x324xf32>, vector<4x324xf32>, vector<4x324xf32> -> vector<36x324xf32>
    %c0_277 = arith.constant 0 : index
    %c0_278 = arith.constant 0 : index
    %248 = vector.load %arg21[%c0_277, %c0_278] : memref<4x36xf32, #tpu.memory_space<vmem>>, vector<4x36xf32>
    %cst_279 = arith.constant dense<0.000000e+00> : vector<4x324xf32>
    %249 = tpu.matmul %248, %247, %cst_279 {dimension_numbers = #tpu.dot_dimension_numbers<[1], [0], [0], [1], [0, 0, 1, 1], [], []>} : vector<4x36xf32>, vector<36x324xf32>, vector<4x324xf32> -> vector<4x324xf32>
    %c0_280 = arith.constant 0 : index
    %c0_281 = arith.constant 0 : index
    %250 = vector.load %arg22[%c0_280, %c0_281] : memref<4x1xf32, #tpu.memory_space<vmem>>, vector<4x1xf32>
    %251 = vector.broadcast %250 : vector<4x1xf32> to vector<4x324xf32>
    %252 = arith.addf %249, %251 : vector<4x324xf32>
    %cst_282 = arith.constant 0.000000e+00 : f32
    %253 = vector.broadcast %cst_282 : f32 to vector<4x324xf32>
    %254 = arith.cmpf oge, %252, %253 : vector<4x324xf32>
    %cst_283 = arith.constant 0.00999999977 : f32
    %255 = vector.broadcast %cst_283 : f32 to vector<4x324xf32>
    %256 = arith.mulf %255, %252 : vector<4x324xf32>
    %257 = arith.select %254, %252, %256 : vector<4x324xi1>, vector<4x324xf32>
    %258 = vector.broadcast %0 : vector<1x324xf32> to vector<4x324xf32>
    %259 = arith.mulf %257, %258 : vector<4x324xf32>
    %c0_284 = arith.constant 0 : index
    %c19_285 = arith.constant 19 : index
    %260 = vector.load %arg26[%c0_284, %c19_285] : memref<4x362xf32, #tpu.memory_space<vmem>>, vector<4x324xf32>
    tpu.vector_store %arg26[%c0_284, %c19_285], %259 {strides = array<i32>} : memref<4x362xf32, #tpu.memory_space<vmem>>, vector<4x324xf32>,
    %c0_286 = arith.constant 0 : index
    %c0_287 = arith.constant 0 : index
    %261 = vector.load %arg26[%c0_286, %c0_287] : memref<4x362xf32, #tpu.memory_space<vmem>>, vector<4x324xf32>
    %c0_288 = arith.constant 0 : index
    %c1_289 = arith.constant 1 : index
    %262 = vector.load %arg26[%c0_288, %c1_289] : memref<4x362xf32, #tpu.memory_space<vmem>>, vector<4x324xf32>
    %c0_290 = arith.constant 0 : index
    %c2_291 = arith.constant 2 : index
    %263 = vector.load %arg26[%c0_290, %c2_291] : memref<4x362xf32, #tpu.memory_space<vmem>>, vector<4x324xf32>
    %c0_292 = arith.constant 0 : index
    %c18_293 = arith.constant 18 : index
    %264 = vector.load %arg26[%c0_292, %c18_293] : memref<4x362xf32, #tpu.memory_space<vmem>>, vector<4x324xf32>
    %c0_294 = arith.constant 0 : index
    %c19_295 = arith.constant 19 : index
    %265 = vector.load %arg26[%c0_294, %c19_295] : memref<4x362xf32, #tpu.memory_space<vmem>>, vector<4x324xf32>
    %c0_296 = arith.constant 0 : index
    %c20_297 = arith.constant 20 : index
    %266 = vector.load %arg26[%c0_296, %c20_297] : memref<4x362xf32, #tpu.memory_space<vmem>>, vector<4x324xf32>
    %c0_298 = arith.constant 0 : index
    %c36_299 = arith.constant 36 : index
    %267 = vector.load %arg26[%c0_298, %c36_299] : memref<4x362xf32, #tpu.memory_space<vmem>>, vector<4x324xf32>
    %c0_300 = arith.constant 0 : index
    %c37_301 = arith.constant 37 : index
    %268 = vector.load %arg26[%c0_300, %c37_301] : memref<4x362xf32, #tpu.memory_space<vmem>>, vector<4x324xf32>
    %c0_302 = arith.constant 0 : index
    %c38_303 = arith.constant 38 : index
    %269 = vector.load %arg26[%c0_302, %c38_303] : memref<4x362xf32, #tpu.memory_space<vmem>>, vector<4x324xf32>
    %270 = tpu.concatenate %261, %262, %263, %264, %265, %266, %267, %268, %269 in 0 : vector<4x324xf32>, vector<4x324xf32>, vector<4x324xf32>, vector<4x324xf32>, vector<4x324xf32>, vector<4x324xf32>, vector<4x324xf32>, vector<4x324xf32>, vector<4x324xf32> -> vector<36x324xf32>
    %c0_304 = arith.constant 0 : index
    %c0_305 = arith.constant 0 : index
    %271 = vector.load %arg23[%c0_304, %c0_305] : memref<4x36xf32, #tpu.memory_space<vmem>>, vector<4x36xf32>
    %cst_306 = arith.constant dense<0.000000e+00> : vector<4x324xf32>
    %272 = tpu.matmul %271, %270, %cst_306 {dimension_numbers = #tpu.dot_dimension_numbers<[1], [0], [0], [1], [0, 0, 1, 1], [], []>} : vector<4x36xf32>, vector<36x324xf32>, vector<4x324xf32> -> vector<4x324xf32>
    %c0_307 = arith.constant 0 : index
    %c0_308 = arith.constant 0 : index
    %273 = vector.load %arg24[%c0_307, %c0_308] : memref<4x1xf32, #tpu.memory_space<vmem>>, vector<4x1xf32>
    %274 = vector.broadcast %273 : vector<4x1xf32> to vector<4x324xf32>
    %275 = arith.addf %272, %274 : vector<4x324xf32>
    %276 = vector.extract_strided_slice %7 {offsets = [12, 0], sizes = [4, 324], strides = [1, 1]} : vector<16x324xf32> to vector<4x324xf32>
    %277 = arith.addf %276, %275 : vector<4x324xf32>
    %cst_309 = arith.constant 0.000000e+00 : f32
    %278 = vector.broadcast %cst_309 : f32 to vector<4x324xf32>
    %279 = arith.cmpf oge, %277, %278 : vector<4x324xf32>
    %cst_310 = arith.constant 0.00999999977 : f32
    %280 = vector.broadcast %cst_310 : f32 to vector<4x324xf32>
    %281 = arith.mulf %280, %277 : vector<4x324xf32>
    %282 = arith.select %279, %277, %281 : vector<4x324xi1>, vector<4x324xf32>
    %c0_311 = arith.constant 0 : index
    %c12 = arith.constant 12 : index
    %c0_312 = arith.constant 0 : index
    %283 = vector.load %arg25[%c0_311, %c12, %c0_312] : memref<1x16x324xf32, #tpu.memory_space<vmem>>, vector<1x4x324xf32>
    %284 = vector.shape_cast %283 : vector<1x4x324xf32> to vector<4x324xf32>
    %285 = vector.shape_cast %282 : vector<4x324xf32> to vector<1x4x324xf32>
    tpu.vector_store %arg25[%c0_311, %c12, %c0_312], %285 {strides = array<i32>} : memref<1x16x324xf32, #tpu.memory_space<vmem>>, vector<1x4x324xf32>,
    return
  }
  func.func @transform_0(%arg0: i32) -> (i32, i32, i32) {
    %c0_i32 = arith.constant 0 : i32
    %c0_i32_0 = arith.constant 0 : i32
    %c0_i32_1 = arith.constant 0 : i32
    return %arg0, %c0_i32, %c0_i32_0 : i32, i32, i32
  }
  func.func @transform_1(%arg0: i32) -> (i32, i32) {
    %c0_i32 = arith.constant 0 : i32
    %c0_i32_0 = arith.constant 0 : i32
    %c0_i32_1 = arith.constant 0 : i32
    return %c0_i32, %c0_i32_0 : i32, i32
  }
  func.func @transform_2(%arg0: i32) -> (i32, i32) {
    %c0_i32 = arith.constant 0 : i32
    %c0_i32_0 = arith.constant 0 : i32
    %c0_i32_1 = arith.constant 0 : i32
    return %c0_i32, %c0_i32_0 : i32, i32
  }
  func.func @transform_3(%arg0: i32) -> (i32, i32) {
    %c0_i32 = arith.constant 0 : i32
    %c0_i32_0 = arith.constant 0 : i32
    %c0_i32_1 = arith.constant 0 : i32
    return %c0_i32, %c0_i32_0 : i32, i32
  }
  func.func @transform_4(%arg0: i32) -> (i32, i32) {
    %c0_i32 = arith.constant 0 : i32
    %c0_i32_0 = arith.constant 0 : i32
    %c0_i32_1 = arith.constant 0 : i32
    return %c0_i32, %c0_i32_0 : i32, i32
  }
  func.func @transform_5(%arg0: i32) -> (i32, i32) {
    %c0_i32 = arith.constant 0 : i32
    %c0_i32_0 = arith.constant 0 : i32
    %c0_i32_1 = arith.constant 0 : i32
    return %c0_i32, %c0_i32_0 : i32, i32
  }
  func.func @transform_6(%arg0: i32) -> (i32, i32) {
    %c0_i32 = arith.constant 0 : i32
    %c0_i32_0 = arith.constant 0 : i32
    %c0_i32_1 = arith.constant 0 : i32
    return %c0_i32, %c0_i32_0 : i32, i32
  }
  func.func @transform_7(%arg0: i32) -> (i32, i32) {
    %c0_i32 = arith.constant 0 : i32
    %c0_i32_0 = arith.constant 0 : i32
    %c0_i32_1 = arith.constant 0 : i32
    return %c0_i32, %c0_i32_0 : i32, i32
  }
  func.func @transform_8(%arg0: i32) -> (i32, i32) {
    %c0_i32 = arith.constant 0 : i32
    %c0_i32_0 = arith.constant 0 : i32
    %c0_i32_1 = arith.constant 0 : i32
    return %c0_i32, %c0_i32_0 : i32, i32
  }
  func.func @transform_9(%arg0: i32) -> (i32, i32) {
    %c0_i32 = arith.constant 0 : i32
    %c0_i32_0 = arith.constant 0 : i32
    %c0_i32_1 = arith.constant 0 : i32
    return %c0_i32, %c0_i32_0 : i32, i32
  }
  func.func @transform_10(%arg0: i32) -> (i32, i32) {
    %c0_i32 = arith.constant 0 : i32
    %c0_i32_0 = arith.constant 0 : i32
    %c0_i32_1 = arith.constant 0 : i32
    return %c0_i32, %c0_i32_0 : i32, i32
  }
  func.func @transform_11(%arg0: i32) -> (i32, i32) {
    %c0_i32 = arith.constant 0 : i32
    %c0_i32_0 = arith.constant 0 : i32
    %c0_i32_1 = arith.constant 0 : i32
    return %c0_i32, %c0_i32_0 : i32, i32
  }
  func.func @transform_12(%arg0: i32) -> (i32, i32) {
    %c0_i32 = arith.constant 0 : i32
    %c0_i32_0 = arith.constant 0 : i32
    %c0_i32_1 = arith.constant 0 : i32
    return %c0_i32, %c0_i32_0 : i32, i32
  }
  func.func @transform_13(%arg0: i32) -> (i32, i32) {
    %c0_i32 = arith.constant 0 : i32
    %c0_i32_0 = arith.constant 0 : i32
    %c0_i32_1 = arith.constant 0 : i32
    return %c0_i32, %c0_i32_0 : i32, i32
  }
  func.func @transform_14(%arg0: i32) -> (i32, i32) {
    %c0_i32 = arith.constant 0 : i32
    %c0_i32_0 = arith.constant 0 : i32
    %c0_i32_1 = arith.constant 0 : i32
    return %c0_i32, %c0_i32_0 : i32, i32
  }
  func.func @transform_15(%arg0: i32) -> (i32, i32) {
    %c0_i32 = arith.constant 0 : i32
    %c0_i32_0 = arith.constant 0 : i32
    %c0_i32_1 = arith.constant 0 : i32
    return %c0_i32, %c0_i32_0 : i32, i32
  }
  func.func @transform_16(%arg0: i32) -> (i32, i32) {
    %c0_i32 = arith.constant 0 : i32
    %c0_i32_0 = arith.constant 0 : i32
    %c0_i32_1 = arith.constant 0 : i32
    return %c0_i32, %c0_i32_0 : i32, i32
  }
  func.func @transform_17(%arg0: i32) -> (i32, i32) {
    %c0_i32 = arith.constant 0 : i32
    %c0_i32_0 = arith.constant 0 : i32
    %c0_i32_1 = arith.constant 0 : i32
    return %c0_i32, %c0_i32_0 : i32, i32
  }
  func.func @transform_18(%arg0: i32) -> (i32, i32) {
    %c0_i32 = arith.constant 0 : i32
    %c0_i32_0 = arith.constant 0 : i32
    %c0_i32_1 = arith.constant 0 : i32
    return %c0_i32, %c0_i32_0 : i32, i32
  }
  func.func @transform_19(%arg0: i32) -> (i32, i32) {
    %c0_i32 = arith.constant 0 : i32
    %c0_i32_0 = arith.constant 0 : i32
    %c0_i32_1 = arith.constant 0 : i32
    return %c0_i32, %c0_i32_0 : i32, i32
  }
  func.func @transform_20(%arg0: i32) -> (i32, i32) {
    %c0_i32 = arith.constant 0 : i32
    %c0_i32_0 = arith.constant 0 : i32
    %c0_i32_1 = arith.constant 0 : i32
    return %c0_i32, %c0_i32_0 : i32, i32
  }
  func.func @transform_21(%arg0: i32) -> (i32, i32) {
    %c0_i32 = arith.constant 0 : i32
    %c0_i32_0 = arith.constant 0 : i32
    %c0_i32_1 = arith.constant 0 : i32
    return %c0_i32, %c0_i32_0 : i32, i32
  }
  func.func @transform_22(%arg0: i32) -> (i32, i32) {
    %c0_i32 = arith.constant 0 : i32
    %c0_i32_0 = arith.constant 0 : i32
    %c0_i32_1 = arith.constant 0 : i32
    return %c0_i32, %c0_i32_0 : i32, i32
  }
  func.func @transform_23(%arg0: i32) -> (i32, i32) {
    %c0_i32 = arith.constant 0 : i32
    %c0_i32_0 = arith.constant 0 : i32
    %c0_i32_1 = arith.constant 0 : i32
    return %c0_i32, %c0_i32_0 : i32, i32
  }
  func.func @transform_24(%arg0: i32) -> (i32, i32, i32) {
    %c0_i32 = arith.constant 0 : i32
    %c0_i32_0 = arith.constant 0 : i32
    %c0_i32_1 = arith.constant 0 : i32
    return %arg0, %c0_i32, %c0_i32_0 : i32, i32, i32
  }
}

</mosaic_0001>

<bundles_post_ra>
// kernel: resb_forward.1
= control target key start
LH: loop header
LB: loop body
LE: loop exit
PB: predicated region body
PF: predicated region fallthrough
CT: control target
= control target key end

     0   :  { %s5727_s0 = inlined_call_operand.vmem [shape: f32[2,4,362], index: 0, kind: input, shape index: {}]   ;;  %s5728_s1 = inlined_call_operand.vmem [shape: f32[1,324], index: 1, kind: input, shape index: {}]   ;;  %s5729_s2 = inlined_call_operand.vmem [shape: f32[16,4], index: 2, kind: input, shape index: {}]   ;;  %s5730_s3 = inlined_call_operand.vmem [shape: f32[16,1], index: 3, kind: input, shape index: {}]   ;;  %s5731_s4 = inlined_call_operand.vmem [shape: f32[4,36], index: 4, kind: input, shape index: {}]   ;;  %s5732_s5 = inlined_call_operand.vmem [shape: f32[4,1], index: 5, kind: input, shape index: {}]   ;;  %s5733_s6 = inlined_call_operand.vmem [shape: f32[4,36], index: 6, kind: input, shape index: {}]   ;;  %s5734_s7 = inlined_call_operand.vmem [shape: f32[4,1], index: 7, kind: input, shape index: {}]   ;;  %s5735_s8 = inlined_call_operand.vmem [shape: f32[4,36], index: 8, kind: input, shape index: {}]   ;;  %s5736_s9 = inlined_call_operand.vmem [shape: f32[4,1], index: 9, kind: input, shape index: {}]   ;;  %s5737_s10 = inlined_call_operand.vmem [shape: f32[4,36], index: 10, kind: input, shape index: {}]   ;;  %s5738_s11 = inlined_call_operand.vmem [shape: f32[4,1], index: 11, kind: input, shape index: {}]   ;;  %s5739_s12 = inlined_call_operand.vmem [shape: f32[4,36], index: 12, kind: input, shape index: {}]   ;;  %s5740_s13 = inlined_call_operand.vmem [shape: f32[4,1], index: 13, kind: input, shape index: {}]   ;;  %s5741_s14 = inlined_call_operand.vmem [shape: f32[4,36], index: 14, kind: input, shape index: {}]   ;;  %s5742_s15 = inlined_call_operand.vmem [shape: f32[4,1], index: 15, kind: input, shape index: {}]   ;;  %s5743_s16 = inlined_call_operand.vmem [shape: f32[4,36], index: 16, kind: input, shape index: {}]   ;;  %s5744_s17 = inlined_call_operand.vmem [shape: f32[4,1], index: 17, kind: input, shape index: {}]   ;;  %s5745_s18 = inlined_call_operand.vmem [shape: f32[4,36], index: 18, kind: input, shape index: {}]   ;;  %s5746_s19 = inlined_call_operand.vmem [shape: f32[4,1], index: 19, kind: input, shape index: {}]   ;;  %s5747_s20 = inlined_call_operand.vmem [shape: f32[4,36], index: 20, kind: input, shape index: {}]   ;;  %s5748_s21 = inlined_call_operand.vmem [shape: f32[4,1], index: 21, kind: input, shape index: {}]   ;;  %s5749_s22 = inlined_call_operand.vmem [shape: f32[4,36], index: 22, kind: input, shape index: {}]   ;;  %s5750_s23 = inlined_call_operand.vmem [shape: f32[4,1], index: 23, kind: input, shape index: {}]   ;;  %s5751_s24 = inlined_call_operand.vmem [shape: f32[2,16,324], index: 24, kind: output, shape index: {}]  }
   0x1   :  { %5763 = sst [smem:[#allocation5_spill]] %s5727_s0 }
   0x2   :  { %5764 = sst [smem:[#allocation6_spill]] %s5728_s1 }
   0x3   :  { %5765 = sst [smem:[#allocation7_spill]] %s5729_s2 }
   0x4   :  { %5766 = sst [smem:[#allocation8_spill]] %s5730_s3 }
   0x5   :  { %5767 = sst [smem:[#allocation9_spill]] %s5731_s4 }
   0x6   :  { %5768 = sst [smem:[#allocation10_spill]] %s5732_s5  ;;  %s4345_s5 = smov 0  }
   0x7   :  { %5769 = sst [smem:[#allocation11_spill]] %s5733_s6 }
   0x8   :  { %5770 = sst [smem:[#allocation12_spill]] %s5734_s7 }
   0x9   :  { %5771 = sst [smem:[#allocation13_spill]] %s5735_s8 }
   0xa LB: > { %s3884_s26 = sadd.s32 4294967295, %s4206_s5   ;;  %p3888_p0 = scmp.ge.s32.totalorder %s4206_s5, 1  ;;  %s4206_s5 = sphi %s4345_s5, %s34_s5  }
   0xb   : > { %p662_p1 = scmp.lt.s32.totalorder %s4206_s5, 3 }
   0xd   : > { %p663_p2 = pnand %p3888_p0, %p662_p1 }
   0xf   : > { %666 = sbr.rel (%p663_p2) target bundleno = 3435 (0xd6b), region = 116 }
  0x14   : > { %p728_p3 = scmp.lt.s32.totalorder %s3884_s26, 1  ;;  %s5772_s6 = sld [smem:[#allocation7_spill]]  ;;  %vm767_vm0 = vcmask 31744   ;;  %v4208_v1 = vmov 0.0   ;;  %v4217_v10 = vmov 0   ;;  %vm774_vm1 = vcmask 1043456  }
  0x15   : > { %933 = vst [vmem:[#allocation2] sm:$0xff] %v4208_v1  ;;  %936 = vst [vmem:[#allocation3] sm:$0xff] %v4208_v1  ;;  %845 = vmatprep.mubr.f32.mxu0 %v4208_v1  ;;  %s5773_s7 = sld [smem:[#allocation5_spill]]  ;;  %s4209_s3 = smov 109   ;;  %4170 = vset.pattern.permute.xlu1 %v4217_v10  ;;  %vm5760_vm2 = vmmov 0   ;;  %vm764_vm3 = vcmask 891904  }
  0x16   : > { %s5800_s26 = smov (!%p728_p3, %s3884_s26), 1  ;;  %s4210_s25 = smov 90   ;;  %4171 = vset.pattern.permute.xlu0 %v4217_v10  ;;  %vm1035_vm4 = vcmask 736256   ;;  %vm1011_vm5 = vcmask 752640   ;;  %vm1023_vm6 = vcmask 744448   ;;  %vm999_vm7 = vcmask 883712  }
  0x17   : > { %s4148_s2 = smul.u32 12, %s5800_s26  ;;  %s4211_s8 = smov 92   ;;  %vm964_vm8 = vcmask 1031168   ;;  %vm976_vm9 = vcmask 900096   ;;  %vm952_vm10 = vcmask 1039360   ;;  %vm5762_vm11 = vcmask 293888  }
  0x18   : > { %s4212_s4 = smov 91   ;;  %s4213_s1 = smov 108   ;;  %vm934_vm13 = vcmask 863232  }
  0x19   : > { %s5756_s27 = smov 126   ;;  %s5754_s28 = smov 110   ;;  %935 = vst.msk [vmem:[#allocation2 + $0x8] sm:$0xf] %vm934_vm13, %v4208_v1  ;;  %937 = vst.msk [vmem:[#allocation3 + $0x8] sm:$0xf] %vm934_vm13, %v4208_v1 }
  0x1a   : > { %v4356_v0 = vld [vmem:[%s5772_s6] sm:$0xff]  ;;  %v742_v14 = vld [vmem:[%s5772_s6 + $0x8] sm:$0xff]  ;;  %s5775_s29 = sld [smem:[#allocation9_spill]]  ;;  %vm1523_vm13 = vcmask 154624  }
  0x1b   : > { %4015 = vmatprep.mubr.msk.f32.mxu1 %vm767_vm0, %v4356_v0  ;;  %s4369_s30 = scalar_lea.vmem %s5773_s7, %s4148_s2  ;;  %s5758_s2 = smov 127  }
  0x1c   : > { %v740_v2 = vld [vmem:[%s4369_s30 + $0x8] sm:$0xf]  ;;  %v4373_v3 = vld [vmem:[%s4369_s30] sm:$0xff]  ;;  %s5774_s7 = sld [smem:[#allocation12_spill]] }
  0x1d   : > { %762 = vrot.lane.b32.xlu0 %v740_v2, %s4209_s3  ;;  %758 = vrot.lane.b32.xlu1 %v4373_v3, %s4209_s3  ;;  %v4380_v4 = vcombine.high %v4373_v3, %v4373_v3  ;;  %v4383_v5 = vld [vmem:[%s4369_s30 + $0x8] sm:$0xf]  ;;  %v4404_v7 = vcombine.low %v4373_v3, %v4373_v3  ;;  %s5778_s0 = sld [smem:[#allocation6_spill]] }
  0x1e   : > { %v945_v6 = vcombine.low %v4383_v5, %v4383_v5  ;;  %v4440_v8 = vld [vmem:[%s4369_s30 + $0x8] sm:$0xf] }
  0x1f   : > { %v1231_v9 = vcombine.low %v4440_v8, %v4440_v8 }
  0x21   : > { %1033 = vrot.lane.b32.xlu0 %v4383_v5, %s4210_s25  ;;  %1031 = vrot.lane.b32.xlu1 %v4380_v4, %s4210_s25 }
  0x22   : > { %v1330_v11 = vld [vmem:[%s5774_s7] sm:$0xf]  ;;  %s4219_s7 = smov 19  }
  0x25   : > { %1007 = vrot.lane.b32.xlu1 %v4380_v4, %s4211_s8  ;;  %760 = vrot.lane.b32.xlu0 %v4380_v4, %s4209_s3 }
  0x29   : > { %1019 = vrot.lane.b32.xlu1 %v4373_v3, %s4212_s4  ;;  %1009 = vrot.lane.b32.xlu0 %v4383_v5, %s4211_s8 }
  0x2d   : > { %1029 = vrot.lane.b32.xlu1 %v4373_v3, %s4210_s25  ;;  %1021 = vrot.lane.b32.xlu0 %v945_v6, %s4212_s4 }
  0x31   : > { %1017 = vrot.lane.b32.xlu1 %v4404_v7, %s4212_s4  ;;  %1005 = vrot.lane.b32.xlu0 %v4373_v3, %s4211_s8 }
  0x35   : > { %986 = vrot.lane.b32.xlu1 %v4383_v5, %s4209_s3  ;;  %984 = vrot.lane.b32.xlu0 %v4380_v4, %s4209_s3 }
  0x39   : > { %997 = vrot.lane.b32.xlu1 %v945_v6, %s4213_s1  ;;  %995 = vrot.lane.b32.xlu0 %v4373_v3, %s4213_s1 }
  0x3d   : > { %993 = vrot.lane.b32.xlu1 %v4404_v7, %s4213_s1  ;;  %982 = vrot.lane.b32.xlu0 %v4373_v3, %s4209_s3 }
  0x41   : > { %962 = vrot.lane.b32.xlu1 %v4383_v5, %s5756_s27  ;;  %960 = vrot.lane.b32.xlu0 %v4380_v4, %s5756_s27 }
  0x45   : > { %974 = vrot.lane.b32.xlu1 %v945_v6, %s5754_s28  ;;  %972 = vrot.lane.b32.xlu0 %v4373_v3, %s5754_s28 }
  0x49   : > { %970 = vrot.lane.b32.xlu1 %v4404_v7, %s5754_s28  ;;  %958 = vrot.lane.b32.xlu0 %v4373_v3, %s5756_s27 }
  0x4d   : > { %950 = vrot.lane.b32.xlu1 %v945_v6, %s5758_s2  ;;  %948 = vrot.lane.b32.xlu0 %v4373_v3, %s5758_s2  ;;  %v1050_v6 = vld [vmem:[%s5775_s29] sm:$0xf]  ;;  %s5794_s29 = sld [smem:[#allocation8_spill]] }
  0x51   : > { %1311 = vrot.lane.b32.xlu1 %v4380_v4, %s4210_s25  ;;  %946 = vrot.lane.b32.xlu0 %v4404_v7, %s5758_s2 }
  0x55   : > { %1289 = vrot.lane.b32.xlu1 %v4380_v4, %s4211_s8  ;;  %1313 = vrot.lane.b32.xlu0 %v4440_v8, %s4210_s25 }
  0x59   : > { %1300 = vrot.lane.b32.xlu1 %v4373_v3, %s4212_s4  ;;  %1291 = vrot.lane.b32.xlu0 %v4440_v8, %s4211_s8 }
  0x5d   : > { %1309 = vrot.lane.b32.xlu1 %v4373_v3, %s4210_s25  ;;  %1302 = vrot.lane.b32.xlu0 %v1231_v9, %s4212_s4 }
  0x61   : > { %1298 = vrot.lane.b32.xlu1 %v4404_v7, %s4212_s4  ;;  %1287 = vrot.lane.b32.xlu0 %v4373_v3, %s4211_s8 }
  0x65   : > { %1269 = vrot.lane.b32.xlu1 %v4440_v8, %s4209_s3  ;;  %1267 = vrot.lane.b32.xlu0 %v4380_v4, %s4209_s3 }
  0x69   : > { %1280 = vrot.lane.b32.xlu1 %v1231_v9, %s4213_s1  ;;  %1278 = vrot.lane.b32.xlu0 %v4373_v3, %s4213_s1 }
  0x6d   : > { %1276 = vrot.lane.b32.xlu1 %v4404_v7, %s4213_s1  ;;  %1265 = vrot.lane.b32.xlu0 %v4373_v3, %s4209_s3 }
  0x71   : > { %1247 = vrot.lane.b32.xlu1 %v4440_v8, %s5756_s27  ;;  %1245 = vrot.lane.b32.xlu0 %v4380_v4, %s5756_s27 }
  0x75   : > { %1258 = vrot.lane.b32.xlu1 %v1231_v9, %s5754_s28  ;;  %1256 = vrot.lane.b32.xlu0 %v4373_v3, %s5754_s28 }
  0x79   : > { %1254 = vrot.lane.b32.xlu1 %v4404_v7, %s5754_s28  ;;  %1243 = vrot.lane.b32.xlu0 %v4373_v3, %s5756_s27  ;;  %s5776_s27 = sld [smem:[#allocation11_spill]]  ;;  %s5780_s28 = smov 110  }
  0x7d   : > { %1236 = vrot.lane.b32.xlu1 %v1231_v9, %s5758_s2  ;;  %1234 = vrot.lane.b32.xlu0 %v4373_v3, %s5758_s2 }
  0x81   : > { %1232 = vrot.lane.b32.xlu0 %v4404_v7, %s5758_s2  ;;  %1333 = vperm.xlu1 %4170, %v1330_v11  }
  0x85   : > { %1908 = vrot.lane.b32.xlu0 %v4380_v4, %s4210_s25 }
  0x89   : > { %1886 = vrot.lane.b32.xlu0 %v4380_v4, %s4211_s8 }
  0x8f   : > { %v763_v12 = vpop.permute.xlu0 %762  ;;  %v759_v13 = vpop.permute.xlu1 %758 }
  0x90   : > { %4013 = vmatprep.subr.msk.mxu1 %vm774_vm1, %v763_v12 }
  0x91   : > { %4014 = vmatpush3.msk.msra.mxu1 %vm774_vm1, %v763_v12 }
  0x92   : > { %4018 = vmatprep.subr.mxu1 %v4208_v1  ;;  %4016 = vmatmul.mubr.msk.f32.vlgmr.msra.gmra.mxu1 %vm767_vm0, %v742_v14 }
  0x93   : > { %v1034_v15 = vpop.permute.xlu0 %1033  ;;  %v1032_v16 = vpop.permute.xlu1 %1031  ;;  %4028 = vmatprep.mubr.msk.f32.mxu1 %vm5760_vm2, %v4208_v1 }
  0x94   : > { %4019 = vmatpush3.msk.msra.mxu1 %vm774_vm1, %v1034_v15  ;;  %v1037_v21 = vsel %vm1035_vm4, %v1032_v16, %v1034_v15 }
  0x95   : > { %4020 = vmatprep.subr.mxu1 %v4208_v1 }
  0x97   : > { %v1008_v17 = vpop.permute.xlu1 %1007  ;;  %v761_v18 = vpop.permute.xlu0 %760 }
  0x98   : > { %v766_v19 = vsel %vm764_vm3, %v761_v18, %v763_v12  ;;  %v765_v20 = vsel %vm764_vm3, %v759_v13, %v761_v18 }
  0x99   : > { %3891 = vmatprep.subr.msk.mxu0 %vm774_vm1, %v766_v19 }
  0x9a   : > { %3892 = vmatpush1.msk.msra.mxu0 %vm774_vm1, %v765_v20 }
  0x9b   : > { %v1020_v22 = vpop.permute.xlu1 %1019  ;;  %3898 = vmatprep.subr.msk.mxu0 %vm774_vm1, %v1037_v21  ;;  %v1010_v23 = vpop.permute.xlu0 %1009  ;;  %3893 = vmatmul.mubr.msk.f32.vlgmr.msra.gmra.mxu0 %vm767_vm0, %v4356_v0 }
  0x9c   : > { %851 = vmatprep.mubr.f32.mxu0 %v4208_v1  ;;  %v1013_v26 = vsel %vm1011_vm5, %v1008_v17, %v1010_v23 }
  0x9f   : > { %v1030_v24 = vpop.permute.xlu1 %1029  ;;  %v1022_v25 = vpop.permute.xlu0 %1021  ;;  %3894 = vmatmul.mubr.msk.f32.gmra.mxu0 %vm767_vm0, %v742_v14  ;;  %vm1528_vm0 = vcmask 1043608  }
  0xa0   : > { %v1036_v27 = vsel %vm1035_vm4, %v1030_v24, %v1032_v16  ;;  %v1025_v28 = vsel %vm1023_vm6, %v1020_v22, %v1022_v25  ;;  %v1049_v29 = vsel %vm774_vm1, %v1010_v23, %v1022_v25  ;;  %1131 = vmatprep.mubr.f32.mxu0 %v4208_v1 }
  0xa1   : > { %3899 = vmatpush1.msk.msra.mxu0 %vm774_vm1, %v1036_v27  ;;  %4021 = vmatpush3.msra.mxu1 %v1049_v29  ;;  %v1048_v30 = vsel %vm774_vm1, %v1013_v26, %v1025_v28 }
  0xa2   : > { %1091 = vmatprep.subr.mxu0 %v1048_v30  ;;  %4022 = vmatprep.subr.mxu1 %v4208_v1 }
  0xa3   : > { %v1018_v31 = vpop.permute.xlu1 %1017  ;;  %v1006_v32 = vpop.permute.xlu0 %1005 }
  0xa4   : > { %v1024_v33 = vsel %vm1023_vm6, %v1018_v31, %v1020_v22  ;;  %v1012_v34 = vsel %vm1011_vm5, %v1006_v32, %v1008_v17 }
  0xa5   : > { %v1047_v35 = vsel %vm774_vm1, %v1012_v34, %v1024_v33 }
  0xa6   : > { %1092 = vmatpush1.msra.mxu0 %v1047_v35 }
  0xa7   : > { %v987_v36 = vpop.permute.xlu1 %986  ;;  %v985_v37 = vpop.permute.xlu0 %984 }
  0xa8   : > { %v989_v40 = vsel %vm764_vm3, %v985_v37, %v987_v36 }
  0xab   : > { %v998_v38 = vpop.permute.xlu1 %997  ;;  %v996_v39 = vpop.permute.xlu0 %995 }
  0xac   : > { %v1001_v41 = vsel %vm999_vm7, %v996_v39, %v998_v38  ;;  %v1046_v42 = vsel %vm774_vm1, %v987_v36, %v998_v38 }
  0xad   : > { %4023 = vmatpush3.msra.mxu1 %v1046_v42  ;;  %v1045_v43 = vsel %vm774_vm1, %v989_v40, %v1001_v41 }
  0xae   : > { %1093 = vmatprep.subr.mxu0 %v1045_v43  ;;  %4024 = vmatprep.subr.mxu1 %v4208_v1 }
  0xaf   : > { %v994_v44 = vpop.permute.xlu1 %993  ;;  %v983_v45 = vpop.permute.xlu0 %982 }
  0xb0   : > { %v1000_v46 = vsel %vm999_vm7, %v994_v44, %v996_v39  ;;  %v988_v47 = vsel %vm764_vm3, %v983_v45, %v985_v37 }
  0xb1   : > { %v1044_v48 = vsel %vm774_vm1, %v988_v47, %v1000_v46 }
  0xb2   : > { %1094 = vmatpush1.msra.mxu0 %v1044_v48 }
  0xb3   : > { %v963_v49 = vpop.permute.xlu1 %962  ;;  %v961_v50 = vpop.permute.xlu0 %960 }
  0xb4   : > { %v966_v53 = vsel %vm964_vm8, %v961_v50, %v963_v49 }
  0xb7   : > { %v975_v51 = vpop.permute.xlu1 %974  ;;  %v973_v52 = vpop.permute.xlu0 %972 }
  0xb8   : > { %v978_v54 = vsel %vm976_vm9, %v973_v52, %v975_v51  ;;  %v1043_v55 = vsel %vm774_vm1, %v963_v49, %v975_v51 }
  0xb9   : > { %4025 = vmatpush3.msra.mxu1 %v1043_v55  ;;  %v1042_v56 = vsel %vm774_vm1, %v966_v53, %v978_v54 }
  0xba   : > { %1095 = vmatprep.subr.mxu0 %v1042_v56  ;;  %4026 = vmatprep.subr.mxu1 %v4208_v1 }
  0xbb   : > { %v971_v57 = vpop.permute.xlu1 %970  ;;  %v959_v58 = vpop.permute.xlu0 %958 }
  0xbc   : > { %v977_v59 = vsel %vm976_vm9, %v971_v57, %v973_v52  ;;  %v965_v60 = vsel %vm964_vm8, %v959_v58, %v961_v50  ;;  %v1329_v58 = vld [vmem:[%s5776_s27] sm:$0xf]  ;;  %s5779_s27 = smov 126  }
  0xbd   : > { %v1041_v61 = vsel %vm774_vm1, %v965_v60, %v977_v59 }
  0xbe   : > { %1096 = vmatpush1.msra.mxu0 %v1041_v61 }
  0xbf   : > { %v951_v62 = vpop.permute.xlu1 %950  ;;  %v949_v63 = vpop.permute.xlu0 %948 }
  0xc0   : > { %v954_v0 = vsel %vm952_vm10, %v949_v63, %v951_v62  ;;  %v1040_v2 = vsel %vm774_vm1, %v4383_v5, %v951_v62 }
  0xc1   : > { %v1039_v9 = vsel %vm774_vm1, %v4380_v4, %v954_v0  ;;  %4027 = vmatpush3.msra.mxu1 %v1040_v2 }
  0xc2   : > { %1097 = vmatprep.subr.mxu0 %v1039_v9  ;;  %4031 = vmatprep.subr.mxu1 %v4208_v1 }
  0xc3   : > { %v1312_v10 = vpop.permute.xlu1 %1311  ;;  %v947_v11 = vpop.permute.xlu0 %946  ;;  %4029 = vmatmul.mubr.msk.f32.vlgmr.msra.gmra.mxu1 %vm5762_vm11, %v1050_v6 }
  0xc4   : > { %v953_v12 = vsel %vm952_vm10, %v947_v11, %v949_v63  ;;  %4041 = vmatprep.mubr.msk.f32.mxu1 %vm5760_vm2, %v4208_v1 }
  0xc5   : > { %v1038_v5 = vsel %vm774_vm1, %v4373_v3, %v953_v12 }
  0xc6   : > { %1098 = vmatpush1.msra.mxu0 %v1038_v5  ;;  %v1496_v5 = vlaneseq }
  0xc7   : > { %v1290_v13 = vpop.permute.xlu1 %1289  ;;  %v1314_v14 = vpop.permute.xlu0 %1313  ;;  %3900 = vmatmul.mubr.msk.f32.vlgmr.msra.gmra.mxu0 %vm5762_vm11, %v1050_v6 }
  0xc8   : > { %4032 = vmatpush3.msk.msra.mxu1 %vm774_vm1, %v1314_v14  ;;  %v1316_v15 = vsel %vm1035_vm4, %v1312_v10, %v1314_v14  ;;  %1409 = vmatprep.mubr.f32.mxu0 %v4208_v1  ;;  %v1497_v14 = vshrl.u32 %v1496_v5, 7 }
  0xc9   : > { %3903 = vmatprep.subr.msk.mxu0 %vm774_vm1, %v1316_v15  ;;  %4033 = vmatprep.subr.mxu1 %v4208_v1 }
  0xcb   : > { %v1301_v16 = vpop.permute.xlu1 %1300  ;;  %v1292_v17 = vpop.permute.xlu0 %1291 }
  0xcc   : > { %v1294_v20 = vsel %vm1011_vm5, %v1290_v13, %v1292_v17 }
  0xcf   : > { %v1310_v18 = vpop.permute.xlu1 %1309  ;;  %v1303_v19 = vpop.permute.xlu0 %1302 }
  0xd0   : > { %v1315_v21 = vsel %vm1035_vm4, %v1310_v18, %v1312_v10  ;;  %v1305_v22 = vsel %vm1023_vm6, %v1301_v16, %v1303_v19  ;;  %v1328_v23 = vsel %vm774_vm1, %v1292_v17, %v1303_v19  ;;  %v1506_v17 = vsub.s32 2, %v1497_v14  ;;  %v738_v19 = vld [vmem:[%s5778_s0] sm:$0x7]  ;;  %s5784_s0 = smov 127  }
  0xd1   : > { %3904 = vmatpush1.msk.msra.mxu0 %vm774_vm1, %v1315_v21  ;;  %4034 = vmatpush3.msra.mxu1 %v1328_v23  ;;  %v1327_v24 = vsel %vm774_vm1, %v1294_v20, %v1305_v22 }
  0xd2   : > { %1369 = vmatprep.subr.mxu0 %v1327_v24  ;;  %4035 = vmatprep.subr.mxu1 %v4208_v1  ;;  %v4631_v22 = vrot.slane %v738_v19, %v1506_v17 }
  0xd3   : > { %v1299_v25 = vpop.permute.xlu1 %1298  ;;  %v1288_v26 = vpop.permute.xlu0 %1287 }
  0xd4   : > { %v1304_v27 = vsel %vm1023_vm6, %v1299_v25, %v1301_v16  ;;  %v1293_v28 = vsel %vm1011_vm5, %v1288_v26, %v1290_v13 }
  0xd5   : > { %v1326_v29 = vsel %vm774_vm1, %v1293_v28, %v1304_v27  ;;  %v1498_v28 = vsub.s32 0, %v1497_v14 }
  0xd6   : > { %1370 = vmatpush1.msra.mxu0 %v1326_v29  ;;  %v1502_v29 = vsub.s32 1, %v1497_v14 }
  0xd7   : > { %v1270_v30 = vpop.permute.xlu1 %1269  ;;  %v1268_v31 = vpop.permute.xlu0 %1267 }
  0xd8   : > { %v1272_v34 = vsel %vm764_vm3, %v1268_v31, %v1270_v30 }
  0xdb   : > { %v1281_v32 = vpop.permute.xlu1 %1280  ;;  %v1279_v33 = vpop.permute.xlu0 %1278 }
  0xdc   : > { %v1283_v35 = vsel %vm999_vm7, %v1279_v33, %v1281_v32  ;;  %v1325_v36 = vsel %vm774_vm1, %v1270_v30, %v1281_v32 }
  0xdd   : > { %4036 = vmatpush3.msra.mxu1 %v1325_v36  ;;  %v1324_v37 = vsel %vm774_vm1, %v1272_v34, %v1283_v35  ;;  %v4643_v36 = vrot.slane %v738_v19, %v1498_v28 }
  0xde   : > { %1371 = vmatprep.subr.mxu0 %v1324_v37  ;;  %4037 = vmatprep.subr.mxu1 %v4208_v1  ;;  %v4645_v37 = vrot.slane %v738_v19, %v1502_v29 }
  0xdf   : > { %v1277_v38 = vpop.permute.xlu1 %1276  ;;  %v1266_v39 = vpop.permute.xlu0 %1265 }
  0xe0   : > { %v1282_v40 = vsel %vm999_vm7, %v1277_v38, %v1279_v33  ;;  %v1271_v41 = vsel %vm764_vm3, %v1266_v39, %v1268_v31 }
  0xe1   : > { %v1323_v42 = vsel %vm774_vm1, %v1271_v41, %v1282_v40 }
  0xe2   : > { %1372 = vmatpush1.msra.mxu0 %v1323_v42 }
  0xe3   : > { %v1248_v43 = vpop.permute.xlu1 %1247  ;;  %v1246_v44 = vpop.permute.xlu0 %1245 }
  0xe4   : > { %v1250_v47 = vsel %vm964_vm8, %v1246_v44, %v1248_v43 }
  0xe7   : > { %v1259_v45 = vpop.permute.xlu1 %1258  ;;  %v1257_v46 = vpop.permute.xlu0 %1256 }
  0xe8   : > { %v1261_v48 = vsel %vm976_vm9, %v1257_v46, %v1259_v45  ;;  %v1322_v49 = vsel %vm774_vm1, %v1248_v43, %v1259_v45 }
  0xe9   : > { %4038 = vmatpush3.msra.mxu1 %v1322_v49  ;;  %v1321_v50 = vsel %vm774_vm1, %v1250_v47, %v1261_v48 }
  0xea   : > { %1373 = vmatprep.subr.mxu0 %v1321_v50  ;;  %4039 = vmatprep.subr.mxu1 %v4208_v1 }
  0xeb   : > { %v1255_v51 = vpop.permute.xlu1 %1254  ;;  %v1244_v52 = vpop.permute.xlu0 %1243 }
  0xec   : > { %v1260_v53 = vsel %vm976_vm9, %v1255_v51, %v1257_v46  ;;  %v1249_v54 = vsel %vm964_vm8, %v1244_v52, %v1246_v44 }
  0xed   : > { %v1320_v55 = vsel %vm774_vm1, %v1249_v54, %v1260_v53 }
  0xee   : > { %1374 = vmatpush1.msra.mxu0 %v1320_v55 }
  0xef   : > { %v1237_v56 = vpop.permute.xlu1 %1236  ;;  %v1235_v57 = vpop.permute.xlu0 %1234 }
  0xf0   : > { %v1239_v59 = vsel %vm952_vm10, %v1235_v57, %v1237_v56  ;;  %v1319_v60 = vsel %vm774_vm1, %v4440_v8, %v1237_v56  ;;  %v4606_v8 = vld [vmem:[%s4369_s30 + $0x8] sm:$0xf] }
  0xf1   : > { %4040 = vmatpush3.msra.mxu1 %v1319_v60  ;;  %v1318_v61 = vsel %vm774_vm1, %v4380_v4, %v1239_v59  ;;  %1910 = vrot.lane.b32.xlu1 %v4606_v8, %s4210_s25  ;;  %v4641_v35 = vcombine.low %v4606_v8, %v4606_v8  ;;  %v1927_v59 = vld [vmem:[%s5738_s11] sm:$0xf] }
  0xf2   : > { %1375 = vmatprep.subr.mxu0 %v1318_v61  ;;  %4042 = vmatmul.mubr.msk.f32.vlgmr.msra.gmra.mxu1 %vm5762_vm11, %v1329_v58 }
  0xf3   : > { %v1233_v62 = vpop.permute.xlu0 %1232  ;;  %4044 = vmatprep.subr.mxu1 %v4208_v1  ;;  %4054 = vmatprep.mubr.msk.f32.mxu1 %vm5760_vm2, %v4208_v1 }
  0xf4   : > { %v1238_v63 = vsel %vm952_vm10, %v1233_v62, %v1235_v57 }
  0xf5   : > { %v1317_v0 = vsel %vm774_vm1, %v4373_v3, %v1238_v63  ;;  %1888 = vrot.lane.b32.xlu1 %v4606_v8, %s4211_s8 }
  0xf6   : > { %1376 = vmatpush1.msra.mxu0 %v1317_v0 }
  0xf7   : > { %3905 = vmatmul.mubr.msk.f32.vlgmr.msra.gmra.mxu0 %vm5762_vm11, %v1329_v58  ;;  %v4678_v44 = vpop.permute.xlu0 %1908 }
  0xf8   : > { %1719 = vmatprep.mubr.f32.mxu0 %v4208_v1 }
  0xfb   : > { %v4682_v46 = vpop.permute.xlu0 %1886 }
  0xfc   : > { %v1334_v16 = vpop.permute.xlu1 %1333 }
 0x152   : > { %v4612_v2 = vpop.f32.mrf.mxu1 }
 0x154   : > { %v4614_v6 = vpop.f32.mrf.mxu1 }
 0x15b   : > { %v4618_v11 = vpop.f32.mrf.mxu0 }
 0x15d   : > { %v4620_v12 = vpop.f32.mrf.mxu0 }
 0x15f   : > { %v4622_v13 = vpop.f32.mrf.mxu0 }
 0x161   : > { %v4624_v15 = vpop.f32.mrf.mxu0 }
 0x163   : > { %v4680_v45 = vpop.permute.xlu1 %1910 }
 0x167   : > { %v4684_v47 = vpop.permute.xlu1 %1888 }
 0x183   : > { %v4616_v9 = vpop.f32.mrf.mxu1 }
 0x184   : > { %5777 = vst [vmem:[#allocation4_spill] sm:$0xff] %v4616_v9 }
 0x185   : > { %v4030_v10 = vpop.f32.mrf.mxu1 }
 0x187   : > { %v4626_v18 = vpop.f32.mrf.mxu0 }
 0x189   : > { %v4633_v24 = vpop.f32.mrf.mxu0 }
 0x1b2   : > { %v1482_v20 = vpop.f32.mrf.mxu1 }
 0x1b3   : > { %v1483_v21 = vadd.f32 %v1482_v20, %v1334_v16 }
 0x1b4   : > { %v4043_v23 = vpop.f32.mrf.mxu1 }
 0x1b5   : > { %vm1488_vm12 = vcmp.ge.f32.partialorder %v1483_v21, 0.0  ;;  %v1491_v25 = vmul.f32 0.01, %v1483_v21 }
 0x1b7   : > { %v1411_v26 = vpop.f32.mrf.mxu0  ;;  %v1494_v27 = vsel %vm1488_vm12, %v1483_v21, %v1491_v25  ;;  %vm1529_vm12 = vcmask 1047556  }
 0x1b8   : > { %v1412_v30 = vadd.f32 %v1411_v26, %v1334_v16  ;;  %v1513_v31 = vmul.f32 %v4631_v22, %v1494_v27 }
 0x1b9   : > { %v1413_v32 = vpop.f32.mrf.mxu0 }
 0x1ba   : > { %vm1486_vm14 = vcmp.ge.f32.partialorder %v1412_v30, 0.0  ;;  %v1489_v33 = vmul.f32 0.01, %v1412_v30  ;;  %v1414_v34 = vadd.f32 %v1413_v32, %v1334_v16  ;;  %1520 = vrot.lane.b32.xlu1 %v1513_v31, %s4219_s7 }
 0x1bc   : > { %v1492_v38 = vsel %vm1486_vm14, %v1412_v30, %v1489_v33  ;;  %vm1487_vm15 = vcmp.ge.f32.partialorder %v1414_v34, 0.0  ;;  %v1490_v39 = vmul.f32 0.01, %v1414_v34  ;;  %vm4686_vm14 = vmor %vm1529_vm12, %vm1528_vm0 }
 0x1bd   : > { %v1511_v41 = vmul.f32 %v4643_v36, %v1492_v38 }
 0x1be   : > { %v1493_v40 = vsel %vm1487_vm15, %v1414_v34, %v1490_v39  ;;  %1899 = vrot.lane.b32.xlu1 %v4641_v35, %s4212_s4  ;;  %vm1532_vm15 = vcmask 707584  }
 0x1bf   : > { %v1512_v42 = vmul.f32 %v4645_v37, %v1493_v40 }
 0x1c1   : > { %v1517_v43 = vcombine.low %v1511_v41, %v1512_v42 }
 0x1c2   : > { %1884 = vrot.lane.b32.xlu1 %v4373_v3, %s4211_s8 }
 0x1c3   : > { %1518 = vrot.lane.b32.xlu0 %v1517_v43, %s4219_s7 }
 0x1c6   : > { %1864 = vrot.lane.b32.xlu1 %v4380_v4, %s4209_s3 }
 0x1c7   : > { %1897 = vrot.lane.b32.xlu0 %v4373_v3, %s4212_s4 }
 0x1ca   : > { %1875 = vrot.lane.b32.xlu1 %v4373_v3, %s4213_s1 }
 0x1cb   : > { %1906 = vrot.lane.b32.xlu0 %v4373_v3, %s4210_s25 }
 0x1ce   : > { %1862 = vrot.lane.b32.xlu1 %v4373_v3, %s4209_s3 }
 0x1cf   : > { %1895 = vrot.lane.b32.xlu0 %v4404_v7, %s4212_s4 }
 0x1d2   : > { %1842 = vrot.lane.b32.xlu1 %v4380_v4, %s5779_s27 }
 0x1d3   : > { %1866 = vrot.lane.b32.xlu0 %v4606_v8, %s4209_s3 }
 0x1d6   : > { %1853 = vrot.lane.b32.xlu1 %v4373_v3, %s5780_s28 }
 0x1d7   : > { %1877 = vrot.lane.b32.xlu0 %v4641_v35, %s4213_s1 }
 0x1db   : > { %1873 = vrot.lane.b32.xlu0 %v4404_v7, %s4213_s1 }
 0x1df   : > { %1844 = vrot.lane.b32.xlu0 %v4606_v8, %s5779_s27 }
 0x22c   : > { %v1521_v51 = vpop.permute.xlu1 %1520 }
 0x230   : > { %v4762_v60 = vpop.permute.xlu1 %1899 }
 0x234   : > { %v4766_v62 = vpop.permute.xlu1 %1884 }
 0x235   : > { %v1519_v48 = vpop.permute.xlu0 %1518 }
 0x236   : > { %v1522_v50 = vrot.slane %v1519_v48, 4 }
 0x238   : > { %v1524_v52 = vsel %vm1523_vm13, %v1522_v50, %v1519_v48  ;;  %v1525_v53 = vsel %vm1523_vm13, %v1522_v50, %v1521_v51  ;;  %v4770_v63 = vpop.permute.xlu1 %1864 }
 0x239   : > { %1531 = vst.msk [vmem:[#allocation2] sm:$0xff] %vm4686_vm14, %v1524_v52  ;;  %v4764_v61 = vpop.permute.xlu0 %1897 }
 0x23a   : > { %1533 = vst.msk [vmem:[#allocation2 + $0x8] sm:$0xf] %vm1532_vm15, %v1525_v53 }
 0x240   : > { %v4697_v55 = vld [vmem:[#allocation2] sm:$0xff] }
 0x241   : > { %v4695_v54 = vld [vmem:[#allocation2 + $0x8] sm:$0xf]  ;;  %1610 = vrot.lane.b32.xlu0 %v4697_v55, %s4212_s4  ;;  %v4717_v56 = vcombine.high %v4697_v55, %v4697_v55  ;;  %v1540_v57 = vcombine.low %v4697_v55, %v4697_v55 }
 0x242   : > { %1623 = vrot.lane.b32.xlu1 %v4695_v54, %s4210_s25  ;;  %v1541_v58 = vcombine.low %v4695_v54, %v4695_v54 }
 0x245   : > { %1619 = vrot.lane.b32.xlu0 %v4697_v55, %s4210_s25 }
 0x246   : > { %1601 = vrot.lane.b32.xlu1 %v4695_v54, %s4211_s8 }
 0x249   : > { %1579 = vrot.lane.b32.xlu0 %v4695_v54, %s4209_s3 }
 0x24a   : > { %1597 = vrot.lane.b32.xlu1 %v4697_v55, %s4211_s8 }
 0x24d   : > { %1557 = vrot.lane.b32.xlu0 %v4695_v54, %s5779_s27 }
 0x24e   : > { %1588 = vrot.lane.b32.xlu1 %v4697_v55, %s4213_s1 }
 0x251   : > { %1621 = vrot.lane.b32.xlu0 %v4717_v56, %s4210_s25 }
 0x252   : > { %1575 = vrot.lane.b32.xlu1 %v4697_v55, %s4209_s3 }
 0x255   : > { %1599 = vrot.lane.b32.xlu0 %v4717_v56, %s4211_s8 }
 0x256   : > { %1566 = vrot.lane.b32.xlu1 %v4697_v55, %s5780_s28 }
 0x259   : > { %1608 = vrot.lane.b32.xlu0 %v1540_v57, %s4212_s4 }
 0x25a   : > { %1553 = vrot.lane.b32.xlu1 %v4697_v55, %s5779_s27 }
 0x25d   : > { %1590 = vrot.lane.b32.xlu0 %v1541_v58, %s4213_s1 }
 0x25e   : > { %1544 = vrot.lane.b32.xlu1 %v4697_v55, %s5758_s2 }
 0x261   : > { %1586 = vrot.lane.b32.xlu0 %v1540_v57, %s4213_s1 }
 0x262   : > { %1612 = vrot.lane.b32.xlu1 %v1541_v58, %s4212_s4 }
 0x265   : > { %1568 = vrot.lane.b32.xlu0 %v1541_v58, %s5780_s28 }
 0x266   : > { %1577 = vrot.lane.b32.xlu1 %v4717_v56, %s4209_s3 }
 0x269   : > { %1564 = vrot.lane.b32.xlu0 %v1540_v57, %s5780_s28 }
 0x26a   : > { %1555 = vrot.lane.b32.xlu1 %v4717_v56, %s5779_s27 }
 0x26d   : > { %1546 = vrot.lane.b32.xlu0 %v1541_v58, %s5758_s2 }
 0x26e   : > { %1542 = vrot.lane.b32.xlu1 %v1540_v57, %s5758_s2 }
 0x271   : > { %1855 = vrot.lane.b32.xlu0 %v4641_v35, %s5780_s28 }
 0x272   : > { %1840 = vrot.lane.b32.xlu1 %v4373_v3, %s5779_s27 }
 0x275   : > { %1851 = vrot.lane.b32.xlu0 %v4404_v7, %s5780_s28 }
 0x276   : > { %1831 = vrot.lane.b32.xlu1 %v4373_v3, %s5758_s2  ;;  %v4768_v3 = vpop.permute.xlu0 %1906 }
 0x279   : > { %1833 = vrot.lane.b32.xlu0 %v4641_v35, %s5758_s2 }
 0x27a   : > { %1829 = vrot.lane.b32.xlu1 %v4404_v7, %s5758_s2  ;;  %v4772_v0 = vpop.permute.xlu0 %1895  ;;  %v4774_v7 = vpop.permute.xlu1 %1875  ;;  %s5783_s2 = sld [smem:[#allocation13_spill]] }
 0x27d   : > { %1930 = vperm.xlu0 %4171, %v1927_v59  }
 0x27e   : > { %v4776_v10 = vpop.permute.xlu0 %1866  ;;  %v4778_v5 = vpop.permute.xlu1 %1862 }
 0x282   : > { %v4780_v14 = vpop.permute.xlu0 %1877  ;;  %v4782_v16 = vpop.permute.xlu1 %1842 }
 0x286   : > { %v4784_v17 = vpop.permute.xlu0 %1873  ;;  %v4786_v19 = vpop.permute.xlu1 %1853 }
 0x28a   : > { %v4788_v20 = vpop.permute.xlu0 %1844 }
 0x2b3   : > { %v1611_v23 = vpop.permute.xlu0 %1610 }
 0x2b4   : > { %v1624_v21 = vpop.permute.xlu1 %1623 }
 0x2b5   : > { %4045 = vmatpush3.msk.msra.mxu1 %vm774_vm1, %v1624_v21 }
 0x2b6   : > { %4046 = vmatprep.subr.mxu1 %v4208_v1 }
 0x2b7   : > { %v1620_v26 = vpop.permute.xlu0 %1619 }
 0x2b8   : > { %v1602_v25 = vpop.permute.xlu1 %1601 }
 0x2bb   : > { %v1580_v28 = vpop.permute.xlu0 %1579 }
 0x2bc   : > { %v1598_v27 = vpop.permute.xlu1 %1597 }
 0x2bf   : > { %v1558_v30 = vpop.permute.xlu0 %1557 }
 0x2c0   : > { %v1589_v29 = vpop.permute.xlu1 %1588 }
 0x2c3   : > { %v1622_v32 = vpop.permute.xlu0 %1621 }
 0x2c4   : > { %v1576_v31 = vpop.permute.xlu1 %1575  ;;  %v1625_v33 = vsel %vm1035_vm4, %v1620_v26, %v1622_v32  ;;  %v1626_v34 = vsel %vm1035_vm4, %v1622_v32, %v1624_v21 }
 0x2c5   : > { %3908 = vmatprep.subr.msk.mxu0 %vm774_vm1, %v1626_v34 }
 0x2c6   : > { %3909 = vmatpush1.msk.msra.mxu0 %vm774_vm1, %v1625_v33 }
 0x2c7   : > { %v1600_v38 = vpop.permute.xlu0 %1599 }
 0x2c8   : > { %v1567_v35 = vpop.permute.xlu1 %1566  ;;  %v1604_v51 = vsel %vm1011_vm5, %v1600_v38, %v1602_v25  ;;  %v1603_v57 = vsel %vm1011_vm5, %v1598_v27, %v1600_v38 }
 0x2cb   : > { %v1609_v40 = vpop.permute.xlu0 %1608 }
 0x2cc   : > { %v1554_v39 = vpop.permute.xlu1 %1553  ;;  %v1614_v43 = vsel %vm1023_vm6, %v1609_v40, %v1611_v23 }
 0x2cd   : > { %v1636_v59 = vsel %vm774_vm1, %v1603_v57, %v1614_v43 }
 0x2cf   : > { %v1591_v42 = vpop.permute.xlu0 %1590 }
 0x2d0   : > { %v1545_v41 = vpop.permute.xlu1 %1544  ;;  %v1635_v21 = vsel %vm774_vm1, %v1580_v28, %v1591_v42  ;;  %v1593_v26 = vsel %vm999_vm7, %v1589_v29, %v1591_v42 }
 0x2d3   : > { %v1587_v50 = vpop.permute.xlu0 %1586 }
 0x2d4   : > { %v1613_v48 = vpop.permute.xlu1 %1612 }
 0x2d5   : > { %v1615_v52 = vsel %vm1023_vm6, %v1611_v23, %v1613_v48  ;;  %v1638_v53 = vsel %vm774_vm1, %v1602_v25, %v1613_v48  ;;  %v1592_v25 = vsel %vm999_vm7, %v1587_v50, %v1589_v29 }
 0x2d6   : > { %4047 = vmatpush3.msra.mxu1 %v1638_v53  ;;  %v1637_v58 = vsel %vm774_vm1, %v1604_v51, %v1615_v52 }
 0x2d7   : > { %1679 = vmatprep.subr.mxu0 %v1637_v58  ;;  %4048 = vmatprep.subr.mxu1 %v4208_v1  ;;  %v1569_v23 = vpop.permute.xlu0 %1568 }
 0x2d8   : > { %v1578_v32 = vpop.permute.xlu1 %1577  ;;  %1680 = vmatpush1.msra.mxu0 %v1636_v59  ;;  %4049 = vmatpush3.msra.mxu1 %v1635_v21  ;;  %v1632_v34 = vsel %vm774_vm1, %v1558_v30, %v1569_v23  ;;  %v1571_v29 = vsel %vm976_vm9, %v1567_v35, %v1569_v23  ;;  %v1891_v21 = vsel %vm1011_vm5, %v4682_v46, %v4684_v47 }
 0x2d9   : > { %v1581_v27 = vsel %vm764_vm3, %v1576_v31, %v1578_v32  ;;  %v1582_v33 = vsel %vm764_vm3, %v1578_v32, %v1580_v28  ;;  %4050 = vmatprep.subr.mxu1 %v4208_v1  ;;  %v1925_v32 = vsel %vm774_vm1, %v4684_v47, %v4762_v60  ;;  %v1890_v23 = vsel %vm1011_vm5, %v4766_v62, %v4682_v46 }
 0x2da   : > { %4051 = vmatpush3.msra.mxu1 %v1632_v34  ;;  %v1634_v38 = vsel %vm774_vm1, %v1582_v33, %v1593_v26  ;;  %v1633_v40 = vsel %vm774_vm1, %v1581_v27, %v1592_v25  ;;  %v1869_v25 = vsel %vm764_vm3, %v4770_v63, %v4776_v10  ;;  %v1912_v47 = vsel %vm1035_vm4, %v4768_v3, %v4678_v44 }
 0x2db   : > { %1681 = vmatprep.subr.mxu0 %v1634_v38  ;;  %4052 = vmatprep.subr.mxu1 %v4208_v1  ;;  %v1565_v43 = vpop.permute.xlu0 %1564  ;;  %v1868_v46 = vsel %vm764_vm3, %v4778_v5, %v4770_v63  ;;  %v1922_v63 = vsel %vm774_vm1, %v4776_v10, %v4780_v14  ;;  %v1847_v33 = vsel %vm964_vm8, %v4782_v16, %v4788_v20 }
 0x2dc   : > { %v1556_v42 = vpop.permute.xlu1 %1555  ;;  %1682 = vmatpush1.msra.mxu0 %v1633_v40  ;;  %v1570_v48 = vsel %vm976_vm9, %v1565_v43, %v1567_v35  ;;  %v4902_v43 = vld [vmem:[#allocation3] sm:$0xff] }
 0x2dd   : > { %v1559_v31 = vsel %vm964_vm8, %v1554_v39, %v1556_v42  ;;  %v1560_v28 = vsel %vm964_vm8, %v1556_v42, %v1558_v30  ;;  %v1639_v30 = vld [vmem:[%s5783_s2] sm:$0xf] }
 0x2de   : > { %v1631_v50 = vsel %vm774_vm1, %v1560_v28, %v1571_v29  ;;  %v1630_v51 = vsel %vm774_vm1, %v1559_v31, %v1570_v48  ;;  %v4199_v29 = vld [vmem:[%s4369_s30] sm:$0xff] }
 0x2df   : > { %1683 = vmatprep.subr.mxu0 %v1631_v50  ;;  %v1547_v53 = vpop.permute.xlu0 %1546 }
 0x2e0   : > { %v1543_v52 = vpop.permute.xlu1 %1542  ;;  %1684 = vmatpush1.msra.mxu0 %v1630_v51  ;;  %v1549_v58 = vsel %vm952_vm10, %v1545_v41, %v1547_v53  ;;  %v1629_v59 = vsel %vm774_vm1, %v4695_v54, %v1547_v53  ;;  %v1913_v54 = vsel %vm1035_vm4, %v4678_v44, %v4680_v45 }
 0x2e1   : > { %v1548_v57 = vsel %vm952_vm10, %v1543_v52, %v1545_v41  ;;  %4053 = vmatpush3.msra.mxu1 %v1629_v59  ;;  %v1628_v35 = vsel %vm774_vm1, %v4717_v56, %v1549_v58  ;;  %v1902_v41 = vsel %vm1023_vm6, %v4764_v61, %v4762_v60  ;;  %v1901_v56 = vsel %vm1023_vm6, %v4772_v0, %v4764_v61 }
 0x2e2   : > { %v1627_v39 = vsel %vm774_vm1, %v4697_v55, %v1548_v57  ;;  %1685 = vmatprep.subr.mxu0 %v1628_v35  ;;  %4057 = vmatprep.subr.mxu1 %v4208_v1  ;;  %v1880_v61 = vsel %vm999_vm7, %v4774_v7, %v4780_v14  ;;  %v1879_v60 = vsel %vm999_vm7, %v4784_v17, %v4774_v7 }
 0x2e3   : > { %1686 = vmatpush1.msra.mxu0 %v1627_v39  ;;  %4055 = vmatmul.mubr.msk.f32.vlgmr.msra.gmra.mxu1 %vm5762_vm11, %v1639_v30  ;;  %v1856_v26 = vpop.permute.xlu0 %1855  ;;  %v1923_v62 = vsel %vm774_vm1, %v1890_v23, %v1901_v56  ;;  %v1921_v7 = vsel %vm774_vm1, %v1869_v25, %v1880_v61  ;;  %v1920_v27 = vsel %vm774_vm1, %v1868_v46, %v1879_v60 }
 0x2e4   : > { %v1841_v55 = vpop.permute.xlu1 %1840  ;;  %4058 = vmatpush3.msk.msra.mxu1 %vm774_vm1, %v4680_v45  ;;  %3913 = vmatprep.subr.msk.mxu0 %vm774_vm1, %v1913_v54  ;;  %v1924_v45 = vsel %vm774_vm1, %v1891_v21, %v1902_v41  ;;  %v1858_v44 = vsel %vm976_vm9, %v4786_v19, %v1856_v26  ;;  %v1919_v10 = vsel %vm774_vm1, %v4788_v20, %v1856_v26 }
 0x2e5   : > { %4059 = vmatprep.subr.mxu1 %v4208_v1  ;;  %3910 = vmatmul.mubr.msk.f32.vlgmr.msra.gmra.mxu0 %vm5762_vm11, %v1639_v30  ;;  %v1846_v5 = vsel %vm964_vm8, %v1841_v55, %v4782_v16  ;;  %v1918_v34 = vsel %vm774_vm1, %v1847_v33, %v1858_v44  ;;  %v1926_v16 = vld [vmem:[%s5737_s10] sm:$0xf] }
 0x2e6   : > { %3914 = vmatpush1.msk.msra.mxu0 %vm774_vm1, %v1912_v47  ;;  %4060 = vmatpush3.msra.mxu1 %v1925_v32 }
 0x2e7   : > { %1966 = vmatprep.subr.mxu0 %v1924_v45  ;;  %4061 = vmatprep.subr.mxu1 %v4208_v1  ;;  %v1852_v0 = vpop.permute.xlu0 %1851 }
 0x2e8   : > { %v1832_v3 = vpop.permute.xlu1 %1831  ;;  %1967 = vmatpush1.msra.mxu0 %v1923_v62  ;;  %4062 = vmatpush3.msra.mxu1 %v1922_v63  ;;  %v1857_v17 = vsel %vm976_vm9, %v1852_v0, %v4786_v19  ;;  %v2216_v0 = vld [vmem:[%s5740_s13] sm:$0xf] }
 0x2e9   : > { %1968 = vmatprep.subr.mxu0 %v1921_v7  ;;  %4063 = vmatprep.subr.mxu1 %v4208_v1  ;;  %v1917_v14 = vsel %vm774_vm1, %v1846_v5, %v1857_v17  ;;  %v4989_v7 = vld [vmem:[%s4369_s30 + $0x8] sm:$0xf] }
 0x2ea   : > { %1969 = vmatpush1.msra.mxu0 %v1920_v27  ;;  %4064 = vmatpush3.msra.mxu1 %v1919_v10 }
 0x2eb   : > { %1970 = vmatprep.subr.mxu0 %v1918_v34  ;;  %v1834_v38 = vpop.permute.xlu0 %1833  ;;  %4065 = vmatprep.subr.mxu1 %v4208_v1 }
 0x2ec   : > { %v1830_v19 = vpop.permute.xlu1 %1829  ;;  %1971 = vmatpush1.msra.mxu0 %v1917_v14  ;;  %v1836_v20 = vsel %vm952_vm10, %v1832_v3, %v1834_v38  ;;  %v1916_v42 = vsel %vm774_vm1, %v4606_v8, %v1834_v38  ;;  %2006 = vmatprep.mubr.f32.mxu0 %v4902_v43 }
 0x2ed   : > { %v1835_v40 = vsel %vm952_vm10, %v1830_v19, %v1832_v3  ;;  %4066 = vmatpush3.msra.mxu1 %v1916_v42  ;;  %v1915_v1 = vsel %vm774_vm1, %v4380_v4, %v1836_v20  ;;  %4067 = vmatprep.mubr.msk.f32.mxu1 %vm5760_vm2, %v4902_v43 }
 0x2ee   : > { %v1914_v31 = vsel %vm774_vm1, %v4199_v29, %v1835_v40  ;;  %1972 = vmatprep.subr.mxu0 %v1915_v1  ;;  %4068 = vmatmul.mubr.msk.f32.vlgmr.msra.gmra.mxu1 %vm5762_vm11, %v1926_v16 }
 0x2ef   : > { %1973 = vmatpush1.msra.mxu0 %v1914_v31  ;;  %4070 = vmatprep.subr.mxu1 %v4902_v43 }
 0x2f0   : > { %3915 = vmatmul.mubr.msk.f32.vlgmr.msra.gmra.mxu0 %vm5762_vm11, %v1926_v16  ;;  %4080 = vmatprep.mubr.msk.f32.mxu1 %vm5760_vm2, %v4902_v43 }
 0x2f1   : > { %2295 = vmatprep.mubr.f32.mxu0 %v4902_v43 }
 0x2f8   : > { %v1931_v48 = vpop.permute.xlu0 %1930 }
 0x3a3   : > { %v4917_v4 = vpop.f32.mrf.mxu1 }
 0x3a5   : > { %v4056_v8 = vpop.f32.mrf.mxu1  ;;  %v4919_v28 = vpop.f32.mrf.mxu0 }
 0x3a7   : > { %v4921_v50 = vpop.f32.mrf.mxu0 }
 0x3ae   : > { %v2079_v51 = vpop.f32.mrf.mxu1 }
 0x3af   : > { %v2080_v59 = vadd.f32 %v2079_v51, %v1931_v48 }
 0x3b0   : > { %v2008_v52 = vpop.f32.mrf.mxu0  ;;  %v4069_v53 = vpop.f32.mrf.mxu1 }
 0x3b1   : > { %v2009_v57 = vadd.f32 %v2008_v52, %v1931_v48  ;;  %v2088_v54 = vmul.f32 0.01, %v2080_v59  ;;  %vm2085_vm2 = vcmp.ge.f32.partialorder %v2080_v59, 0.0 }
 0x3b2   : > { %v2010_v58 = vpop.f32.mrf.mxu0 }
 0x3b3   : > { %vm2083_vm0 = vcmp.ge.f32.partialorder %v2009_v57, 0.0  ;;  %v2086_v30 = vmul.f32 0.01, %v2009_v57  ;;  %v2011_v35 = vadd.f32 %v2010_v58, %v1931_v48  ;;  %v2091_v32 = vsel %vm2085_vm2, %v2080_v59, %v2088_v54 }
 0x3b4   : > { %v2094_v23 = vmul.f32 %v2091_v32, %v4631_v22  ;;  %vm5785_vm2 = vmmov 0  }
 0x3b5   : > { %v2089_v39 = vsel %vm2083_vm0, %v2009_v57, %v2086_v30  ;;  %vm2084_vm12 = vcmp.ge.f32.partialorder %v2011_v35, 0.0  ;;  %v2087_v21 = vmul.f32 0.01, %v2011_v35 }
 0x3b6   : > { %v2092_v55 = vmul.f32 %v2089_v39, %v4643_v36 }
 0x3b7   : > { %v2090_v41 = vsel %vm2084_vm12, %v2011_v35, %v2087_v21 }
 0x3b8   : > { %v2093_v56 = vmul.f32 %v2090_v41, %v4645_v37 }
 0x3ba   : > { %v2098_v26 = vcombine.low %v2092_v55, %v2093_v56 }
 0x3bc   : > { %2099 = vrot.lane.b32.xlu1 %v2098_v26, %s4219_s7 }
 0x3c0   : > { %2101 = vrot.lane.b32.xlu1 %v2094_v23, %s4219_s7 }
 0x42e   : > { %v2100_v25 = vpop.permute.xlu1 %2099 }
 0x42f   : > { %v2103_v61 = vrot.slane %v2100_v25, 4 }
 0x431   : > { %v2104_v47 = vsel %vm1523_vm13, %v2103_v61, %v2100_v25 }
 0x432   : > { %2108 = vst.msk [vmem:[#allocation2] sm:$0xff] %vm4686_vm14, %v2104_v47  ;;  %v2102_v46 = vpop.permute.xlu1 %2101 }
 0x433   : > { %v2105_v60 = vsel %vm1523_vm13, %v2103_v61, %v2102_v46 }
 0x434   : > { %2109 = vst.msk [vmem:[#allocation2 + $0x8] sm:$0xf] %vm1532_vm15, %v2105_v60 }
 0x439   : > { %v4933_v45 = vld [vmem:[#allocation2] sm:$0xff] }
 0x43a   : > { %2186 = vrot.lane.b32.xlu0 %v4933_v45, %s4212_s4  ;;  %v4955_v44 = vcombine.high %v4933_v45, %v4933_v45  ;;  %v2116_v3 = vcombine.low %v4933_v45, %v4933_v45 }
 0x43b   : > { %v4937_v62 = vld [vmem:[#allocation2 + $0x8] sm:$0xf] }
 0x43c   : > { %2199 = vrot.lane.b32.xlu1 %v4937_v62, %s4210_s25  ;;  %v2117_v63 = vcombine.low %v4937_v62, %v4937_v62 }
 0x43e   : > { %2195 = vrot.lane.b32.xlu0 %v4933_v45, %s4210_s25 }
 0x440   : > { %2177 = vrot.lane.b32.xlu1 %v4937_v62, %s4211_s8 }
 0x442   : > { %2155 = vrot.lane.b32.xlu0 %v4937_v62, %s4209_s3 }
 0x444   : > { %2173 = vrot.lane.b32.xlu1 %v4933_v45, %s4211_s8 }
 0x446   : > { %2133 = vrot.lane.b32.xlu0 %v4937_v62, %s5779_s27 }
 0x448   : > { %2164 = vrot.lane.b32.xlu1 %v4933_v45, %s4213_s1 }
 0x44a   : > { %2197 = vrot.lane.b32.xlu0 %v4955_v44, %s4210_s25 }
 0x44c   : > { %2151 = vrot.lane.b32.xlu1 %v4933_v45, %s4209_s3 }
 0x44e   : > { %2175 = vrot.lane.b32.xlu0 %v4955_v44, %s4211_s8 }
 0x450   : > { %2142 = vrot.lane.b32.xlu1 %v4933_v45, %s5780_s28 }
 0x452   : > { %2184 = vrot.lane.b32.xlu0 %v2116_v3, %s4212_s4 }
 0x454   : > { %2129 = vrot.lane.b32.xlu1 %v4933_v45, %s5779_s27 }
 0x456   : > { %2166 = vrot.lane.b32.xlu0 %v2117_v63, %s4213_s1 }
 0x458   : > { %2120 = vrot.lane.b32.xlu1 %v4933_v45, %s5784_s0 }
 0x45a   : > { %2162 = vrot.lane.b32.xlu0 %v2116_v3, %s4213_s1 }
 0x45c   : > { %2188 = vrot.lane.b32.xlu1 %v2117_v63, %s4212_s4 }
 0x45e   : > { %2144 = vrot.lane.b32.xlu0 %v2117_v63, %s5780_s28 }
 0x460   : > { %2153 = vrot.lane.b32.xlu1 %v4955_v44, %s4209_s3 }
 0x462   : > { %2140 = vrot.lane.b32.xlu0 %v2116_v3, %s5780_s28 }
 0x464   : > { %2131 = vrot.lane.b32.xlu1 %v4955_v44, %s5779_s27 }
 0x466   : > { %2122 = vrot.lane.b32.xlu0 %v2117_v63, %s5784_s0 }
 0x468   : > { %2118 = vrot.lane.b32.xlu1 %v2116_v3, %s5784_s0 }
 0x46a   : > { %2219 = vperm.xlu0 %4171, %v2216_v0  }
 0x46e   : > { %2765 = vrot.lane.b32.xlu0 %v4989_v7, %s4210_s25 }
 0x472   : > { %2743 = vrot.lane.b32.xlu0 %v4989_v7, %s4211_s8 }
 0x4ac   : > { %v2187_v5 = vpop.permute.xlu0 %2186 }
 0x4ae   : > { %v2200_v17 = vpop.permute.xlu1 %2199 }
 0x4af   : > { %4071 = vmatpush3.msk.msra.mxu1 %vm774_vm1, %v2200_v17 }
 0x4b0   : > { %v2196_v27 = vpop.permute.xlu0 %2195  ;;  %4072 = vmatprep.subr.mxu1 %v4902_v43 }
 0x4b2   : > { %v2178_v33 = vpop.permute.xlu1 %2177 }
 0x4b4   : > { %v2156_v10 = vpop.permute.xlu0 %2155 }
 0x4b6   : > { %v2174_v14 = vpop.permute.xlu1 %2173 }
 0x4b8   : > { %v2134_v34 = vpop.permute.xlu0 %2133 }
 0x4ba   : > { %v2165_v19 = vpop.permute.xlu1 %2164 }
 0x4bc   : > { %v2198_v38 = vpop.permute.xlu0 %2197 }
 0x4bd   : > { %v2201_v16 = vsel %vm1035_vm4, %v2196_v27, %v2198_v38  ;;  %v2202_v40 = vsel %vm1035_vm4, %v2198_v38, %v2200_v17 }
 0x4be   : > { %3918 = vmatprep.subr.msk.mxu0 %vm774_vm1, %v2202_v40  ;;  %v2152_v20 = vpop.permute.xlu1 %2151 }
 0x4bf   : > { %3919 = vmatpush1.msk.msra.mxu0 %vm774_vm1, %v2201_v16 }
 0x4c0   : > { %v2176_v42 = vpop.permute.xlu0 %2175 }
 0x4c1   : > { %v2180_v57 = vsel %vm1011_vm5, %v2176_v42, %v2178_v33  ;;  %v2179_v30 = vsel %vm1011_vm5, %v2174_v14, %v2176_v42 }
 0x4c2   : > { %v2143_v1 = vpop.permute.xlu1 %2142 }
 0x4c4   : > { %v2185_v29 = vpop.permute.xlu0 %2184 }
 0x4c5   : > { %v2190_v52 = vsel %vm1023_vm6, %v2185_v29, %v2187_v5 }
 0x4c6   : > { %v2130_v31 = vpop.permute.xlu1 %2129  ;;  %v2212_v21 = vsel %vm774_vm1, %v2179_v30, %v2190_v52 }
 0x4c8   : > { %v2167_v8 = vpop.permute.xlu0 %2166 }
 0x4c9   : > { %v2211_v54 = vsel %vm774_vm1, %v2156_v10, %v2167_v8  ;;  %v2169_v41 = vsel %vm999_vm7, %v2165_v19, %v2167_v8 }
 0x4ca   : > { %v2121_v48 = vpop.permute.xlu1 %2120 }
 0x4cc   : > { %v2163_v51 = vpop.permute.xlu0 %2162 }
 0x4cd   : > { %v2168_v55 = vsel %vm999_vm7, %v2163_v51, %v2165_v19 }
 0x4ce   : > { %v2189_v53 = vpop.permute.xlu1 %2188 }
 0x4cf   : > { %v2191_v58 = vsel %vm1023_vm6, %v2187_v5, %v2189_v53  ;;  %v2214_v59 = vsel %vm774_vm1, %v2178_v33, %v2189_v53  ;;  %v2215_v33 = vld [vmem:[%s5739_s12] sm:$0xf] }
 0x4d0   : > { %v2145_v35 = vpop.permute.xlu0 %2144  ;;  %4073 = vmatpush3.msra.mxu1 %v2214_v59  ;;  %v2213_v39 = vsel %vm774_vm1, %v2180_v57, %v2191_v58  ;;  %v5057_v59 = vcombine.low %v4989_v7, %v4989_v7 }
 0x4d1   : > { %2255 = vmatprep.subr.mxu0 %v2213_v39  ;;  %4074 = vmatprep.subr.mxu1 %v4902_v43  ;;  %v2208_v23 = vsel %vm774_vm1, %v2134_v34, %v2145_v35  ;;  %v2147_v60 = vsel %vm976_vm9, %v2143_v1, %v2145_v35 }
 0x4d2   : > { %2256 = vmatpush1.msra.mxu0 %v2212_v21  ;;  %4075 = vmatpush3.msra.mxu1 %v2211_v54  ;;  %v2154_v56 = vpop.permute.xlu1 %2153 }
 0x4d3   : > { %v2157_v26 = vsel %vm764_vm3, %v2152_v20, %v2154_v56  ;;  %v2158_v32 = vsel %vm764_vm3, %v2154_v56, %v2156_v10  ;;  %4076 = vmatprep.subr.mxu1 %v4902_v43 }
 0x4d4   : > { %v2141_v25 = vpop.permute.xlu0 %2140  ;;  %4077 = vmatpush3.msra.mxu1 %v2208_v23  ;;  %v2210_v61 = vsel %vm774_vm1, %v2158_v32, %v2169_v41  ;;  %v2209_v47 = vsel %vm774_vm1, %v2157_v26, %v2168_v55 }
 0x4d5   : > { %2257 = vmatprep.subr.mxu0 %v2210_v61  ;;  %4078 = vmatprep.subr.mxu1 %v4902_v43  ;;  %v2146_v3 = vsel %vm976_vm9, %v2141_v25, %v2143_v1 }
 0x4d6   : > { %2258 = vmatpush1.msra.mxu0 %v2209_v47  ;;  %v2132_v46 = vpop.permute.xlu1 %2131 }
 0x4d7   : > { %v2135_v63 = vsel %vm964_vm8, %v2130_v31, %v2132_v46  ;;  %v2136_v0 = vsel %vm964_vm8, %v2132_v46, %v2134_v34 }
 0x4d8   : > { %v2123_v5 = vpop.permute.xlu0 %2122  ;;  %v2207_v17 = vsel %vm774_vm1, %v2136_v0, %v2147_v60  ;;  %v2206_v27 = vsel %vm774_vm1, %v2135_v63, %v2146_v3 }
 0x4d9   : > { %v2125_v10 = vsel %vm952_vm10, %v2121_v48, %v2123_v5  ;;  %2259 = vmatprep.subr.mxu0 %v2207_v17  ;;  %v2205_v14 = vsel %vm774_vm1, %v4937_v62, %v2123_v5  ;;  %v5043_v62 = vld [vmem:[%s4369_s30] sm:$0xff] }
 0x4da   : > { %2260 = vmatpush1.msra.mxu0 %v2206_v27  ;;  %4079 = vmatpush3.msra.mxu1 %v2205_v14  ;;  %v2119_v19 = vpop.permute.xlu1 %2118  ;;  %v2204_v34 = vsel %vm774_vm1, %v4955_v44, %v2125_v10  ;;  %v5047_v44 = vcombine.high %v5043_v62, %v5043_v62  ;;  %v2682_v54 = vcombine.low %v5043_v62, %v5043_v62  ;;  %v2782_v5 = vld [vmem:[%s5744_s17] sm:$0xf] }
 0x4db   : > { %v2124_v38 = vsel %vm952_vm10, %v2119_v19, %v2121_v48  ;;  %2261 = vmatprep.subr.mxu0 %v2204_v34  ;;  %4081 = vmatmul.mubr.msk.f32.vlgmr.msra.gmra.mxu1 %vm5762_vm11, %v2215_v33 }
 0x4dc   : > { %v2203_v16 = vsel %vm774_vm1, %v4933_v45, %v2124_v38  ;;  %4083 = vmatprep.subr.mxu1 %v4902_v43  ;;  %4093 = vmatprep.mubr.msk.f32.mxu1 %vm5785_vm2, %v4902_v43 }
 0x4dd   : > { %2262 = vmatpush1.msra.mxu0 %v2203_v16  ;;  %2763 = vrot.lane.b32.xlu1 %v5047_v44, %s4210_s25 }
 0x4de   : > { %3920 = vmatmul.mubr.msk.f32.vlgmr.msra.gmra.mxu0 %vm5762_vm11, %v2215_v33 }
 0x4df   : > { %2584 = vmatprep.mubr.f32.mxu0 %v4902_v43 }
 0x4e1   : > { %2741 = vrot.lane.b32.xlu1 %v5047_v44, %s4211_s8 }
 0x4e5   : > { %v2220_v45 = vpop.permute.xlu0 %2219 }
 0x4e9   : > { %v5092_v56 = vpop.permute.xlu0 %2765 }
 0x4ed   : > { %v5096_v26 = vpop.permute.xlu0 %2743 }
 0x54f   : > { %v5090_v41 = vpop.permute.xlu1 %2763 }
 0x553   : > { %v5094_v55 = vpop.permute.xlu1 %2741 }
 0x59b   : > { %v2368_v40 = vpop.f32.mrf.mxu1 }
 0x59c   : > { %v2369_v20 = vadd.f32 %v2368_v40, %v2220_v45 }
 0x59d   : > { %v4082_v42 = vpop.f32.mrf.mxu1 }
 0x59e   : > { %vm2374_vm0 = vcmp.ge.f32.partialorder %v2369_v20, 0.0  ;;  %v2377_v1 = vmul.f32 0.01, %v2369_v20  ;;  %v2297_v29 = vpop.f32.mrf.mxu0 }
 0x59f   : > { %v2298_v31 = vadd.f32 %v2297_v29, %v2220_v45 }
 0x5a0   : > { %v2380_v8 = vsel %vm2374_vm0, %v2369_v20, %v2377_v1  ;;  %v2299_v48 = vpop.f32.mrf.mxu0 }
 0x5a1   : > { %v2383_v51 = vmul.f32 %v2380_v8, %v4631_v22  ;;  %vm2372_vm12 = vcmp.ge.f32.partialorder %v2298_v31, 0.0  ;;  %v2375_v52 = vmul.f32 0.01, %v2298_v31  ;;  %v2300_v53 = vadd.f32 %v2299_v48, %v2220_v45 }
 0x5a3   : > { %v2378_v57 = vsel %vm2372_vm12, %v2298_v31, %v2375_v52  ;;  %vm2373_vm11 = vcmp.ge.f32.partialorder %v2300_v53, 0.0  ;;  %v2376_v58 = vmul.f32 0.01, %v2300_v53  ;;  %2390 = vrot.lane.b32.xlu0 %v2383_v51, %s4219_s7 }
 0x5a4   : > { %v2381_v35 = vmul.f32 %v2378_v57, %v4643_v36 }
 0x5a5   : > { %v2379_v30 = vsel %vm2373_vm11, %v2300_v53, %v2376_v58  ;;  %vm5786_vm11 = vcmask 293888  }
 0x5a6   : > { %v2382_v39 = vmul.f32 %v2379_v30, %v4645_v37  ;;  %vm5787_vm0 = vmmov %vm5786_vm11 }
 0x5a7   : > { %2754 = vrot.lane.b32.xlu0 %v5057_v59, %s4212_s4  ;;  %vm5788_vm12 = vmmov %vm5787_vm0 }
 0x5a8   : > { %v2387_v21 = vcombine.low %v2381_v35, %v2382_v39 }
 0x5aa   : > { %2388 = vrot.lane.b32.xlu1 %v2387_v21, %s4219_s7 }
 0x5ab   : > { %2739 = vrot.lane.b32.xlu0 %v5043_v62, %s4211_s8 }
 0x5ae   : > { %2752 = vrot.lane.b32.xlu1 %v5043_v62, %s4212_s4 }
 0x5af   : > { %2719 = vrot.lane.b32.xlu0 %v5047_v44, %s4209_s3 }
 0x5b2   : > { %2761 = vrot.lane.b32.xlu1 %v5043_v62, %s4210_s25 }
 0x5b3   : > { %2730 = vrot.lane.b32.xlu0 %v5043_v62, %s4213_s1 }
 0x5b6   : > { %2750 = vrot.lane.b32.xlu1 %v2682_v54, %s4212_s4 }
 0x5b7   : > { %2717 = vrot.lane.b32.xlu0 %v5043_v62, %s4209_s3 }
 0x5ba   : > { %2721 = vrot.lane.b32.xlu1 %v4989_v7, %s4209_s3 }
 0x5bb   : > { %2697 = vrot.lane.b32.xlu0 %v5047_v44, %s5779_s27 }
 0x5be   : > { %2732 = vrot.lane.b32.xlu1 %v5057_v59, %s4213_s1 }
 0x5bf   : > { %2708 = vrot.lane.b32.xlu0 %v5043_v62, %s5780_s28 }
 0x5c2   : > { %2728 = vrot.lane.b32.xlu1 %v2682_v54, %s4213_s1 }
 0x5c6   : > { %2699 = vrot.lane.b32.xlu1 %v4989_v7, %s5779_s27 }
 0x615   : > { %v2391_v25 = vpop.permute.xlu0 %2390 }
 0x619   : > { %v5168_v17 = vpop.permute.xlu0 %2754 }
 0x61c   : > { %v2389_v32 = vpop.permute.xlu1 %2388 }
 0x61d   : > { %v2392_v23 = vrot.slane %v2389_v32, 4  ;;  %v5172_v33 = vpop.permute.xlu0 %2739 }
 0x61f   : > { %v2393_v61 = vsel %vm1523_vm13, %v2392_v23, %v2389_v32  ;;  %v2394_v47 = vsel %vm1523_vm13, %v2392_v23, %v2391_v25 }
 0x620   : > { %2397 = vst.msk [vmem:[#allocation3] sm:$0xff] %vm4686_vm14, %v2393_v61  ;;  %v5170_v27 = vpop.permute.xlu1 %2752 }
 0x621   : > { %2398 = vst.msk [vmem:[#allocation3 + $0x8] sm:$0xf] %vm1532_vm15, %v2394_v47  ;;  %v5176_v14 = vpop.permute.xlu0 %2719 }
 0x624   : > { %v5174_v10 = vpop.permute.xlu1 %2761 }
 0x625   : > { %v5180_v34 = vpop.permute.xlu0 %2730 }
 0x627   : > { %v5105_v60 = vld [vmem:[#allocation3] sm:$0xff] }
 0x628   : > { %v5103_v46 = vld [vmem:[#allocation3 + $0x8] sm:$0xf]  ;;  %2475 = vrot.lane.b32.xlu1 %v5105_v60, %s4212_s4  ;;  %v5125_v3 = vcombine.high %v5105_v60, %v5105_v60  ;;  %v2405_v63 = vcombine.low %v5105_v60, %v5105_v60  ;;  %v5178_v19 = vpop.permute.xlu1 %2750 }
 0x629   : > { %2488 = vrot.lane.b32.xlu0 %v5103_v46, %s4210_s25  ;;  %v2406_v0 = vcombine.low %v5103_v46, %v5103_v46  ;;  %v5184_v16 = vpop.permute.xlu0 %2717 }
 0x62c   : > { %2484 = vrot.lane.b32.xlu1 %v5105_v60, %s4210_s25  ;;  %v5182_v38 = vpop.permute.xlu1 %2721 }
 0x62d   : > { %2466 = vrot.lane.b32.xlu0 %v5103_v46, %s4211_s8  ;;  %v5188_v40 = vpop.permute.xlu0 %2697 }
 0x630   : > { %2444 = vrot.lane.b32.xlu1 %v5103_v46, %s4209_s3  ;;  %v5186_v45 = vpop.permute.xlu1 %2732 }
 0x631   : > { %2462 = vrot.lane.b32.xlu0 %v5105_v60, %s4211_s8  ;;  %v5192_v42 = vpop.permute.xlu0 %2708 }
 0x634   : > { %2422 = vrot.lane.b32.xlu1 %v5103_v46, %s5779_s27  ;;  %v5190_v20 = vpop.permute.xlu1 %2728 }
 0x635   : > { %2453 = vrot.lane.b32.xlu0 %v5105_v60, %s4213_s1 }
 0x638   : > { %2486 = vrot.lane.b32.xlu1 %v5125_v3, %s4210_s25  ;;  %v5194_v1 = vpop.permute.xlu1 %2699 }
 0x639   : > { %2440 = vrot.lane.b32.xlu0 %v5105_v60, %s4209_s3 }
 0x63c   : > { %2464 = vrot.lane.b32.xlu1 %v5125_v3, %s4211_s8 }
 0x63d   : > { %2431 = vrot.lane.b32.xlu0 %v5105_v60, %s5780_s28 }
 0x640   : > { %2473 = vrot.lane.b32.xlu1 %v2405_v63, %s4212_s4 }
 0x641   : > { %2418 = vrot.lane.b32.xlu0 %v5105_v60, %s5779_s27 }
 0x644   : > { %2455 = vrot.lane.b32.xlu1 %v2406_v0, %s4213_s1 }
 0x645   : > { %2409 = vrot.lane.b32.xlu0 %v5105_v60, %s5784_s0 }
 0x648   : > { %2451 = vrot.lane.b32.xlu1 %v2405_v63, %s4213_s1 }
 0x649   : > { %2477 = vrot.lane.b32.xlu0 %v2406_v0, %s4212_s4 }
 0x64c   : > { %2433 = vrot.lane.b32.xlu1 %v2406_v0, %s5780_s28 }
 0x64d   : > { %2442 = vrot.lane.b32.xlu0 %v5125_v3, %s4209_s3 }
 0x650   : > { %2429 = vrot.lane.b32.xlu1 %v2405_v63, %s5780_s28 }
 0x651   : > { %2420 = vrot.lane.b32.xlu0 %v5125_v3, %s5779_s27 }
 0x654   : > { %2411 = vrot.lane.b32.xlu1 %v2406_v0, %s5784_s0 }
 0x655   : > { %2407 = vrot.lane.b32.xlu0 %v2405_v63, %s5784_s0 }
 0x658   : > { %2710 = vrot.lane.b32.xlu1 %v5057_v59, %s5780_s28 }
 0x659   : > { %2695 = vrot.lane.b32.xlu0 %v5043_v62, %s5779_s27 }
 0x65c   : > { %2706 = vrot.lane.b32.xlu1 %v2682_v54, %s5780_s28 }
 0x65d   : > { %2686 = vrot.lane.b32.xlu0 %v5043_v62, %s5784_s0 }
 0x660   : > { %2688 = vrot.lane.b32.xlu1 %v5057_v59, %s5784_s0 }
 0x661   : > { %2684 = vrot.lane.b32.xlu0 %v2682_v54, %s5784_s0 }
 0x664   : > { %2785 = vperm.xlu1 %4170, %v2782_v5  }
 0x69a   : > { %v2476_v31 = vpop.permute.xlu1 %2475 }
 0x69b   : > { %v2489_v29 = vpop.permute.xlu0 %2488 }
 0x69c   : > { %4084 = vmatpush3.msk.msra.mxu1 %vm774_vm1, %v2489_v29 }
 0x69d   : > { %4085 = vmatprep.subr.mxu1 %v4902_v43 }
 0x69e   : > { %v2485_v48 = vpop.permute.xlu1 %2484 }
 0x69f   : > { %v2467_v8 = vpop.permute.xlu0 %2466 }
 0x6a2   : > { %v2445_v52 = vpop.permute.xlu1 %2444 }
 0x6a3   : > { %v2463_v51 = vpop.permute.xlu0 %2462 }
 0x6a6   : > { %v2423_v57 = vpop.permute.xlu1 %2422 }
 0x6a7   : > { %v2454_v53 = vpop.permute.xlu0 %2453 }
 0x6aa   : > { %v2487_v59 = vpop.permute.xlu1 %2486 }
 0x6ab   : > { %v2441_v58 = vpop.permute.xlu0 %2440  ;;  %v2490_v30 = vsel %vm1035_vm4, %v2485_v48, %v2487_v59  ;;  %v2491_v35 = vsel %vm1035_vm4, %v2487_v59, %v2489_v29 }
 0x6ac   : > { %3923 = vmatprep.subr.msk.mxu0 %vm774_vm1, %v2491_v35 }
 0x6ad   : > { %3924 = vmatpush1.msk.msra.mxu0 %vm774_vm1, %v2490_v30 }
 0x6ae   : > { %v2465_v21 = vpop.permute.xlu1 %2464 }
 0x6af   : > { %v2432_v39 = vpop.permute.xlu0 %2431  ;;  %v2469_v0 = vsel %vm1011_vm5, %v2465_v21, %v2467_v8  ;;  %v2468_v48 = vsel %vm1011_vm5, %v2463_v51, %v2465_v21 }
 0x6b2   : > { %v2474_v32 = vpop.permute.xlu1 %2473 }
 0x6b3   : > { %v2419_v54 = vpop.permute.xlu0 %2418  ;;  %v2479_v61 = vsel %vm1023_vm6, %v2474_v32, %v2476_v31 }
 0x6b4   : > { %v2501_v30 = vsel %vm774_vm1, %v2468_v48, %v2479_v61 }
 0x6b6   : > { %v2456_v25 = vpop.permute.xlu1 %2455 }
 0x6b7   : > { %v2410_v23 = vpop.permute.xlu0 %2409  ;;  %v2500_v35 = vsel %vm774_vm1, %v2445_v52, %v2456_v25  ;;  %v2458_v32 = vsel %vm999_vm7, %v2454_v53, %v2456_v25 }
 0x6ba   : > { %v2452_v63 = vpop.permute.xlu1 %2451 }
 0x6bb   : > { %v2478_v47 = vpop.permute.xlu0 %2477 }
 0x6bc   : > { %v2480_v5 = vsel %vm1023_vm6, %v2476_v31, %v2478_v47  ;;  %v2503_v29 = vsel %vm774_vm1, %v2467_v8, %v2478_v47  ;;  %v2457_v8 = vsel %vm999_vm7, %v2452_v63, %v2454_v53 }
 0x6bd   : > { %4086 = vmatpush3.msra.mxu1 %v2503_v29  ;;  %v2502_v59 = vsel %vm774_vm1, %v2469_v0, %v2480_v5 }
 0x6be   : > { %2544 = vmatprep.subr.mxu0 %v2502_v59  ;;  %4087 = vmatprep.subr.mxu1 %v4902_v43  ;;  %v2434_v31 = vpop.permute.xlu1 %2433 }
 0x6bf   : > { %v2443_v9 = vpop.permute.xlu0 %2442  ;;  %2545 = vmatpush1.msra.mxu0 %v2501_v30  ;;  %4088 = vmatpush3.msra.mxu1 %v2500_v35  ;;  %v2497_v47 = vsel %vm774_vm1, %v2423_v57, %v2434_v31  ;;  %v2436_v53 = vsel %vm976_vm9, %v2432_v39, %v2434_v31  ;;  %v2746_v31 = vsel %vm1011_vm5, %v5094_v55, %v5096_v26 }
 0x6c0   : > { %v2446_v51 = vsel %vm764_vm3, %v2441_v58, %v2443_v9  ;;  %v2447_v21 = vsel %vm764_vm3, %v2443_v9, %v2445_v52  ;;  %4089 = vmatprep.subr.mxu1 %v4902_v43 }
 0x6c1   : > { %4090 = vmatpush3.msra.mxu1 %v2497_v47  ;;  %v2499_v61 = vsel %vm774_vm1, %v2447_v21, %v2458_v32  ;;  %v2498_v0 = vsel %vm774_vm1, %v2446_v51, %v2457_v8  ;;  %v2780_v51 = vsel %vm774_vm1, %v5096_v26, %v5168_v17  ;;  %v2745_v21 = vsel %vm1011_vm5, %v5172_v33, %v5094_v55 }
 0x6c2   : > { %2546 = vmatprep.subr.mxu0 %v2499_v61  ;;  %4091 = vmatprep.subr.mxu1 %v4902_v43  ;;  %v2430_v5 = vpop.permute.xlu1 %2429  ;;  %v2724_v47 = vsel %vm764_vm3, %v5176_v14, %v5182_v38  ;;  %v2767_v26 = vsel %vm1035_vm4, %v5174_v10, %v5090_v41  ;;  %v2723_v55 = vsel %vm764_vm3, %v5184_v16, %v5176_v14 }
 0x6c3   : > { %v2421_v25 = vpop.permute.xlu0 %2420  ;;  %2547 = vmatpush1.msra.mxu0 %v2498_v0  ;;  %v2435_v52 = vsel %vm976_vm9, %v2430_v5, %v2432_v39  ;;  %v2777_v14 = vsel %vm774_vm1, %v5182_v38, %v5186_v45  ;;  %v2702_v0 = vsel %vm964_vm8, %v5188_v40, %v5194_v1 }
 0x6c4   : > { %v2424_v58 = vsel %vm964_vm8, %v2419_v54, %v2421_v25  ;;  %v2425_v9 = vsel %vm964_vm8, %v2421_v25, %v2423_v57  ;;  %v2504_v57 = vld [vmem:[%s5741_s14] sm:$0xf] }
 0x6c5   : > { %v2496_v63 = vsel %vm774_vm1, %v2425_v9, %v2436_v53  ;;  %v2495_v29 = vsel %vm774_vm1, %v2424_v58, %v2435_v52 }
 0x6c6   : > { %2548 = vmatprep.subr.mxu0 %v2496_v63  ;;  %v2412_v59 = vpop.permute.xlu1 %2411 }
 0x6c7   : > { %v2408_v48 = vpop.permute.xlu0 %2407  ;;  %2549 = vmatpush1.msra.mxu0 %v2495_v29  ;;  %v2414_v35 = vsel %vm952_vm10, %v2410_v23, %v2412_v59  ;;  %v2494_v32 = vsel %vm774_vm1, %v5103_v46, %v2412_v59  ;;  %v2768_v46 = vsel %vm1035_vm4, %v5090_v41, %v5092_v56 }
 0x6c8   : > { %v2413_v30 = vsel %vm952_vm10, %v2408_v48, %v2410_v23  ;;  %4092 = vmatpush3.msra.mxu1 %v2494_v32  ;;  %v2493_v39 = vsel %vm774_vm1, %v5125_v3, %v2414_v35  ;;  %v2757_v23 = vsel %vm1023_vm6, %v5170_v27, %v5168_v17  ;;  %v2756_v3 = vsel %vm1023_vm6, %v5178_v19, %v5170_v27 }
 0x6c9   : > { %v2492_v54 = vsel %vm774_vm1, %v5105_v60, %v2413_v30  ;;  %2550 = vmatprep.subr.mxu0 %v2493_v39  ;;  %4096 = vmatprep.subr.mxu1 %v4902_v43  ;;  %v2735_v27 = vsel %vm999_vm7, %v5180_v34, %v5186_v45  ;;  %v2734_v17 = vsel %vm999_vm7, %v5190_v20, %v5180_v34 }
 0x6ca   : > { %2551 = vmatpush1.msra.mxu0 %v2492_v54  ;;  %4094 = vmatmul.mubr.msk.f32.vlgmr.msra.gmra.mxu1 %vm5786_vm11, %v2504_v57  ;;  %v2711_v8 = vpop.permute.xlu1 %2710  ;;  %v2778_v33 = vsel %vm774_vm1, %v2745_v21, %v2756_v3  ;;  %v2776_v34 = vsel %vm774_vm1, %v2724_v47, %v2735_v27  ;;  %v2775_v61 = vsel %vm774_vm1, %v2723_v55, %v2734_v17  ;;  %vm5789_vm11 = vmmov %vm5787_vm0 }
 0x6cb   : > { %v2696_v60 = vpop.permute.xlu0 %2695  ;;  %4097 = vmatpush3.msk.msra.mxu1 %vm774_vm1, %v5092_v56  ;;  %3928 = vmatprep.subr.msk.mxu0 %vm774_vm1, %v2768_v46  ;;  %v2779_v56 = vsel %vm774_vm1, %v2746_v31, %v2757_v23  ;;  %v2713_v41 = vsel %vm976_vm9, %v5192_v42, %v2711_v8  ;;  %v2774_v38 = vsel %vm774_vm1, %v5194_v1, %v2711_v8 }
 0x6cc   : > { %4098 = vmatprep.subr.mxu1 %v4902_v43  ;;  %3925 = vmatmul.mubr.msk.f32.vlgmr.msra.gmra.mxu0 %vm5787_vm0, %v2504_v57  ;;  %v2701_v16 = vsel %vm964_vm8, %v2696_v60, %v5188_v40  ;;  %v2773_v25 = vsel %vm774_vm1, %v2702_v0, %v2713_v41  ;;  %v2781_v40 = vld [vmem:[%s5743_s16] sm:$0xf] }
 0x6cd   : > { %3929 = vmatpush1.msk.msra.mxu0 %vm774_vm1, %v2767_v26  ;;  %4099 = vmatpush3.msra.mxu1 %v2780_v51 }
 0x6ce   : > { %2821 = vmatprep.subr.mxu0 %v2779_v56  ;;  %4100 = vmatprep.subr.mxu1 %v4902_v43  ;;  %v2707_v19 = vpop.permute.xlu1 %2706 }
 0x6cf   : > { %v2687_v10 = vpop.permute.xlu0 %2686  ;;  %2822 = vmatpush1.msra.mxu0 %v2778_v33  ;;  %4101 = vmatpush3.msra.mxu1 %v2777_v14  ;;  %v2712_v20 = vsel %vm976_vm9, %v2707_v19, %v5192_v42 }
 0x6d0   : > { %2823 = vmatprep.subr.mxu0 %v2776_v34  ;;  %4102 = vmatprep.subr.mxu1 %v4902_v43  ;;  %v2772_v45 = vsel %vm774_vm1, %v2701_v16, %v2712_v20  ;;  %v3071_v34 = vld [vmem:[%s5746_s19] sm:$0xf] }
 0x6d1   : > { %2824 = vmatpush1.msra.mxu0 %v2775_v61  ;;  %4103 = vmatpush3.msra.mxu1 %v2774_v38 }
 0x6d2   : > { %2825 = vmatprep.subr.mxu0 %v2773_v25  ;;  %v2689_v5 = vpop.permute.xlu1 %2688  ;;  %4104 = vmatprep.subr.mxu1 %v4902_v43 }
 0x6d3   : > { %v2685_v42 = vpop.permute.xlu0 %2684  ;;  %2826 = vmatpush1.msra.mxu0 %v2772_v45  ;;  %v2691_v53 = vsel %vm952_vm10, %v2687_v10, %v2689_v5  ;;  %v2771_v58 = vsel %vm774_vm1, %v4989_v7, %v2689_v5  ;;  %4106 = vmatprep.mubr.msk.f32.mxu1 %vm5785_vm2, %v4902_v43 }
 0x6d4   : > { %v2690_v1 = vsel %vm952_vm10, %v2685_v42, %v2687_v10  ;;  %4105 = vmatpush3.msra.mxu1 %v2771_v58  ;;  %v2770_v9 = vsel %vm774_vm1, %v5047_v44, %v2691_v53  ;;  %2861 = vmatprep.mubr.f32.mxu0 %v4902_v43 }
 0x6d5   : > { %v2769_v52 = vsel %vm774_vm1, %v5043_v62, %v2690_v1  ;;  %2827 = vmatprep.subr.mxu0 %v2770_v9  ;;  %4107 = vmatmul.mubr.msk.f32.vlgmr.msra.gmra.mxu1 %vm5788_vm12, %v2781_v40 }
 0x6d6   : > { %2828 = vmatpush1.msra.mxu0 %v2769_v52  ;;  %4109 = vmatprep.subr.mxu1 %v4902_v43 }
 0x6d7   : > { %3930 = vmatmul.mubr.msk.f32.vlgmr.msra.gmra.mxu0 %vm5789_vm11, %v2781_v40  ;;  %4119 = vmatprep.mubr.msk.f32.mxu1 %vm5785_vm2, %v4902_v43 }
 0x6d8   : > { %3150 = vmatprep.mubr.f32.mxu0 %v4902_v43 }
 0x6df   : > { %v2786_v62 = vpop.permute.xlu1 %2785 }
 0x78a   : > { %v5321_v7 = vpop.f32.mrf.mxu1 }
 0x78c   : > { %v4095_v44 = vpop.f32.mrf.mxu1  ;;  %v5323_v63 = vpop.f32.mrf.mxu0 }
 0x78e   : > { %v5325_v29 = vpop.f32.mrf.mxu0 }
 0x795   : > { %v2934_v48 = vpop.f32.mrf.mxu1 }
 0x796   : > { %v2935_v59 = vadd.f32 %v2934_v48, %v2786_v62 }
 0x797   : > { %v2863_v30 = vpop.f32.mrf.mxu0  ;;  %v4108_v35 = vpop.f32.mrf.mxu1 }
 0x798   : > { %vm2940_vm0 = vcmp.ge.f32.partialorder %v2935_v59, 0.0  ;;  %v2943_v32 = vmul.f32 0.01, %v2935_v59  ;;  %v2864_v57 = vadd.f32 %v2863_v30, %v2786_v62 }
 0x799   : > { %v2865_v39 = vpop.f32.mrf.mxu0 }
 0x79a   : > { %v2946_v54 = vsel %vm2940_vm0, %v2935_v59, %v2943_v32  ;;  %vm2938_vm12 = vcmp.ge.f32.partialorder %v2864_v57, 0.0  ;;  %v2941_v31 = vmul.f32 0.01, %v2864_v57  ;;  %v2866_v46 = vadd.f32 %v2865_v39, %v2786_v62 }
 0x79b   : > { %v2949_v23 = vmul.f32 %v2946_v54, %v4631_v22  ;;  %vm5790_vm0 = vcmask 293888  }
 0x79c   : > { %v2944_v3 = vsel %vm2938_vm12, %v2864_v57, %v2941_v31  ;;  %vm2939_vm11 = vcmp.ge.f32.partialorder %v2866_v46, 0.0  ;;  %v2942_v60 = vmul.f32 0.01, %v2866_v46  ;;  %vm5791_vm12 = vmmov %vm5790_vm0 }
 0x79d   : > { %2956 = vrot.lane.b32.xlu1 %v2949_v23, %s4219_s7  ;;  %v2947_v51 = vmul.f32 %v2944_v3, %v4643_v36 }
 0x79e   : > { %v2945_v8 = vsel %vm2939_vm11, %v2866_v46, %v2942_v60 }
 0x79f   : > { %v2948_v21 = vmul.f32 %v2945_v8, %v4645_v37 }
 0x7a1   : > { %v2953_v47 = vcombine.low %v2947_v51, %v2948_v21 }
 0x7a3   : > { %2954 = vrot.lane.b32.xlu0 %v2953_v47, %s4219_s7 }
 0x80f   : > { %v2957_v55 = vpop.permute.xlu1 %2956 }
 0x815   : > { %v2955_v27 = vpop.permute.xlu0 %2954 }
 0x816   : > { %v2958_v26 = vrot.slane %v2955_v27, 4 }
 0x818   : > { %v2959_v17 = vsel %vm1523_vm13, %v2958_v26, %v2955_v27  ;;  %v2960_v56 = vsel %vm1523_vm13, %v2958_v26, %v2957_v55 }
 0x819   : > { %2963 = vst.msk [vmem:[#allocation2] sm:$0xff] %vm4686_vm14, %v2959_v17 }
 0x81a   : > { %2964 = vst.msk [vmem:[#allocation2 + $0x8] sm:$0xf] %vm1532_vm15, %v2960_v56 }
 0x820   : > { %v5339_v41 = vld [vmem:[#allocation2] sm:$0xff] }
 0x821   : > { %v5337_v33 = vld [vmem:[#allocation2 + $0x8] sm:$0xf]  ;;  %3041 = vrot.lane.b32.xlu0 %v5339_v41, %s4212_s4  ;;  %v5359_v10 = vcombine.high %v5339_v41, %v5339_v41  ;;  %v2971_v14 = vcombine.low %v5339_v41, %v5339_v41 }
 0x822   : > { %3054 = vrot.lane.b32.xlu1 %v5337_v33, %s4210_s25  ;;  %v2972_v19 = vcombine.low %v5337_v33, %v5337_v33 }
 0x825   : > { %3050 = vrot.lane.b32.xlu0 %v5339_v41, %s4210_s25 }
 0x826   : > { %3032 = vrot.lane.b32.xlu1 %v5337_v33, %s4211_s8 }
 0x829   : > { %3010 = vrot.lane.b32.xlu0 %v5337_v33, %s4209_s3 }
 0x82a   : > { %3028 = vrot.lane.b32.xlu1 %v5339_v41, %s4211_s8 }
 0x82d   : > { %2988 = vrot.lane.b32.xlu0 %v5337_v33, %s5779_s27 }
 0x82e   : > { %3019 = vrot.lane.b32.xlu1 %v5339_v41, %s4213_s1 }
 0x831   : > { %3052 = vrot.lane.b32.xlu0 %v5359_v10, %s4210_s25 }
 0x832   : > { %3006 = vrot.lane.b32.xlu1 %v5339_v41, %s4209_s3 }
 0x835   : > { %3030 = vrot.lane.b32.xlu0 %v5359_v10, %s4211_s8 }
 0x836   : > { %2997 = vrot.lane.b32.xlu1 %v5339_v41, %s5780_s28 }
 0x839   : > { %3039 = vrot.lane.b32.xlu0 %v2971_v14, %s4212_s4 }
 0x83a   : > { %2984 = vrot.lane.b32.xlu1 %v5339_v41, %s5779_s27 }
 0x83d   : > { %3021 = vrot.lane.b32.xlu0 %v2972_v19, %s4213_s1 }
 0x83e   : > { %2975 = vrot.lane.b32.xlu1 %v5339_v41, %s5784_s0 }
 0x841   : > { %3017 = vrot.lane.b32.xlu0 %v2971_v14, %s4213_s1 }
 0x842   : > { %3043 = vrot.lane.b32.xlu1 %v2972_v19, %s4212_s4 }
 0x845   : > { %2999 = vrot.lane.b32.xlu0 %v2972_v19, %s5780_s28 }
 0x846   : > { %3008 = vrot.lane.b32.xlu1 %v5359_v10, %s4209_s3 }
 0x849   : > { %2995 = vrot.lane.b32.xlu0 %v2971_v14, %s5780_s28 }
 0x84a   : > { %2986 = vrot.lane.b32.xlu1 %v5359_v10, %s5779_s27 }
 0x84d   : > { %2977 = vrot.lane.b32.xlu0 %v2972_v19, %s5784_s0 }
 0x84e   : > { %2973 = vrot.lane.b32.xlu1 %v2971_v14, %s5784_s0 }
 0x851   : > { %3074 = vperm.xlu0 %4171, %v3071_v34  }
 0x893   : > { %v3042_v20 = vpop.permute.xlu0 %3041 }
 0x894   : > { %v3055_v16 = vpop.permute.xlu1 %3054 }
 0x895   : > { %4110 = vmatpush3.msk.msra.mxu1 %vm774_vm1, %v3055_v16 }
 0x896   : > { %4111 = vmatprep.subr.mxu1 %v4902_v43 }
 0x897   : > { %v3051_v0 = vpop.permute.xlu0 %3050 }
 0x898   : > { %v3033_v61 = vpop.permute.xlu1 %3032 }
 0x89b   : > { %v3011_v45 = vpop.permute.xlu0 %3010 }
 0x89c   : > { %v3029_v38 = vpop.permute.xlu1 %3028 }
 0x89f   : > { %v2989_v42 = vpop.permute.xlu0 %2988 }
 0x8a0   : > { %v3020_v25 = vpop.permute.xlu1 %3019 }
 0x8a3   : > { %v3053_v40 = vpop.permute.xlu0 %3052 }
 0x8a4   : > { %v3007_v5 = vpop.permute.xlu1 %3006  ;;  %v3056_v1 = vsel %vm1035_vm4, %v3051_v0, %v3053_v40  ;;  %v3057_v53 = vsel %vm1035_vm4, %v3053_v40, %v3055_v16 }
 0x8a5   : > { %3933 = vmatprep.subr.msk.mxu0 %vm774_vm1, %v3057_v53 }
 0x8a6   : > { %3934 = vmatpush1.msk.msra.mxu0 %vm774_vm1, %v3056_v1 }
 0x8a7   : > { %v3031_v9 = vpop.permute.xlu0 %3030 }
 0x8a8   : > { %v2998_v58 = vpop.permute.xlu1 %2997  ;;  %v3035_v32 = vsel %vm1011_vm5, %v3031_v9, %v3033_v61  ;;  %v3034_v54 = vsel %vm1011_vm5, %v3029_v38, %v3031_v9 }
 0x8ab   : > { %v3040_v44 = vpop.permute.xlu0 %3039 }
 0x8ac   : > { %v2985_v52 = vpop.permute.xlu1 %2984  ;;  %v3045_v59 = vsel %vm1023_vm6, %v3040_v44, %v3042_v20 }
 0x8ad   : > { %v3067_v23 = vsel %vm774_vm1, %v3034_v54, %v3045_v59 }
 0x8af   : > { %v3022_v48 = vpop.permute.xlu0 %3021 }
 0x8b0   : > { %v2976_v62 = vpop.permute.xlu1 %2975  ;;  %v3066_v46 = vsel %vm774_vm1, %v3011_v45, %v3022_v48  ;;  %v3024_v3 = vsel %vm999_vm7, %v3020_v25, %v3022_v48 }
 0x8b3   : > { %v3018_v35 = vpop.permute.xlu0 %3017 }
 0x8b4   : > { %v3044_v30 = vpop.permute.xlu1 %3043  ;;  %v3023_v51 = vsel %vm999_vm7, %v3018_v35, %v3020_v25 }
 0x8b5   : > { %v3046_v57 = vsel %vm1023_vm6, %v3042_v20, %v3044_v30  ;;  %v3069_v39 = vsel %vm774_vm1, %v3033_v61, %v3044_v30 }
 0x8b6   : > { %4112 = vmatpush3.msra.mxu1 %v3069_v39  ;;  %v3068_v31 = vsel %vm774_vm1, %v3035_v32, %v3046_v57 }
 0x8b7   : > { %3110 = vmatprep.subr.mxu0 %v3068_v31  ;;  %4113 = vmatprep.subr.mxu1 %v4902_v43  ;;  %v3000_v8 = vpop.permute.xlu0 %2999 }
 0x8b8   : > { %v3009_v60 = vpop.permute.xlu1 %3008  ;;  %3111 = vmatpush1.msra.mxu0 %v3067_v23  ;;  %4114 = vmatpush3.msra.mxu1 %v3066_v46  ;;  %v3063_v27 = vsel %vm774_vm1, %v2989_v42, %v3000_v8  ;;  %v3002_v14 = vsel %vm976_vm9, %v2998_v58, %v3000_v8 }
 0x8b9   : > { %v3012_v21 = vsel %vm764_vm3, %v3007_v5, %v3009_v60  ;;  %v3013_v47 = vsel %vm764_vm3, %v3009_v60, %v3011_v45  ;;  %4115 = vmatprep.subr.mxu1 %v4902_v43  ;;  %v3070_v45 = vld [vmem:[%s5745_s18] sm:$0xf] }
 0x8ba   : > { %4116 = vmatpush3.msra.mxu1 %v3063_v27  ;;  %v3065_v26 = vsel %vm774_vm1, %v3013_v47, %v3024_v3  ;;  %v3064_v55 = vsel %vm774_vm1, %v3012_v21, %v3023_v51 }
 0x8bb   : > { %3112 = vmatprep.subr.mxu0 %v3065_v26  ;;  %4117 = vmatprep.subr.mxu1 %v4902_v43  ;;  %v2996_v56 = vpop.permute.xlu0 %2995 }
 0x8bc   : > { %v2987_v17 = vpop.permute.xlu1 %2986  ;;  %3113 = vmatpush1.msra.mxu0 %v3064_v55  ;;  %v3001_v16 = vsel %vm976_vm9, %v2996_v56, %v2998_v58  ;;  %v3360_v55 = vld [vmem:[%s5748_s21] sm:$0xf] }
 0x8bd   : > { %v2990_v19 = vsel %vm964_vm8, %v2985_v52, %v2987_v17  ;;  %v2991_v34 = vsel %vm964_vm8, %v2987_v17, %v2989_v42 }
 0x8be   : > { %v3062_v20 = vsel %vm774_vm1, %v2991_v34, %v3002_v14  ;;  %v3061_v61 = vsel %vm774_vm1, %v2990_v19, %v3001_v16 }
 0x8bf   : > { %3114 = vmatprep.subr.mxu0 %v3062_v20  ;;  %v2978_v38 = vpop.permute.xlu0 %2977 }
 0x8c0   : > { %v2974_v0 = vpop.permute.xlu1 %2973  ;;  %3115 = vmatpush1.msra.mxu0 %v3061_v61  ;;  %v2980_v5 = vsel %vm952_vm10, %v2976_v62, %v2978_v38  ;;  %v3060_v42 = vsel %vm774_vm1, %v5337_v33, %v2978_v38 }
 0x8c1   : > { %v2979_v25 = vsel %vm952_vm10, %v2974_v0, %v2976_v62  ;;  %4118 = vmatpush3.msra.mxu1 %v3060_v42  ;;  %v3059_v40 = vsel %vm774_vm1, %v5359_v10, %v2980_v5 }
 0x8c2   : > { %v3058_v1 = vsel %vm774_vm1, %v5339_v41, %v2979_v25  ;;  %3116 = vmatprep.subr.mxu0 %v3059_v40  ;;  %4120 = vmatmul.mubr.msk.f32.vlgmr.msra.gmra.mxu1 %vm5790_vm0, %v3070_v45 }
 0x8c3   : > { %3117 = vmatpush1.msra.mxu0 %v3058_v1  ;;  %4122 = vmatprep.subr.mxu1 %v4902_v43 }
 0x8c4   : > { %3935 = vmatmul.mubr.msk.f32.vlgmr.msra.gmra.mxu0 %vm5791_vm12, %v3070_v45  ;;  %4132 = vmatprep.mubr.msk.f32.mxu1 %vm5785_vm2, %v4902_v43 }
 0x8c5   : > { %3439 = vmatprep.mubr.f32.mxu0 %v4902_v43 }
 0x8cc   : > { %v3075_v33 = vpop.permute.xlu0 %3074 }
 0x982   : > { %v3223_v53 = vpop.f32.mrf.mxu1 }
 0x983   : > { %v3224_v58 = vadd.f32 %v3223_v53, %v3075_v33 }
 0x984   : > { %v3152_v10 = vpop.f32.mrf.mxu0  ;;  %v4121_v9 = vpop.f32.mrf.mxu1 }
 0x985   : > { %vm3229_vm11 = vcmp.ge.f32.partialorder %v3224_v58, 0.0  ;;  %v3232_v41 = vmul.f32 0.01, %v3224_v58  ;;  %v3153_v52 = vadd.f32 %v3152_v10, %v3075_v33 }
 0x986   : > { %v3154_v44 = vpop.f32.mrf.mxu0 }
 0x987   : > { %v3235_v62 = vsel %vm3229_vm11, %v3224_v58, %v3232_v41  ;;  %vm3227_vm0 = vcmp.ge.f32.partialorder %v3153_v52, 0.0  ;;  %v3230_v48 = vmul.f32 0.01, %v3153_v52  ;;  %v3155_v59 = vadd.f32 %v3154_v44, %v3075_v33 }
 0x988   : > { %v3238_v30 = vmul.f32 %v3235_v62, %v4631_v22  ;;  %vm5792_vm11 = vcmask 293888  }
 0x989   : > { %v3233_v35 = vsel %vm3227_vm0, %v3153_v52, %v3230_v48  ;;  %vm3228_vm12 = vcmp.ge.f32.partialorder %v3155_v59, 0.0  ;;  %v3231_v32 = vmul.f32 0.01, %v3155_v59  ;;  %vm5793_vm0 = vmmov %vm5792_vm11 }
 0x98a   : > { %3245 = vrot.lane.b32.xlu0 %v3238_v30, %s4219_s7  ;;  %v3236_v39 = vmul.f32 %v3233_v35, %v4643_v36 }
 0x98b   : > { %v3234_v57 = vsel %vm3228_vm12, %v3155_v59, %v3231_v32 }
 0x98c   : > { %v3237_v54 = vmul.f32 %v3234_v57, %v4645_v37 }
 0x98e   : > { %v3242_v31 = vcombine.low %v3236_v39, %v3237_v54 }
 0x990   : > { %3243 = vrot.lane.b32.xlu1 %v3242_v31, %s4219_s7 }
 0x9fc   : > { %v3246_v3 = vpop.permute.xlu0 %3245 }
 0xa02   : > { %v3244_v46 = vpop.permute.xlu1 %3243 }
 0xa03   : > { %v3247_v23 = vrot.slane %v3244_v46, 4 }
 0xa05   : > { %v3248_v60 = vsel %vm1523_vm13, %v3247_v23, %v3244_v46  ;;  %v3249_v8 = vsel %vm1523_vm13, %v3247_v23, %v3246_v3 }
 0xa06   : > { %3252 = vst.msk [vmem:[#allocation3] sm:$0xff] %vm4686_vm14, %v3248_v60 }
 0xa07   : > { %3253 = vst.msk [vmem:[#allocation3 + $0x8] sm:$0xf] %vm1532_vm15, %v3249_v8 }
 0xa0d   : > { %v5451_v21 = vld [vmem:[#allocation3] sm:$0xff] }
 0xa0e   : > { %v5449_v51 = vld [vmem:[#allocation3 + $0x8] sm:$0xf]  ;;  %3330 = vrot.lane.b32.xlu1 %v5451_v21, %s4212_s4  ;;  %v5471_v47 = vcombine.high %v5451_v21, %v5451_v21  ;;  %v3260_v27 = vcombine.low %v5451_v21, %v5451_v21 }
 0xa0f   : > { %3343 = vrot.lane.b32.xlu0 %v5449_v51, %s4210_s25  ;;  %v3261_v26 = vcombine.low %v5449_v51, %v5449_v51 }
 0xa12   : > { %3339 = vrot.lane.b32.xlu1 %v5451_v21, %s4210_s25 }
 0xa13   : > { %3321 = vrot.lane.b32.xlu0 %v5449_v51, %s4211_s8 }
 0xa16   : > { %3299 = vrot.lane.b32.xlu1 %v5449_v51, %s4209_s3 }
 0xa17   : > { %3317 = vrot.lane.b32.xlu0 %v5451_v21, %s4211_s8 }
 0xa1a   : > { %3277 = vrot.lane.b32.xlu1 %v5449_v51, %s5779_s27 }
 0xa1b   : > { %3308 = vrot.lane.b32.xlu0 %v5451_v21, %s4213_s1 }
 0xa1e   : > { %3341 = vrot.lane.b32.xlu1 %v5471_v47, %s4210_s25 }
 0xa1f   : > { %3295 = vrot.lane.b32.xlu0 %v5451_v21, %s4209_s3 }
 0xa22   : > { %3319 = vrot.lane.b32.xlu1 %v5471_v47, %s4211_s8 }
 0xa23   : > { %3286 = vrot.lane.b32.xlu0 %v5451_v21, %s5780_s28 }
 0xa26   : > { %3328 = vrot.lane.b32.xlu1 %v3260_v27, %s4212_s4 }
 0xa27   : > { %3273 = vrot.lane.b32.xlu0 %v5451_v21, %s5779_s27 }
 0xa2a   : > { %3310 = vrot.lane.b32.xlu1 %v3261_v26, %s4213_s1 }
 0xa2b   : > { %3264 = vrot.lane.b32.xlu0 %v5451_v21, %s5784_s0 }
 0xa2e   : > { %3306 = vrot.lane.b32.xlu1 %v3260_v27, %s4213_s1 }
 0xa2f   : > { %3332 = vrot.lane.b32.xlu0 %v3261_v26, %s4212_s4 }
 0xa32   : > { %3288 = vrot.lane.b32.xlu1 %v3261_v26, %s5780_s28 }
 0xa33   : > { %3297 = vrot.lane.b32.xlu0 %v5471_v47, %s4209_s3 }
 0xa36   : > { %3284 = vrot.lane.b32.xlu1 %v3260_v27, %s5780_s28 }
 0xa37   : > { %3275 = vrot.lane.b32.xlu0 %v5471_v47, %s5779_s27 }
 0xa3a   : > { %3266 = vrot.lane.b32.xlu1 %v3261_v26, %s5784_s0 }
 0xa3b   : > { %3262 = vrot.lane.b32.xlu0 %v3260_v27, %s5784_s0 }
 0xa3e   : > { %3363 = vperm.xlu1 %4170, %v3360_v55  }
 0xa80   : > { %v3331_v56 = vpop.permute.xlu1 %3330 }
 0xa81   : > { %v3344_v17 = vpop.permute.xlu0 %3343 }
 0xa82   : > { %4123 = vmatpush3.msk.msra.mxu1 %vm774_vm1, %v3344_v17 }
 0xa83   : > { %4124 = vmatprep.subr.mxu1 %v4902_v43 }
 0xa84   : > { %v3340_v19 = vpop.permute.xlu1 %3339 }
 0xa85   : > { %v3322_v14 = vpop.permute.xlu0 %3321 }
 0xa88   : > { %v3300_v16 = vpop.permute.xlu1 %3299 }
 0xa89   : > { %v3318_v34 = vpop.permute.xlu0 %3317 }
 0xa8c   : > { %v3278_v61 = vpop.permute.xlu1 %3277 }
 0xa8d   : > { %v3309_v20 = vpop.permute.xlu0 %3308 }
 0xa90   : > { %v3342_v38 = vpop.permute.xlu1 %3341 }
 0xa91   : > { %v3296_v0 = vpop.permute.xlu0 %3295  ;;  %v3345_v45 = vsel %vm1035_vm4, %v3340_v19, %v3342_v38  ;;  %v3346_v25 = vsel %vm1035_vm4, %v3342_v38, %v3344_v17 }
 0xa92   : > { %3938 = vmatprep.subr.msk.mxu0 %vm774_vm1, %v3346_v25 }
 0xa93   : > { %3939 = vmatpush1.msk.msra.mxu0 %vm774_vm1, %v3345_v45 }
 0xa94   : > { %v3320_v42 = vpop.permute.xlu1 %3319 }
 0xa95   : > { %v3287_v5 = vpop.permute.xlu0 %3286  ;;  %v3324_v41 = vsel %vm1011_vm5, %v3320_v42, %v3322_v14  ;;  %v3323_v62 = vsel %vm1011_vm5, %v3318_v34, %v3320_v42 }
 0xa98   : > { %v3329_v1 = vpop.permute.xlu1 %3328 }
 0xa99   : > { %v3274_v40 = vpop.permute.xlu0 %3273  ;;  %v3334_v58 = vsel %vm1023_vm6, %v3329_v1, %v3331_v56 }
 0xa9a   : > { %v3356_v30 = vsel %vm774_vm1, %v3323_v62, %v3334_v58 }
 0xa9c   : > { %v3311_v53 = vpop.permute.xlu1 %3310 }
 0xa9d   : > { %v3265_v33 = vpop.permute.xlu0 %3264  ;;  %v3355_v59 = vsel %vm774_vm1, %v3300_v16, %v3311_v53  ;;  %v3313_v35 = vsel %vm999_vm7, %v3309_v20, %v3311_v53 }
 0xaa0   : > { %v3307_v9 = vpop.permute.xlu1 %3306 }
 0xaa1   : > { %v3333_v10 = vpop.permute.xlu0 %3332  ;;  %v3312_v39 = vsel %vm999_vm7, %v3307_v9, %v3309_v20 }
 0xaa2   : > { %v3335_v52 = vsel %vm1023_vm6, %v3331_v56, %v3333_v10  ;;  %v3358_v44 = vsel %vm774_vm1, %v3322_v14, %v3333_v10 }
 0xaa3   : > { %4125 = vmatpush3.msra.mxu1 %v3358_v44  ;;  %v3357_v48 = vsel %vm774_vm1, %v3324_v41, %v3335_v52 }
 0xaa4   : > { %3399 = vmatprep.subr.mxu0 %v3357_v48  ;;  %4126 = vmatprep.subr.mxu1 %v4902_v43  ;;  %v3289_v57 = vpop.permute.xlu1 %3288 }
 0xaa5   : > { %v3298_v32 = vpop.permute.xlu0 %3297  ;;  %3400 = vmatpush1.msra.mxu0 %v3356_v30  ;;  %4127 = vmatpush3.msra.mxu1 %v3355_v59  ;;  %v3352_v46 = vsel %vm774_vm1, %v3278_v61, %v3289_v57  ;;  %v3291_v27 = vsel %vm976_vm9, %v3287_v5, %v3289_v57 }
 0xaa6   : > { %v3301_v54 = vsel %vm764_vm3, %v3296_v0, %v3298_v32  ;;  %v3302_v31 = vsel %vm764_vm3, %v3298_v32, %v3300_v16  ;;  %4128 = vmatprep.subr.mxu1 %v4902_v43  ;;  %v3359_v16 = vld [vmem:[%s5747_s20] sm:$0xf] }
 0xaa7   : > { %4129 = vmatpush3.msra.mxu1 %v3352_v46  ;;  %v3354_v23 = vsel %vm774_vm1, %v3302_v31, %v3313_v35  ;;  %v3353_v3 = vsel %vm774_vm1, %v3301_v54, %v3312_v39  ;;  %v3649_v54 = vld [vmem:[%s5750_s23] sm:$0xf]  ;;  %v744_v46 = vld [vmem:[%s5794_s29 + $0x8] sm:$0xff] }
 0xaa8   : > { %3401 = vmatprep.subr.mxu0 %v3354_v23  ;;  %4130 = vmatprep.subr.mxu1 %v4902_v43  ;;  %v3285_v8 = vpop.permute.xlu1 %3284  ;;  %v1640_v31 = vld [vmem:[%s5736_s9] sm:$0xf] }
 0xaa9   : > { %v3276_v60 = vpop.permute.xlu0 %3275  ;;  %3402 = vmatpush1.msra.mxu0 %v3353_v3  ;;  %v3290_v17 = vsel %vm976_vm9, %v3285_v8, %v3287_v5  ;;  %v743_v23 = vld [vmem:[%s5794_s29] sm:$0xff] }
 0xaaa   : > { %v3279_v26 = vsel %vm964_vm8, %v3274_v40, %v3276_v60  ;;  %v3280_v55 = vsel %vm964_vm8, %v3276_v60, %v3278_v61  ;;  %v2505_v3 = vld [vmem:[%s5742_s15] sm:$0xf] }
 0xaab   : > { %v3351_v56 = vsel %vm774_vm1, %v3280_v55, %v3291_v27  ;;  %v3350_v14 = vsel %vm774_vm1, %v3279_v26, %v3290_v17 }
 0xaac   : > { %3403 = vmatprep.subr.mxu0 %v3351_v56  ;;  %v3267_v34 = vpop.permute.xlu1 %3266 }
 0xaad   : > { %v3263_v19 = vpop.permute.xlu0 %3262  ;;  %3404 = vmatpush1.msra.mxu0 %v3350_v14  ;;  %v3269_v0 = vsel %vm952_vm10, %v3265_v33, %v3267_v34  ;;  %v3349_v61 = vsel %vm774_vm1, %v5449_v51, %v3267_v34 }
 0xaae   : > { %v3268_v20 = vsel %vm952_vm10, %v3263_v19, %v3265_v33  ;;  %4131 = vmatpush3.msra.mxu1 %v3349_v61  ;;  %v3348_v38 = vsel %vm774_vm1, %v5471_v47, %v3269_v0 }
 0xaaf   : > { %v3347_v45 = vsel %vm774_vm1, %v5451_v21, %v3268_v20  ;;  %3405 = vmatprep.subr.mxu0 %v3348_v38  ;;  %4133 = vmatmul.mubr.msk.f32.vlgmr.msra.gmra.mxu1 %vm5792_vm11, %v3359_v16 }
 0xab0   : > { %3406 = vmatpush1.msra.mxu0 %v3347_v45  ;;  %4135 = vmatprep.subr.mxu1 %v4902_v43 }
 0xab1   : > { %3940 = vmatmul.mubr.msk.f32.vlgmr.msra.gmra.mxu0 %vm5793_vm0, %v3359_v16  ;;  %4145 = vmatprep.mubr.msk.f32.mxu1 %vm5785_vm2, %v4902_v43 }
 0xab2   : > { %3728 = vmatprep.mubr.f32.mxu0 %v4902_v43 }
 0xab9   : > { %v3364_v51 = vpop.permute.xlu1 %3363 }
 0xb6f   : > { %v3512_v25 = vpop.f32.mrf.mxu1 }
 0xb70   : > { %v3513_v5 = vadd.f32 %v3512_v25, %v3364_v51 }
 0xb71   : > { %v3441_v47 = vpop.f32.mrf.mxu0  ;;  %v4134_v42 = vpop.f32.mrf.mxu1 }
 0xb72   : > { %vm3518_vm12 = vcmp.ge.f32.partialorder %v3513_v5, 0.0  ;;  %v3521_v21 = vmul.f32 0.01, %v3513_v5  ;;  %v3442_v40 = vadd.f32 %v3441_v47, %v3364_v51 }
 0xb73   : > { %v3443_v1 = vpop.f32.mrf.mxu0 }
 0xb74   : > { %v3524_v33 = vsel %vm3518_vm12, %v3513_v5, %v3521_v21  ;;  %vm3516_vm11 = vcmp.ge.f32.partialorder %v3442_v40, 0.0  ;;  %v3519_v53 = vmul.f32 0.01, %v3442_v40  ;;  %v3444_v58 = vadd.f32 %v3443_v1, %v3364_v51 }
 0xb75   : > { %v3527_v10 = vmul.f32 %v3524_v33, %v4631_v22 }
 0xb76   : > { %v3522_v9 = vsel %vm3516_vm11, %v3442_v40, %v3519_v53  ;;  %vm3517_vm0 = vcmp.ge.f32.partialorder %v3444_v58, 0.0  ;;  %v3520_v41 = vmul.f32 0.01, %v3444_v58 }
 0xb77   : > { %3534 = vrot.lane.b32.xlu1 %v3527_v10, %s4219_s7  ;;  %v3525_v44 = vmul.f32 %v3522_v9, %v4643_v36 }
 0xb78   : > { %v3523_v52 = vsel %vm3517_vm0, %v3444_v58, %v3520_v41 }
 0xb79   : > { %v3526_v62 = vmul.f32 %v3523_v52, %v4645_v37 }
 0xb7b   : > { %v3531_v48 = vcombine.low %v3525_v44, %v3526_v62 }
 0xb7d   : > { %3532 = vrot.lane.b32.xlu0 %v3531_v48, %s4219_s7 }
 0xbe9   : > { %v3535_v35 = vpop.permute.xlu1 %3534 }
 0xbef   : > { %v3533_v59 = vpop.permute.xlu0 %3532 }
 0xbf0   : > { %v3536_v30 = vrot.slane %v3533_v59, 4 }
 0xbf2   : > { %v3537_v32 = vsel %vm1523_vm13, %v3536_v30, %v3533_v59  ;;  %v3538_v22 = vsel %vm1523_vm13, %v3536_v30, %v3535_v35 }
 0xbf3   : > { %3541 = vst.msk [vmem:[#allocation2] sm:$0xff] %vm4686_vm14, %v3537_v32 }
 0xbf4   : > { %3542 = vst.msk [vmem:[#allocation2 + $0x8] sm:$0xf] %vm1532_vm15, %v3538_v22 }
 0xbfa   : > { %v5563_v36 = vld [vmem:[#allocation2] sm:$0xff] }
 0xbfb   : > { %v5561_v57 = vld [vmem:[#allocation2 + $0x8] sm:$0xf]  ;;  %3619 = vrot.lane.b32.xlu0 %v5563_v36, %s4212_s4  ;;  %v5583_v37 = vcombine.high %v5563_v36, %v5563_v36  ;;  %v3549_v49 = vcombine.low %v5563_v36, %v5563_v36 }
 0xbfc   : > { %3632 = vrot.lane.b32.xlu1 %v5561_v57, %s4210_s25  ;;  %v3550_v39 = vcombine.low %v5561_v57, %v5561_v57 }
 0xbff   : > { %3628 = vrot.lane.b32.xlu0 %v5563_v36, %s4210_s25 }
 0xc00   : > { %3610 = vrot.lane.b32.xlu1 %v5561_v57, %s4211_s8 }
 0xc03   : > { %3588 = vrot.lane.b32.xlu0 %v5561_v57, %s4209_s3 }
 0xc04   : > { %3606 = vrot.lane.b32.xlu1 %v5563_v36, %s4211_s8 }
 0xc07   : > { %3566 = vrot.lane.b32.xlu0 %v5561_v57, %s5779_s27 }
 0xc08   : > { %3597 = vrot.lane.b32.xlu1 %v5563_v36, %s4213_s1 }
 0xc0b   : > { %3630 = vrot.lane.b32.xlu0 %v5583_v37, %s4210_s25 }
 0xc0c   : > { %3584 = vrot.lane.b32.xlu1 %v5563_v36, %s4209_s3 }
 0xc0f   : > { %3608 = vrot.lane.b32.xlu0 %v5583_v37, %s4211_s8  ;;  %s5795_s8 = sld [smem:[#allocation10_spill]] }
 0xc10   : > { %3575 = vrot.lane.b32.xlu1 %v5563_v36, %s5780_s28 }
 0xc13   : > { %3617 = vrot.lane.b32.xlu0 %v3549_v49, %s4212_s4 }
 0xc14   : > { %3562 = vrot.lane.b32.xlu1 %v5563_v36, %s5779_s27 }
 0xc15   : > { %v1051_v60 = vld [vmem:[%s5795_s8] sm:$0xf] }
 0xc17   : > { %3599 = vrot.lane.b32.xlu0 %v3550_v39, %s4213_s1 }
 0xc18   : > { %3553 = vrot.lane.b32.xlu1 %v5563_v36, %s5784_s0 }
 0xc1b   : > { %3595 = vrot.lane.b32.xlu0 %v3549_v49, %s4213_s1 }
 0xc1c   : > { %3621 = vrot.lane.b32.xlu1 %v3550_v39, %s4212_s4 }
 0xc1f   : > { %3577 = vrot.lane.b32.xlu0 %v3550_v39, %s5780_s28 }
 0xc20   : > { %3586 = vrot.lane.b32.xlu1 %v5583_v37, %s4209_s3  ;;  %s4149_s3 = smul.u32 48, %s5800_s26 }
 0xc23   : > { %3573 = vrot.lane.b32.xlu0 %v3549_v49, %s5780_s28 }
 0xc24   : > { %3564 = vrot.lane.b32.xlu1 %v5583_v37, %s5779_s27  ;;  %s5693_s27 = scalar_lea.vmem %s5751_s24, %s4149_s3 }
 0xc27   : > { %3555 = vrot.lane.b32.xlu0 %v3550_v39, %s5784_s0 }
 0xc28   : > { %3551 = vrot.lane.b32.xlu1 %v3549_v49, %s5784_s0 }
 0xc2b   : > { %1643 = vperm.xlu0 %4171, %v1640_v31  }
 0xc2c   : > { %3652 = vperm.xlu1 %4170, %v3649_v54  }
 0xc2f   : > { %747 = vperm.xlu0 %4171, %v743_v23  }
 0xc30   : > { %752 = vperm.xlu1 %4170, %v744_v46  }
 0xc33   : > { %1054 = vperm.xlu0 %4171, %v1051_v60  }
 0xc34   : > { %2508 = vperm.xlu1 %4170, %v2505_v3  }
 0xc6d   : > { %v3620_v27 = vpop.permute.xlu0 %3619 }
 0xc6e   : > { %v3633_v8 = vpop.permute.xlu1 %3632 }
 0xc6f   : > { %4136 = vmatpush3.msk.msra.mxu1 %vm774_vm1, %v3633_v8 }
 0xc70   : > { %4137 = vmatprep.subr.mxu1 %v4902_v43 }
 0xc71   : > { %v3629_v55 = vpop.permute.xlu0 %3628 }
 0xc72   : > { %v3611_v26 = vpop.permute.xlu1 %3610 }
 0xc75   : > { %v3589_v56 = vpop.permute.xlu0 %3588 }
 0xc76   : > { %v3607_v17 = vpop.permute.xlu1 %3606 }
 0xc79   : > { %v3567_v19 = vpop.permute.xlu0 %3566 }
 0xc7a   : > { %v3598_v14 = vpop.permute.xlu1 %3597 }
 0xc7d   : > { %v3631_v16 = vpop.permute.xlu0 %3630 }
 0xc7e   : > { %v3585_v34 = vpop.permute.xlu1 %3584  ;;  %v3634_v20 = vsel %vm1035_vm4, %v3629_v55, %v3631_v16  ;;  %v3635_v0 = vsel %vm1035_vm4, %v3631_v16, %v3633_v8 }
 0xc7f   : > { %3943 = vmatprep.subr.msk.mxu0 %vm774_vm1, %v3635_v0 }
 0xc80   : > { %3944 = vmatpush1.msk.msra.mxu0 %vm774_vm1, %v3634_v20 }
 0xc81   : > { %v3609_v38 = vpop.permute.xlu0 %3608 }
 0xc82   : > { %v3576_v61 = vpop.permute.xlu1 %3575  ;;  %v3613_v40 = vsel %vm1011_vm5, %v3609_v38, %v3611_v26  ;;  %v3612_v53 = vsel %vm1011_vm5, %v3607_v17, %v3609_v38 }
 0xc85   : > { %v3618_v51 = vpop.permute.xlu0 %3617 }
 0xc86   : > { %v3563_v45 = vpop.permute.xlu1 %3562  ;;  %v3623_v47 = vsel %vm1023_vm6, %v3618_v51, %v3620_v27 }
 0xc87   : > { %v3645_v9 = vsel %vm774_vm1, %v3612_v53, %v3623_v47 }
 0xc89   : > { %v3600_v5 = vpop.permute.xlu0 %3599 }
 0xc8a   : > { %v3554_v25 = vpop.permute.xlu1 %3553  ;;  %v3644_v10 = vsel %vm774_vm1, %v3589_v56, %v3600_v5  ;;  %v3602_v41 = vsel %vm999_vm7, %v3598_v14, %v3600_v5 }
 0xc8d   : > { %v3596_v21 = vpop.permute.xlu0 %3595 }
 0xc8e   : > { %v3622_v42 = vpop.permute.xlu1 %3621  ;;  %v3601_v62 = vsel %vm999_vm7, %v3596_v21, %v3598_v14 }
 0xc8f   : > { %v3624_v1 = vsel %vm1023_vm6, %v3620_v27, %v3622_v42  ;;  %v3647_v33 = vsel %vm774_vm1, %v3611_v26, %v3622_v42 }
 0xc90   : > { %4138 = vmatpush3.msra.mxu1 %v3647_v33  ;;  %v3646_v58 = vsel %vm774_vm1, %v3613_v40, %v3624_v1 }
 0xc91   : > { %3688 = vmatprep.subr.mxu0 %v3646_v58  ;;  %4139 = vmatprep.subr.mxu1 %v4902_v43  ;;  %v3578_v44 = vpop.permute.xlu0 %3577 }
 0xc92   : > { %v3587_v52 = vpop.permute.xlu1 %3586  ;;  %3689 = vmatpush1.msra.mxu0 %v3645_v9  ;;  %4140 = vmatpush3.msra.mxu1 %v3644_v10  ;;  %v3641_v30 = vsel %vm774_vm1, %v3567_v19, %v3578_v44  ;;  %v3580_v39 = vsel %vm976_vm9, %v3576_v61, %v3578_v44 }
 0xc93   : > { %v3590_v48 = vsel %vm764_vm3, %v3585_v34, %v3587_v52  ;;  %v3591_v59 = vsel %vm764_vm3, %v3587_v52, %v3589_v56  ;;  %4141 = vmatprep.subr.mxu1 %v4902_v43  ;;  %vm5796_vm3 = vcmask 293888  }
 0xc94   : > { %4142 = vmatpush3.msra.mxu1 %v3641_v30  ;;  %v3643_v35 = vsel %vm774_vm1, %v3591_v59, %v3602_v41  ;;  %v3642_v32 = vsel %vm774_vm1, %v3590_v48, %v3601_v62  ;;  %vm5797_vm4 = vmmov %vm5796_vm3  ;;  %v5798_v41 = vld [vmem:[#allocation4_spill] sm:$0xff] }
 0xc95   : > { %3690 = vmatprep.subr.mxu0 %v3643_v35  ;;  %4143 = vmatprep.subr.mxu1 %v4902_v43  ;;  %v3574_v49 = vpop.permute.xlu0 %3573  ;;  %v3648_v43 = vld [vmem:[%s5749_s22] sm:$0xf] }
 0xc96   : > { %v3565_v22 = vpop.permute.xlu1 %3564  ;;  %3691 = vmatpush1.msra.mxu0 %v3642_v32  ;;  %v3579_v46 = vsel %vm976_vm9, %v3574_v49, %v3576_v61 }
 0xc97   : > { %v3568_v54 = vsel %vm964_vm8, %v3563_v45, %v3565_v22  ;;  %v3569_v31 = vsel %vm964_vm8, %v3565_v22, %v3567_v19 }
 0xc98   : > { %v3640_v23 = vsel %vm774_vm1, %v3569_v31, %v3580_v39  ;;  %v3639_v3 = vsel %vm774_vm1, %v3568_v54, %v3579_v46 }
 0xc99   : > { %3692 = vmatprep.subr.mxu0 %v3640_v23  ;;  %v3556_v8 = vpop.permute.xlu0 %3555 }
 0xc9a   : > { %v3552_v60 = vpop.permute.xlu1 %3551  ;;  %3693 = vmatpush1.msra.mxu0 %v3639_v3  ;;  %v3558_v26 = vsel %vm952_vm10, %v3554_v25, %v3556_v8  ;;  %v3638_v55 = vsel %vm774_vm1, %v5561_v57, %v3556_v8 }
 0xc9b   : > { %v3557_v27 = vsel %vm952_vm10, %v3552_v60, %v3554_v25  ;;  %4144 = vmatpush3.msra.mxu1 %v3638_v55  ;;  %v3637_v17 = vsel %vm774_vm1, %v5583_v37, %v3558_v26  ;;  %vm1222_vm10 = vcmask 551936  }
 0xc9c   : > { %v3636_v56 = vsel %vm774_vm1, %v5563_v36, %v3557_v27  ;;  %3694 = vmatprep.subr.mxu0 %v3637_v17  ;;  %4146 = vmatmul.mubr.msk.f32.vlgmr.msra.gmra.mxu1 %vm5796_vm3, %v3648_v43  ;;  %vm1819_vm1 = vcmask 556036  }
 0xc9d   : > { %3695 = vmatpush1.msra.mxu0 %v3636_v56 }
 0xc9e   : > { %3945 = vmatmul.mubr.msk.f32.vlgmr.msra.gmra.mxu0 %vm5797_vm4, %v3648_v43 }
 0xca6   : > { %v1644_v19 = vpop.permute.xlu0 %1643 }
 0xca7   : > { %v5674_v14 = vpop.permute.xlu1 %3652  ;;  %v1722_v34 = vadd.f32 %v4919_v28, %v1644_v19  ;;  %v1724_v57 = vadd.f32 %v4921_v50, %v1644_v19  ;;  %v1793_v16 = vadd.f32 %v4917_v4, %v1644_v19 }
 0xca9   : > { %v1799_v0 = vrot.slane %v1722_v34, 4  ;;  %v1800_v61 = vrot.slane %v1724_v57, 4  ;;  %v1801_v38 = vrot.slane %v1793_v16, 4 }
 0xcaa   : > { %v748_v37 = vpop.permute.xlu0 %747 }
 0xcab   : > { %v753_v20 = vpop.permute.xlu1 %752  ;;  %v848_v36 = vadd.f32 %v4618_v11, %v748_v37  ;;  %v850_v45 = vadd.f32 %v4620_v12, %v748_v37  ;;  %v925_v51 = vadd.f32 %v4614_v6, %v748_v37 }
 0xcac   : > { %v5684_v25 = vadd.f32 %v4622_v13, %v753_v20  ;;  %v5687_v50 = vadd.f32 %v4624_v15, %v753_v20  ;;  %v930_v4 = vadd.f32 %v4612_v2, %v753_v20 }
 0xcad   : > { %v1805_v28 = vadd.f32 %v1799_v0, %v848_v36  ;;  %v1806_v5 = vadd.f32 %v1800_v61, %v850_v45  ;;  %v1807_v47 = vadd.f32 %v1801_v38, %v925_v51 }
 0xcae   : > { %v1055_v13 = vpop.permute.xlu0 %1054 }
 0xcaf   : > { %v2509_v42 = vpop.permute.xlu1 %2508  ;;  %vm1808_vm5 = vcmp.ge.f32.partialorder %v1805_v28, 0.0  ;;  %v1811_v6 = vmul.f32 0.01, %v1805_v28  ;;  %vm1809_vm6 = vcmp.ge.f32.partialorder %v1806_v5, 0.0  ;;  %vm1810_vm7 = vcmp.ge.f32.partialorder %v1807_v47, 0.0 }
 0xcb0   : > { %v2587_v11 = vadd.f32 %v5323_v63, %v2509_v42  ;;  %v2589_v12 = vadd.f32 %v5325_v29, %v2509_v42  ;;  %v1812_v2 = vmul.f32 0.01, %v1806_v5  ;;  %v1813_v15 = vmul.f32 0.01, %v1807_v47 }
 0xcb1   : > { %v1814_v21 = vsel %vm1808_vm5, %v1805_v28, %v1811_v6  ;;  %v2658_v40 = vadd.f32 %v5321_v7, %v2509_v42  ;;  %v1134_v63 = vadd.f32 %v4626_v18, %v1055_v13  ;;  %v1136_v29 = vadd.f32 %v4633_v24, %v1055_v13 }
 0xcb2   : > { %v2661_v1 = vadd.f32 %v2587_v11, %v5684_v25  ;;  %v2662_v33 = vadd.f32 %v2589_v12, %v5687_v50  ;;  %v1815_v53 = vsel %vm1809_vm6, %v1806_v5, %v1812_v2  ;;  %v1816_v58 = vsel %vm1810_vm7, %v1807_v47, %v1813_v15  ;;  %1817 = vst [vmem:[%s5693_s27] sm:$0xf0] %v1814_v21 }
 0xcb3   : > { %1818 = vst [vmem:[%s5693_s27 + $0x8] sm:$0xf0] %v1815_v53  ;;  %v2663_v10 = vadd.f32 %v2658_v40, %v930_v4  ;;  %1820 = vst.msk [vmem:[%s5693_s27 + $0x10] sm:$0xf0] %vm1819_vm1, %v1816_v58  ;;  %v1205_v52 = vadd.f32 %v5798_v41, %v1055_v13  ;;  %v1208_v44 = vadd.f32 %v1134_v63, %v848_v36 }
 0xcb4   : > { %vm2664_vm8 = vcmp.ge.f32.partialorder %v2661_v1, 0.0  ;;  %vm2665_vm9 = vcmp.ge.f32.partialorder %v2662_v33, 0.0  ;;  %v2667_v9 = vmul.f32 0.01, %v2661_v1  ;;  %v2668_v7 = vmul.f32 0.01, %v2662_v33 }
 0xcb5   : > { %v1209_v62 = vadd.f32 %v1136_v29, %v850_v45  ;;  %vm2666_vm13 = vcmp.ge.f32.partialorder %v2663_v10, 0.0  ;;  %v2669_v18 = vmul.f32 0.01, %v2663_v10  ;;  %v1210_v59 = vadd.f32 %v1205_v52, %v925_v51 }
 0xcb6   : > { %v2670_v48 = vsel %vm2664_vm8, %v2661_v1, %v2667_v9  ;;  %v2671_v24 = vsel %vm2665_vm9, %v2662_v33, %v2668_v7  ;;  %vm1211_vm14 = vcmp.ge.f32.partialorder %v1208_v44, 0.0  ;;  %v1214_v35 = vmul.f32 0.01, %v1208_v44 }
 0xcb7   : > { %2673 = vst [vmem:[%s5693_s27 + $0x18] sm:$0xf] %v2670_v48  ;;  %vm1212_vm15 = vcmp.ge.f32.partialorder %v1209_v62, 0.0  ;;  %v2672_v30 = vsel %vm2666_vm13, %v2663_v10, %v2669_v18  ;;  %2674 = vst [vmem:[%s5693_s27 + $0x20] sm:$0xf] %v2671_v24  ;;  %vm1213_vm2 = vcmp.ge.f32.partialorder %v1210_v59, 0.0 }
 0xcb8   : > { %v1215_v32 = vmul.f32 0.01, %v1209_v62  ;;  %2675 = vst.msk [vmem:[%s5693_s27 + $0x28] sm:$0xf] %vm1222_vm10, %v2672_v30  ;;  %v1216_v22 = vmul.f32 0.01, %v1210_v59  ;;  %v1217_v49 = vsel %vm1211_vm14, %v1208_v44, %v1214_v35 }
 0xcb9   : > { %1220 = vst [vmem:[%s5693_s27] sm:$0xf] %v1217_v49 }
 0xcba   : > { %v1218_v39 = vsel %vm1212_vm15, %v1209_v62, %v1215_v32  ;;  %v1219_v54 = vsel %vm1213_vm2, %v1210_v59, %v1216_v22 }
 0xcbb   : > { %1221 = vst [vmem:[%s5693_s27 + $0x8] sm:$0xf] %v1218_v39  ;;  %1223 = vst.msk [vmem:[%s5693_s27 + $0x10] sm:$0xf] %vm1222_vm10, %v1219_v54 }
 0xd5c   : > { %v3801_v31 = vpop.f32.mrf.mxu1 }
 0xd5d   : > { %v3802_v46 = vadd.f32 %v3801_v31, %v5674_v14 }
 0xd5e   : > { %v3730_v23 = vpop.f32.mrf.mxu0  ;;  %v4147_v3 = vpop.f32.mrf.mxu1 }
 0xd5f   : > { %v3810_v60 = vrot.slane %v3802_v46, 4  ;;  %v3731_v8 = vadd.f32 %v3730_v23, %v5674_v14 }
 0xd60   : > { %v3732_v43 = vpop.f32.mrf.mxu0 }
 0xd61   : > { %v3816_v27 = vadd.f32 %v3810_v60, %v930_v4  ;;  %v3808_v26 = vrot.slane %v3731_v8, 4  ;;  %v3733_v55 = vadd.f32 %v3732_v43, %v5674_v14 }
 0xd63   : > { %vm3819_vm12 = vcmp.ge.f32.partialorder %v3816_v27, 0.0  ;;  %v3822_v17 = vmul.f32 0.01, %v3816_v27  ;;  %v3814_v56 = vadd.f32 %v3808_v26, %v5684_v25  ;;  %v3809_v19 = vrot.slane %v3733_v55, 4 }
 0xd65   : > { %v3825_v34 = vsel %vm3819_vm12, %v3816_v27, %v3822_v17  ;;  %vm3817_vm11 = vcmp.ge.f32.partialorder %v3814_v56, 0.0  ;;  %v3820_v57 = vmul.f32 0.01, %v3814_v56  ;;  %v3815_v16 = vadd.f32 %v3809_v19, %v5687_v50 }
 0xd66   : > { %3828 = vst.msk [vmem:[%s5693_s27 + $0x28] sm:$0xf0] %vm1819_vm1, %v3825_v34 }
 0xd67   : > { %v3823_v20 = vsel %vm3817_vm11, %v3814_v56, %v3820_v57  ;;  %vm3818_vm0 = vcmp.ge.f32.partialorder %v3815_v16, 0.0  ;;  %v3821_v37 = vmul.f32 0.01, %v3815_v16 }
 0xd68   : > { %3826 = vst [vmem:[%s5693_s27 + $0x18] sm:$0xf0] %v3823_v20 }
 0xd69   : > { %v3824_v0 = vsel %vm3818_vm0, %v3815_v16, %v3821_v37 }
 0xd6a   : > { %3827 = vst [vmem:[%s5693_s27 + $0x20] sm:$0xf0] %v3824_v0 }
 0xd6b PF: > { %s34_s5 = sadd.s32 1, %s4206_s5  }
 0xd6c   : > { %p31_p4 = scmp.ge.s32.totalorder %s34_s5, 4  }
 0xd6e   :  { %33 = sbr.rel (!%p31_p4) target bundleno = 10 (0xa), region = 146 }

</bundles_post_ra>
